<compile_context>
chip_gen: v6e
topology: v6e:2x2x1
jax: 0.10.0
libtpu: 0.0.40
codegen_flags: <defaults>
</compile_context>

<pallas_src>
import functools

import jax
import jax.numpy as jnp
from jax import lax
from jax.experimental import pallas as pl
from jax.experimental.pallas import tpu as pltpu

LANE = 128


# ------------------------------ helpers --------------------------------------
def _round_up(x, m):
    return ((x + m - 1) // m) * m


def _phys_bytes(shape, dtype):
    """Physical (lane/sublane padded) VMEM bytes of a tile of `shape`."""
    d = jnp.dtype(dtype).itemsize
    if len(shape) == 0:
        return d
    if len(shape) == 1:
        return _round_up(int(shape[0]), LANE) * d
    sub_tile = max(1, (8 * 4) // d)              # (8,128) f32 / (16,128) bf16
    lanes = _round_up(int(shape[-1]), LANE)
    subs = _round_up(int(shape[-2]), sub_tile)
    lead = 1
    for s in shape[:-2]:
        lead *= int(s)
    return lead * subs * lanes * d


def _tpu_vmem_capacity():
    try:
        return int(pltpu.get_tpu_info().vmem_capacity_bytes)
    except Exception:
        return 64 * 1024 * 1024                  # conservative (v7x-sized)


def _pick_cout_tile(cout):
    """256-wide cout tiles on 256-wide-MXU parts (v6e/v7x), else 128."""
    kind = ""
    try:
        kind = jax.devices()[0].device_kind.lower()
    except Exception:
        pass
    wide_mxu = any(t in kind for t in ("v6", "v7", "tpu7"))
    return 256 if (wide_mxu and cout > LANE) else LANE


def _choose_row_tile(nr, kh, kw, cin, w_arr, wout_p, tn, compute_dtype, budget):
    """Largest row tile giving ~2048 matmul rows/step within the VMEM budget."""
    k_dim = kh * kw * cin

    def est(tr):
        x_blk = 2 * _phys_bytes((kh, tr, w_arr, cin), compute_dtype)   # dbl buf
        w_blk = 2 * _phys_bytes((k_dim, tn), compute_dtype)            # dbl buf
        o_blk = 2 * _phys_bytes((tr, wout_p, tn), jnp.float32)         # dbl buf
        lhs = _phys_bytes((tr, wout_p, k_dim), compute_dtype)          # scratch
        tmp = _phys_bytes((tr * wout_p, tn), jnp.float32)              # dot out
        bias = _phys_bytes((1, tn), jnp.float32)
        return x_blk + w_blk + o_blk + 2 * lhs + 2 * tmp + bias + (1 << 20)

    target_rows = 2048
    tr = max(1, min(nr, target_rows // max(wout_p, 1)))
    while tr > 1 and est(tr) > budget:
        tr = max(1, tr // 2)
    return tr


# ----------------------------- Pallas kernel ----------------------------------
def _fused_conv_kernel(x_ref, w_ref, b_ref, o_ref, lhs_ref, *,
                       kh, kw, cin, wout, stride, dilation):
    """One (row-tile, cout-tile) grid step: fused im2col + single deep dot.

    x_ref  : (KH, tr, W_arr, Cin)       input rows (compute dtype)
    w_ref  : (KH*KW*Cin, tn)            weight slab (compute dtype)
    b_ref  : (1, tn)                    bias (f32)
    o_ref  : (tr, Wout_p, tn)           output tile (f32)
    lhs_ref: (tr, Wout_p, KH*KW*Cin)    VMEM patch buffer (compute dtype)
    """
    tr = x_ref.shape[1]
    for i in range(kh):                       # static loops (kh*kw small)
        for j in range(kw):
            lo = j * dilation
            if stride == 1:
                xs = x_ref[i, :, lo:lo + wout, :]
            else:
                xs = x_ref[i, :, pl.ds(lo, wout, stride), :]   # strided read
            t = i * kw + j
            lhs_ref[:, :, t * cin:(t + 1) * cin] = xs
    lhs = lhs_ref[...].reshape(tr * wout, kh * kw * cin)
    out = jnp.dot(lhs, w_ref[...], preferred_element_type=jnp.float32)
    out = jnp.maximum(out + b_ref[...], 0.0)
    o_ref[...] = out.reshape(o_ref.shape).astype(o_ref.dtype)


# ------------------------------- wrapper --------------------------------------
def conv2d_bias_relu(x_nchw, weight, bias, *, stride=1, padding=0, dilation=1,
                     compute_dtype=jnp.bfloat16, out_dtype=jnp.float32):
    """Conv2d(bias=True) + ReLU, NCHW in / NCHW out."""
    N, Cin, H, W = x_nchw.shape
    Cout, Cin_w, KH, KW = weight.shape
    assert Cin == Cin_w

    # ---- glue: NHWC + spatial padding; H-direction taps stacked so every
    #      Pallas block is rectangular & halo-free (stride/dilation absorbed
    #      along H).  W-direction taps are handled inside the kernel. ----
    x = jnp.transpose(x_nchw, (0, 2, 3, 1))                          # NHWC
    xp = jnp.pad(x, ((0, 0), (padding, padding), (padding, padding), (0, 0)))
    Hp, Wp = H + 2 * padding, W + 2 * padding
    Hout = (Hp - dilation * (KH - 1) - 1) // stride + 1
    Wout = (Wp - dilation * (KW - 1) - 1) // stride + 1

    # Pad W so Wout is a multiple of 8 (aligned in-kernel reshapes / stores).
    Wout_p = _round_up(Wout, 8)
    W_need = (Wout_p - 1) * stride + dilation * (KW - 1) + 1
    W_arr = max(Wp, W_need)
    if W_arr > Wp:
        xp = jnp.pad(xp, ((0, 0), (0, 0), (0, W_arr - Wp), (0, 0)))

    # x_rows[i, n*Hout+ho, :, :] = xp[n, ho*stride + i*dilation, :, :]
    rows = [xp[:, i * dilation:i * dilation + (Hout - 1) * stride + 1:stride, :, :]
            for i in range(KH)]
    x_rows = jnp.stack(rows, axis=0).reshape(KH, N * Hout, W_arr, Cin)
    x_rows = x_rows.astype(compute_dtype)
    # TODO(synk): for very small Cin the lane dim (Cin) is sparse; a lane-dense
    # repack (fold Cin into W) or a manual halo DMA from a single NHWC array
    # (P4 double-buffer) would further cut HBM/VMEM traffic, esp. on v5e.

    # Weights -> (KH*KW*Cin, Cout_pad), lane-dense cout; bias -> (1, Cout_pad).
    tn = _pick_cout_tile(Cout)
    Cout_pad = _round_up(Cout, tn)
    K_dim = KH * KW * Cin
    w = jnp.transpose(weight, (2, 3, 1, 0)).reshape(K_dim, Cout)
    b = bias
    if Cout_pad != Cout:
        w = jnp.pad(w, ((0, 0), (0, Cout_pad - Cout)))
        b = jnp.pad(bias, (0, Cout_pad - Cout))
    w = w.astype(compute_dtype)
    b = b.reshape(1, Cout_pad).astype(jnp.float32)

    # ---- tile sizing: lane-padding-aware estimate, per-generation budget ----
    vmem_cap = _tpu_vmem_capacity()
    budget = (vmem_cap * 65) // 100        # ~42 MiB on 64 MiB v7x, ~83 MiB v5e/v6e
    vmem_limit = int((vmem_cap * 80) // 100)
    nr = N * Hout
    tr = _choose_row_tile(nr, KH, KW, Cin, W_arr, Wout_p, tn,
                          compute_dtype, budget)
    # v7x has 2 TensorCores: keep at least 2 parallel grid steps when possible.
    if (pl.cdiv(nr, tr) * (Cout_pad // tn)) < 2 and nr >= 2:
        tr = pl.cdiv(nr, 2)
    nr_pad = pl.cdiv(nr, tr) * tr
    if nr_pad != nr:
        x_rows = jnp.pad(x_rows, ((0, 0), (0, nr_pad - nr), (0, 0), (0, 0)))

    # cout is the fast grid axis -> x block stays resident across the sweep.
    grid = (nr_pad // tr, Cout_pad // tn)

    kernel = functools.partial(_fused_conv_kernel, kh=KH, kw=KW, cin=Cin,
                               wout=Wout_p, stride=stride, dilation=dilation)

    in_bytes = jnp.dtype(compute_dtype).itemsize
    out_bytes = jnp.dtype(out_dtype).itemsize
    flops = 2 * nr_pad * Wout_p * K_dim * Cout_pad
    bytes_accessed = (x_rows.size * in_bytes + w.size * in_bytes + b.size * 4
                      + nr_pad * Wout_p * Cout_pad * out_bytes)

    out = pl.pallas_call(
        kernel,
        out_shape=jax.ShapeDtypeStruct((nr_pad, Wout_p, Cout_pad), out_dtype),
        grid_spec=pltpu.PrefetchScalarGridSpec(
            num_scalar_prefetch=0,
            grid=grid,
            in_specs=[
                pl.BlockSpec((KH, tr, W_arr, Cin), lambda r, c: (0, r, 0, 0)),
                pl.BlockSpec((K_dim, tn), lambda r, c: (0, c)),
                pl.BlockSpec((1, tn), lambda r, c: (0, c)),
            ],
            out_specs=pl.BlockSpec((tr, Wout_p, tn), lambda r, c: (r, 0, c)),
            scratch_shapes=[pltpu.VMEM((tr, Wout_p, K_dim), compute_dtype)],
        ),
        compiler_params=pltpu.CompilerParams(
            dimension_semantics=("parallel", "parallel"),
            vmem_limit_bytes=vmem_limit,
        ),
        cost_estimate=pl.CostEstimate(flops=flops, transcendentals=0,
                                      bytes_accessed=bytes_accessed),
    )(x_rows, w, b)

    out = out[:nr, :Wout, :Cout].reshape(N, Hout, Wout, Cout)
    # TODO(synk): the NHWC->NCHW transpose (and the input transpose/pad) is
    # only for PyTorch API parity; drop it if the surrounding model is NHWC.
    return jnp.transpose(out, (0, 3, 1, 2)).astype(jnp.float32)


# ------------------------------ ConvReLUBlock ----------------------------------
class ConvReLUBlock:
    """Pallas port of the PyTorch ConvReLUBlock (Conv2d + bias + ReLU)."""

    def __init__(self, in_channel, out_channel, kernel_size,
                 dilation_rate=1, padding=0, stride=1, key=None,
                 compute_dtype=jnp.bfloat16):
        self.in_channel = in_channel
        self.out_channel = out_channel
        self.kernel_size = kernel_size
        self.dilation = dilation_rate
        self.padding = padding
        self.stride = stride
        self.compute_dtype = compute_dtype

        if key is None:
            key = jax.random.PRNGKey(0)
        k_w, k_b = jax.random.split(key)
        fan_in = in_channel * kernel_size * kernel_size
        bound = float(1.0 / (fan_in ** 0.5))
        # PyTorch layout: (Cout, Cin, KH, KW); deterministic synthetic init.
        self.weight = jax.random.uniform(
            k_w, (out_channel, in_channel, kernel_size, kernel_size),
            dtype=jnp.float32, minval=-bound, maxval=bound)
        self.bias = jax.random.uniform(
            k_b, (out_channel,), dtype=jnp.float32, minval=-bound, maxval=bound)

    def __call__(self, x_nchw):
        N, C, H, W = x_nchw.shape
        assert C == self.in_channel
        return conv2d_bias_relu(
            x_nchw, self.weight, self.bias,
            stride=self.stride, padding=self.padding, dilation=self.dilation,
            compute_dtype=self.compute_dtype)


# --------------------------------- demo ----------------------------------------
def _reference_conv_relu(x_nchw, weight, bias, stride, padding, dilation,
                         cast_dtype=None):
    x, w = x_nchw, weight
    if cast_dtype is not None:
        x, w = x.astype(cast_dtype), w.astype(cast_dtype)
    out = lax.conv_general_dilated(
        x, w,
        window_strides=(stride, stride),
        padding=((padding, padding), (padding, padding)),
        rhs_dilation=(dilation, dilation),
        dimension_numbers=("NCHW", "OIHW", "NCHW"),
        preferred_element_type=jnp.float32)
    out = out + bias.reshape(1, -1, 1, 1).astype(jnp.float32)
    return jnp.maximum(out, 0.0)


if __name__ == "__main__":
    key = jax.random.PRNGKey(0)
    k_x, k_p = jax.random.split(key)

    # Small shapes consistent with the module: NCHW input.
    N, Cin, H, W = 2, 4, 16, 16
    Cout, ksize, pad, stride, dil = 8, 3, 1, 1, 1

    x = jax.random.normal(k_x, (N, Cin, H, W), dtype=jnp.float32)

    block = ConvReLUBlock(Cin, Cout, ksize,
                          dilation_rate=dil, padding=pad, stride=stride, key=k_p)

    y = jax.jit(block.__call__)(x)
    y = jax.block_until_ready(y)

    # Apples-to-apples: reference with the same bf16 inputs, f32 accumulation.
    y_ref_bf16 = _reference_conv_relu(x, block.weight, block.bias,
                                      stride, pad, dil, cast_dtype=jnp.bfloat16)
    # Sanity vs full-f32 reference (loose tol for the bf16 cast).
    y_ref_f32 = _reference_conv_relu(x, block.weight, block.bias,
                                     stride, pad, dil)

    assert y.shape == y_ref_f32.shape
    assert jnp.allclose(y, y_ref_bf16, atol=1e-2, rtol=1e-2), \
        "mismatch vs bf16-input XLA conv reference"
    assert jnp.allclose(y, y_ref_f32, atol=8e-2, rtol=8e-2), \
        "mismatch vs f32 XLA conv reference"

    print("KERNEL_OK")
</pallas_src>

<mosaic_0001>
module attributes {stable_mosaic.version = 11 : i64} {
  func.func @_fused_conv_kernel(%arg0: i32, %arg1: i32, %arg2: memref<3x16x18x4xbf16, #tpu.memory_space<vmem>>, %arg3: memref<36x128xbf16, #tpu.memory_space<vmem>>, %arg4: memref<1x128xf32, #tpu.memory_space<vmem>>, %arg5: memref<16x16x128xf32, #tpu.memory_space<vmem>>, %arg6: memref<16x16x36xbf16, #tpu.memory_space<vmem>>) attributes {dimension_semantics = [#tpu.dimension_semantics<parallel>, #tpu.dimension_semantics<parallel>], iteration_bounds = array<i64: 2, 1>, scalar_prefetch = 0 : i64, scratch_operands = 1 : i64, tpu.core_type = #tpu.core_type<tc>, window_params = [{transform_indices = @transform_0, window_bounds = array<i64: 3, 16, 18, 4>}, {transform_indices = @transform_1, window_bounds = array<i64: 36, 128>}, {transform_indices = @transform_2, window_bounds = array<i64: 1, 128>}, {transform_indices = @transform_3, window_bounds = array<i64: 16, 16, 128>}]} {
    %c0 = arith.constant 0 : index
    %c0_0 = arith.constant 0 : index
    %c0_1 = arith.constant 0 : index
    %c0_2 = arith.constant 0 : index
    %0 = vector.load %arg2[%c0, %c0_0, %c0_1, %c0_2] : memref<3x16x18x4xbf16, #tpu.memory_space<vmem>>, vector<1x16x16x4xbf16>
    %1 = vector.shape_cast %0 : vector<1x16x16x4xbf16> to vector<16x16x4xbf16>
    %c0_3 = arith.constant 0 : index
    %c0_4 = arith.constant 0 : index
    %c0_5 = arith.constant 0 : index
    %2 = vector.load %arg6[%c0_3, %c0_4, %c0_5] : memref<16x16x36xbf16, #tpu.memory_space<vmem>>, vector<16x16x4xbf16>
    tpu.vector_store %arg6[%c0_3, %c0_4, %c0_5], %1 {strides = array<i32>} : memref<16x16x36xbf16, #tpu.memory_space<vmem>>, vector<16x16x4xbf16>,
    %c0_6 = arith.constant 0 : index
    %c0_7 = arith.constant 0 : index
    %c1 = arith.constant 1 : index
    %c0_8 = arith.constant 0 : index
    %3 = vector.load %arg2[%c0_6, %c0_7, %c1, %c0_8] : memref<3x16x18x4xbf16, #tpu.memory_space<vmem>>, vector<1x16x16x4xbf16>
    %4 = vector.shape_cast %3 : vector<1x16x16x4xbf16> to vector<16x16x4xbf16>
    %c0_9 = arith.constant 0 : index
    %c0_10 = arith.constant 0 : index
    %c4 = arith.constant 4 : index
    %5 = vector.load %arg6[%c0_9, %c0_10, %c4] : memref<16x16x36xbf16, #tpu.memory_space<vmem>>, vector<16x16x4xbf16>
    tpu.vector_store %arg6[%c0_9, %c0_10, %c4], %4 {strides = array<i32>} : memref<16x16x36xbf16, #tpu.memory_space<vmem>>, vector<16x16x4xbf16>,
    %c0_11 = arith.constant 0 : index
    %c0_12 = arith.constant 0 : index
    %c2 = arith.constant 2 : index
    %c0_13 = arith.constant 0 : index
    %6 = vector.load %arg2[%c0_11, %c0_12, %c2, %c0_13] : memref<3x16x18x4xbf16, #tpu.memory_space<vmem>>, vector<1x16x16x4xbf16>
    %7 = vector.shape_cast %6 : vector<1x16x16x4xbf16> to vector<16x16x4xbf16>
    %c0_14 = arith.constant 0 : index
    %c0_15 = arith.constant 0 : index
    %c8 = arith.constant 8 : index
    %8 = vector.load %arg6[%c0_14, %c0_15, %c8] : memref<16x16x36xbf16, #tpu.memory_space<vmem>>, vector<16x16x4xbf16>
    tpu.vector_store %arg6[%c0_14, %c0_15, %c8], %7 {strides = array<i32>} : memref<16x16x36xbf16, #tpu.memory_space<vmem>>, vector<16x16x4xbf16>,
    %c1_16 = arith.constant 1 : index
    %c0_17 = arith.constant 0 : index
    %c0_18 = arith.constant 0 : index
    %c0_19 = arith.constant 0 : index
    %9 = vector.load %arg2[%c1_16, %c0_17, %c0_18, %c0_19] : memref<3x16x18x4xbf16, #tpu.memory_space<vmem>>, vector<1x16x16x4xbf16>
    %10 = vector.shape_cast %9 : vector<1x16x16x4xbf16> to vector<16x16x4xbf16>
    %c0_20 = arith.constant 0 : index
    %c0_21 = arith.constant 0 : index
    %c12 = arith.constant 12 : index
    %11 = vector.load %arg6[%c0_20, %c0_21, %c12] : memref<16x16x36xbf16, #tpu.memory_space<vmem>>, vector<16x16x4xbf16>
    tpu.vector_store %arg6[%c0_20, %c0_21, %c12], %10 {strides = array<i32>} : memref<16x16x36xbf16, #tpu.memory_space<vmem>>, vector<16x16x4xbf16>,
    %c1_22 = arith.constant 1 : index
    %c0_23 = arith.constant 0 : index
    %c1_24 = arith.constant 1 : index
    %c0_25 = arith.constant 0 : index
    %12 = vector.load %arg2[%c1_22, %c0_23, %c1_24, %c0_25] : memref<3x16x18x4xbf16, #tpu.memory_space<vmem>>, vector<1x16x16x4xbf16>
    %13 = vector.shape_cast %12 : vector<1x16x16x4xbf16> to vector<16x16x4xbf16>
    %c0_26 = arith.constant 0 : index
    %c0_27 = arith.constant 0 : index
    %c16 = arith.constant 16 : index
    %14 = vector.load %arg6[%c0_26, %c0_27, %c16] : memref<16x16x36xbf16, #tpu.memory_space<vmem>>, vector<16x16x4xbf16>
    tpu.vector_store %arg6[%c0_26, %c0_27, %c16], %13 {strides = array<i32>} : memref<16x16x36xbf16, #tpu.memory_space<vmem>>, vector<16x16x4xbf16>,
    %c1_28 = arith.constant 1 : index
    %c0_29 = arith.constant 0 : index
    %c2_30 = arith.constant 2 : index
    %c0_31 = arith.constant 0 : index
    %15 = vector.load %arg2[%c1_28, %c0_29, %c2_30, %c0_31] : memref<3x16x18x4xbf16, #tpu.memory_space<vmem>>, vector<1x16x16x4xbf16>
    %16 = vector.shape_cast %15 : vector<1x16x16x4xbf16> to vector<16x16x4xbf16>
    %c0_32 = arith.constant 0 : index
    %c0_33 = arith.constant 0 : index
    %c20 = arith.constant 20 : index
    %17 = vector.load %arg6[%c0_32, %c0_33, %c20] : memref<16x16x36xbf16, #tpu.memory_space<vmem>>, vector<16x16x4xbf16>
    tpu.vector_store %arg6[%c0_32, %c0_33, %c20], %16 {strides = array<i32>} : memref<16x16x36xbf16, #tpu.memory_space<vmem>>, vector<16x16x4xbf16>,
    %c2_34 = arith.constant 2 : index
    %c0_35 = arith.constant 0 : index
    %c0_36 = arith.constant 0 : index
    %c0_37 = arith.constant 0 : index
    %18 = vector.load %arg2[%c2_34, %c0_35, %c0_36, %c0_37] : memref<3x16x18x4xbf16, #tpu.memory_space<vmem>>, vector<1x16x16x4xbf16>
    %19 = vector.shape_cast %18 : vector<1x16x16x4xbf16> to vector<16x16x4xbf16>
    %c0_38 = arith.constant 0 : index
    %c0_39 = arith.constant 0 : index
    %c24 = arith.constant 24 : index
    %20 = vector.load %arg6[%c0_38, %c0_39, %c24] : memref<16x16x36xbf16, #tpu.memory_space<vmem>>, vector<16x16x4xbf16>
    tpu.vector_store %arg6[%c0_38, %c0_39, %c24], %19 {strides = array<i32>} : memref<16x16x36xbf16, #tpu.memory_space<vmem>>, vector<16x16x4xbf16>,
    %c2_40 = arith.constant 2 : index
    %c0_41 = arith.constant 0 : index
    %c1_42 = arith.constant 1 : index
    %c0_43 = arith.constant 0 : index
    %21 = vector.load %arg2[%c2_40, %c0_41, %c1_42, %c0_43] : memref<3x16x18x4xbf16, #tpu.memory_space<vmem>>, vector<1x16x16x4xbf16>
    %22 = vector.shape_cast %21 : vector<1x16x16x4xbf16> to vector<16x16x4xbf16>
    %c0_44 = arith.constant 0 : index
    %c0_45 = arith.constant 0 : index
    %c28 = arith.constant 28 : index
    %23 = vector.load %arg6[%c0_44, %c0_45, %c28] : memref<16x16x36xbf16, #tpu.memory_space<vmem>>, vector<16x16x4xbf16>
    tpu.vector_store %arg6[%c0_44, %c0_45, %c28], %22 {strides = array<i32>} : memref<16x16x36xbf16, #tpu.memory_space<vmem>>, vector<16x16x4xbf16>,
    %c2_46 = arith.constant 2 : index
    %c0_47 = arith.constant 0 : index
    %c2_48 = arith.constant 2 : index
    %c0_49 = arith.constant 0 : index
    %24 = vector.load %arg2[%c2_46, %c0_47, %c2_48, %c0_49] : memref<3x16x18x4xbf16, #tpu.memory_space<vmem>>, vector<1x16x16x4xbf16>
    %25 = vector.shape_cast %24 : vector<1x16x16x4xbf16> to vector<16x16x4xbf16>
    %c0_50 = arith.constant 0 : index
    %c0_51 = arith.constant 0 : index
    %c32 = arith.constant 32 : index
    %26 = vector.load %arg6[%c0_50, %c0_51, %c32] : memref<16x16x36xbf16, #tpu.memory_space<vmem>>, vector<16x16x4xbf16>
    tpu.vector_store %arg6[%c0_50, %c0_51, %c32], %25 {strides = array<i32>} : memref<16x16x36xbf16, #tpu.memory_space<vmem>>, vector<16x16x4xbf16>,
    %c0_52 = arith.constant 0 : index
    %c0_53 = arith.constant 0 : index
    %c0_54 = arith.constant 0 : index
    %27 = vector.load %arg6[%c0_52, %c0_53, %c0_54] : memref<16x16x36xbf16, #tpu.memory_space<vmem>>, vector<16x16x36xbf16>
    %28 = vector.shape_cast %27 : vector<16x16x36xbf16> to vector<256x36xbf16>
    %c0_55 = arith.constant 0 : index
    %c0_56 = arith.constant 0 : index
    %29 = vector.load %arg3[%c0_55, %c0_56] : memref<36x128xbf16, #tpu.memory_space<vmem>>, vector<36x128xbf16>
    %cst = arith.constant dense<0.000000e+00> : vector<256x128xf32>
    %30 = tpu.matmul %28, %29, %cst {dimension_numbers = #tpu.dot_dimension_numbers<[1], [0], [0], [1], [0, 0, 1, 1], [], []>} : vector<256x36xbf16>, vector<36x128xbf16>, vector<256x128xf32> -> vector<256x128xf32>
    %c0_57 = arith.constant 0 : index
    %c0_58 = arith.constant 0 : index
    %31 = vector.load %arg4[%c0_57, %c0_58] : memref<1x128xf32, #tpu.memory_space<vmem>>, vector<1x128xf32>
    %32 = vector.broadcast %31 : vector<1x128xf32> to vector<256x128xf32>
    %33 = arith.addf %30, %32 : vector<256x128xf32>
    %cst_59 = arith.constant 0.000000e+00 : f32
    %34 = vector.broadcast %cst_59 : f32 to vector<256x128xf32>
    %35 = arith.maximumf %33, %34 : vector<256x128xf32>
    %36 = vector.shape_cast %35 : vector<256x128xf32> to vector<16x16x128xf32>
    %c0_60 = arith.constant 0 : index
    %c0_61 = arith.constant 0 : index
    %c0_62 = arith.constant 0 : index
    %37 = vector.load %arg5[%c0_60, %c0_61, %c0_62] : memref<16x16x128xf32, #tpu.memory_space<vmem>>, vector<16x16x128xf32>
    tpu.vector_store %arg5[%c0_60, %c0_61, %c0_62], %36 {strides = array<i32>} : memref<16x16x128xf32, #tpu.memory_space<vmem>>, vector<16x16x128xf32>,
    return
  }
  func.func @transform_0(%arg0: i32, %arg1: i32) -> (i32, i32, i32, i32) {
    %c0_i32 = arith.constant 0 : i32
    %c0_i32_0 = arith.constant 0 : i32
    %c0_i32_1 = arith.constant 0 : i32
    %c0_i32_2 = arith.constant 0 : i32
    return %c0_i32, %arg0, %c0_i32_0, %c0_i32_1 : i32, i32, i32, i32
  }
  func.func @transform_1(%arg0: i32, %arg1: i32) -> (i32, i32) {
    %c0_i32 = arith.constant 0 : i32
    %c0_i32_0 = arith.constant 0 : i32
    return %c0_i32, %arg1 : i32, i32
  }
  func.func @transform_2(%arg0: i32, %arg1: i32) -> (i32, i32) {
    %c0_i32 = arith.constant 0 : i32
    %c0_i32_0 = arith.constant 0 : i32
    return %c0_i32, %arg1 : i32, i32
  }
  func.func @transform_3(%arg0: i32, %arg1: i32) -> (i32, i32, i32) {
    %c0_i32 = arith.constant 0 : i32
    %c0_i32_0 = arith.constant 0 : i32
    return %arg0, %c0_i32, %arg1 : i32, i32, i32
  }
}

</mosaic_0001>

<bundles_post_ra>
// kernel: a_call__.1
= control target key start
LH: loop header
LB: loop body
LE: loop exit
PB: predicated region body
PF: predicated region fallthrough
CT: control target
= control target key end

     0   :  { %s5087_s12 = smov 0   ;;  %s5089_s13 = smov 0   ;;  %s6848_s0 = inlined_call_operand.vmem [shape: bf16[3,32,18,4], index: 0, kind: input, shape index: {}]   ;;  %s6849_s1 = inlined_call_operand.vmem [shape: bf16[36,128], index: 1, kind: input, shape index: {}]   ;;  %s6850_s2 = inlined_call_operand.vmem [shape: f32[1,128], index: 2, kind: input, shape index: {}]   ;;  %s6851_s3 = inlined_call_operand.vmem [shape: f32[32,16,128], index: 3, kind: output, shape index: {}]  }
   0x1   :  { %s5091_s14 = smov 0   ;;  %s5093_s15 = smov 0  }
   0x2   :  { %s5095_s16 = smov 0  }
   0x3 LB: > { %s25_s17 = sadd.s32 1, %s5053_s15  ;;  %p39_p1 = scmp.ne.s32.totalorder %s5045_s13, %s5041_s12  ;;  %s5057_s16 = sphi %s5095_s16, %s13_s16   ;;  %s5053_s15 = sphi %s5093_s15, %s6859_s15   ;;  %s5049_s14 = sphi %s5091_s14, %s6858_s14   ;;  %s5045_s13 = sphi %s5089_s13, %s6857_s13   ;;  %s5041_s12 = sphi %s5087_s12, %s6856_s12  }
   0x4   : > { %p27_p0 = scmp.ge.s32.totalorder %s25_s17, 2  ;;  %p40_p2 = scmp.eq.s32.totalorder %s5057_s16, 0 }
   0x5   : > { %s32_s19 = sadd.s32 1, %s5045_s13  ;;  %p4533_p5 = scmp.ge.s32.totalorder %s5057_s16, 2 }
   0x6   : > { %s6861_s17 = smov (%p27_p0, %s25_s17), 0  ;;  %p41_p3 = por %p40_p2, %p39_p1 }
   0x7   : > { %s29_s18 = ssub.s32 %s5053_s15, %s6861_s17  ;;  %158 = sbr.rel (%p4533_p5) target bundleno = 53 (0x35), region = 24 }
   0x8   : > { %p30_p4 = scmp.eq.s32.totalorder %s29_s18, 0 }
   0xa   : > { %s5122_s20 = scalar_select %p30_p4, %s5045_s13, %s32_s19  }
   0xc   : > { %161 = sbr.rel (!%p41_p3) target bundleno = 53 (0x35), region = 28  ;;  %s163_s21 = sand.u32 (%p41_p3), 1, %s5045_s13  }
   0xd   : > { %s4950_s22 = smul.u32 (%p41_p3), 192, %s5053_s15 }
   0xe   : > { %s4949_s23 = smul.u32 (%p41_p3), 576, %s163_s21 }
   0xf   : > { %s5130_s26 = scalar_lea.vmem (%p41_p3), %s6848_s0, %s4950_s22 }
  0x10   : > { %v186_v0 = vld [vmem:[%s5130_s26] sm:$0xff] (%p41_p3)   ;;  %v190_v1 = vld [vmem:[%s5130_s26 + $0x8] sm:$0xff] (%p41_p3)   ;;  %v194_v2 = vld [vmem:[%s5130_s26 + $0x10] sm:$0xff] (%p41_p3)   ;;  %s5135_s27 = scalar_lea.vmem (%p41_p3), [#allocation3], %s4949_s23 }
  0x11   : > { %187 = vst [vmem:[%s5135_s27] sm:$0xff] %v186_v0   ;;  %191 = vst [vmem:[%s5135_s27 + $0x8] sm:$0xff] %v190_v1   ;;  %v198_v3 = vld [vmem:[%s5130_s26 + $0x18] sm:$0xff]   ;;  %v202_v4 = vld [vmem:[%s5130_s26 + $0x20] sm:$0xff]  }
  0x12   : > { %195 = vst [vmem:[%s5135_s27 + $0x10] sm:$0xff] %v194_v2   ;;  %v206_v5 = vld [vmem:[%s5130_s26 + $0x28] sm:$0xff]   ;;  %199 = vst [vmem:[%s5135_s27 + $0x18] sm:$0xff] %v198_v3   ;;  %v210_v6 = vld [vmem:[%s5130_s26 + $0x30] sm:$0xff]  }
  0x13   : > { %203 = vst [vmem:[%s5135_s27 + $0x20] sm:$0xff] %v202_v4   ;;  %207 = vst [vmem:[%s5135_s27 + $0x28] sm:$0xff] %v206_v5   ;;  %v214_v7 = vld [vmem:[%s5130_s26 + $0x38] sm:$0xff]   ;;  %v218_v8 = vld [vmem:[%s5130_s26 + $0x40] sm:$0xff]  }
  0x14   : > { %211 = vst [vmem:[%s5135_s27 + $0x30] sm:$0xff] %v210_v6   ;;  %215 = vst [vmem:[%s5135_s27 + $0x38] sm:$0xff] %v214_v7   ;;  %v222_v9 = vld [vmem:[%s5130_s26 + $0x48] sm:$0xff]   ;;  %v226_v10 = vld [vmem:[%s5130_s26 + $0x50] sm:$0xff]  }
  0x15   : > { %219 = vst [vmem:[%s5135_s27 + $0x40] sm:$0xff] %v218_v8   ;;  %v230_v11 = vld [vmem:[%s5130_s26 + $0x58] sm:$0xff]   ;;  %223 = vst [vmem:[%s5135_s27 + $0x48] sm:$0xff] %v222_v9   ;;  %v234_v12 = vld [vmem:[%s5130_s26 + $0x60] sm:$0xff]  }
  0x16   : > { %227 = vst [vmem:[%s5135_s27 + $0x50] sm:$0xff] %v226_v10   ;;  %231 = vst [vmem:[%s5135_s27 + $0x58] sm:$0xff] %v230_v11   ;;  %v238_v13 = vld [vmem:[%s5130_s26 + $0x68] sm:$0xff]   ;;  %v242_v14 = vld [vmem:[%s5130_s26 + $0x70] sm:$0xff]  }
  0x17   : > { %235 = vst [vmem:[%s5135_s27 + $0x60] sm:$0xff] %v234_v12   ;;  %239 = vst [vmem:[%s5135_s27 + $0x68] sm:$0xff] %v238_v13   ;;  %v246_v15 = vld [vmem:[%s5130_s26 + $0x78] sm:$0xff]   ;;  %v250_v16 = vld [vmem:[%s5130_s26 + $0x80] sm:$0xff]  }
  0x18   : > { %243 = vst [vmem:[%s5135_s27 + $0x70] sm:$0xff] %v242_v14   ;;  %v254_v17 = vld [vmem:[%s5130_s26 + $0x88] sm:$0xff]   ;;  %247 = vst [vmem:[%s5135_s27 + $0x78] sm:$0xff] %v246_v15   ;;  %v258_v18 = vld [vmem:[%s5130_s26 + $0x90] sm:$0xff]  }
  0x19   : > { %251 = vst [vmem:[%s5135_s27 + $0x80] sm:$0xff] %v250_v16   ;;  %255 = vst [vmem:[%s5135_s27 + $0x88] sm:$0xff] %v254_v17   ;;  %v262_v19 = vld [vmem:[%s5130_s26 + $0x98] sm:$0xff]   ;;  %v266_v20 = vld [vmem:[%s5130_s26 + $0xa0] sm:$0xff]  }
  0x1a   : > { %259 = vst [vmem:[%s5135_s27 + $0x90] sm:$0xff] %v258_v18   ;;  %263 = vst [vmem:[%s5135_s27 + $0x98] sm:$0xff] %v262_v19   ;;  %v270_v21 = vld [vmem:[%s5130_s26 + $0xa8] sm:$0xff]   ;;  %v274_v22 = vld [vmem:[%s5130_s26 + $0xb0] sm:$0xff]  }
  0x1b   : > { %267 = vst [vmem:[%s5135_s27 + $0xa0] sm:$0xff] %v266_v20   ;;  %v278_v23 = vld [vmem:[%s5130_s26 + $0xb8] sm:$0xff]   ;;  %271 = vst [vmem:[%s5135_s27 + $0xa8] sm:$0xff] %v270_v21   ;;  %v282_v24 = vld [vmem:[%s5130_s26 + $0x180] sm:$0xff]  }
  0x1c   : > { %275 = vst [vmem:[%s5135_s27 + $0xb0] sm:$0xff] %v274_v22   ;;  %279 = vst [vmem:[%s5135_s27 + $0xb8] sm:$0xff] %v278_v23   ;;  %v286_v25 = vld [vmem:[%s5130_s26 + $0x188] sm:$0xff]   ;;  %v290_v26 = vld [vmem:[%s5130_s26 + $0x190] sm:$0xff]  }
  0x1d   : > { %283 = vst [vmem:[%s5135_s27 + $0xc0] sm:$0xff] %v282_v24   ;;  %287 = vst [vmem:[%s5135_s27 + $0xc8] sm:$0xff] %v286_v25   ;;  %v294_v27 = vld [vmem:[%s5130_s26 + $0x198] sm:$0xff]   ;;  %v298_v28 = vld [vmem:[%s5130_s26 + $0x1a0] sm:$0xff]  }
  0x1e   : > { %291 = vst [vmem:[%s5135_s27 + $0xd0] sm:$0xff] %v290_v26   ;;  %v302_v29 = vld [vmem:[%s5130_s26 + $0x1a8] sm:$0xff]   ;;  %295 = vst [vmem:[%s5135_s27 + $0xd8] sm:$0xff] %v294_v27   ;;  %v306_v30 = vld [vmem:[%s5130_s26 + $0x1b0] sm:$0xff]  }
  0x1f   : > { %299 = vst [vmem:[%s5135_s27 + $0xe0] sm:$0xff] %v298_v28   ;;  %303 = vst [vmem:[%s5135_s27 + $0xe8] sm:$0xff] %v302_v29   ;;  %v310_v31 = vld [vmem:[%s5130_s26 + $0x1b8] sm:$0xff]   ;;  %v314_v32 = vld [vmem:[%s5130_s26 + $0x1c0] sm:$0xff]  }
  0x20   : > { %307 = vst [vmem:[%s5135_s27 + $0xf0] sm:$0xff] %v306_v30   ;;  %311 = vst [vmem:[%s5135_s27 + $0xf8] sm:$0xff] %v310_v31   ;;  %v318_v33 = vld [vmem:[%s5130_s26 + $0x1c8] sm:$0xff]   ;;  %v322_v34 = vld [vmem:[%s5130_s26 + $0x1d0] sm:$0xff]  }
  0x21   : > { %315 = vst [vmem:[%s5135_s27 + $0x100] sm:$0xff] %v314_v32   ;;  %v326_v35 = vld [vmem:[%s5130_s26 + $0x1d8] sm:$0xff]   ;;  %319 = vst [vmem:[%s5135_s27 + $0x108] sm:$0xff] %v318_v33   ;;  %v330_v36 = vld [vmem:[%s5130_s26 + $0x1e0] sm:$0xff]  }
  0x22   : > { %323 = vst [vmem:[%s5135_s27 + $0x110] sm:$0xff] %v322_v34   ;;  %327 = vst [vmem:[%s5135_s27 + $0x118] sm:$0xff] %v326_v35   ;;  %v334_v37 = vld [vmem:[%s5130_s26 + $0x1e8] sm:$0xff]   ;;  %v338_v38 = vld [vmem:[%s5130_s26 + $0x1f0] sm:$0xff]  }
  0x23   : > { %331 = vst [vmem:[%s5135_s27 + $0x120] sm:$0xff] %v330_v36   ;;  %335 = vst [vmem:[%s5135_s27 + $0x128] sm:$0xff] %v334_v37   ;;  %v342_v39 = vld [vmem:[%s5130_s26 + $0x1f8] sm:$0xff]   ;;  %v346_v40 = vld [vmem:[%s5130_s26 + $0x200] sm:$0xff]  }
  0x24   : > { %339 = vst [vmem:[%s5135_s27 + $0x130] sm:$0xff] %v338_v38   ;;  %v350_v41 = vld [vmem:[%s5130_s26 + $0x208] sm:$0xff]   ;;  %343 = vst [vmem:[%s5135_s27 + $0x138] sm:$0xff] %v342_v39   ;;  %v354_v42 = vld [vmem:[%s5130_s26 + $0x210] sm:$0xff]  }
  0x25   : > { %347 = vst [vmem:[%s5135_s27 + $0x140] sm:$0xff] %v346_v40   ;;  %351 = vst [vmem:[%s5135_s27 + $0x148] sm:$0xff] %v350_v41   ;;  %v358_v43 = vld [vmem:[%s5130_s26 + $0x218] sm:$0xff]   ;;  %v362_v44 = vld [vmem:[%s5130_s26 + $0x220] sm:$0xff]  }
  0x26   : > { %355 = vst [vmem:[%s5135_s27 + $0x150] sm:$0xff] %v354_v42   ;;  %359 = vst [vmem:[%s5135_s27 + $0x158] sm:$0xff] %v358_v43   ;;  %v366_v45 = vld [vmem:[%s5130_s26 + $0x228] sm:$0xff]   ;;  %v370_v46 = vld [vmem:[%s5130_s26 + $0x230] sm:$0xff]  }
  0x27   : > { %363 = vst [vmem:[%s5135_s27 + $0x160] sm:$0xff] %v362_v44   ;;  %v374_v47 = vld [vmem:[%s5130_s26 + $0x238] sm:$0xff]   ;;  %367 = vst [vmem:[%s5135_s27 + $0x168] sm:$0xff] %v366_v45   ;;  %v378_v48 = vld [vmem:[%s5130_s26 + $0x300] sm:$0xff]  }
  0x28   : > { %371 = vst [vmem:[%s5135_s27 + $0x170] sm:$0xff] %v370_v46   ;;  %375 = vst [vmem:[%s5135_s27 + $0x178] sm:$0xff] %v374_v47   ;;  %v382_v49 = vld [vmem:[%s5130_s26 + $0x308] sm:$0xff]   ;;  %v386_v50 = vld [vmem:[%s5130_s26 + $0x310] sm:$0xff]  }
  0x29   : > { %379 = vst [vmem:[%s5135_s27 + $0x180] sm:$0xff] %v378_v48   ;;  %383 = vst [vmem:[%s5135_s27 + $0x188] sm:$0xff] %v382_v49   ;;  %v390_v51 = vld [vmem:[%s5130_s26 + $0x318] sm:$0xff]   ;;  %v394_v52 = vld [vmem:[%s5130_s26 + $0x320] sm:$0xff]  }
  0x2a   : > { %387 = vst [vmem:[%s5135_s27 + $0x190] sm:$0xff] %v386_v50   ;;  %v398_v53 = vld [vmem:[%s5130_s26 + $0x328] sm:$0xff]   ;;  %391 = vst [vmem:[%s5135_s27 + $0x198] sm:$0xff] %v390_v51   ;;  %v402_v54 = vld [vmem:[%s5130_s26 + $0x330] sm:$0xff]  }
  0x2b   : > { %395 = vst [vmem:[%s5135_s27 + $0x1a0] sm:$0xff] %v394_v52   ;;  %399 = vst [vmem:[%s5135_s27 + $0x1a8] sm:$0xff] %v398_v53   ;;  %v406_v55 = vld [vmem:[%s5130_s26 + $0x338] sm:$0xff]   ;;  %v410_v56 = vld [vmem:[%s5130_s26 + $0x340] sm:$0xff]  }
  0x2c   : > { %403 = vst [vmem:[%s5135_s27 + $0x1b0] sm:$0xff] %v402_v54   ;;  %407 = vst [vmem:[%s5135_s27 + $0x1b8] sm:$0xff] %v406_v55   ;;  %v414_v57 = vld [vmem:[%s5130_s26 + $0x348] sm:$0xff]   ;;  %v418_v58 = vld [vmem:[%s5130_s26 + $0x350] sm:$0xff]  }
  0x2d   : > { %411 = vst [vmem:[%s5135_s27 + $0x1c0] sm:$0xff] %v410_v56   ;;  %v422_v59 = vld [vmem:[%s5130_s26 + $0x358] sm:$0xff]   ;;  %415 = vst [vmem:[%s5135_s27 + $0x1c8] sm:$0xff] %v414_v57   ;;  %v426_v60 = vld [vmem:[%s5130_s26 + $0x360] sm:$0xff]  }
  0x2e   : > { %419 = vst [vmem:[%s5135_s27 + $0x1d0] sm:$0xff] %v418_v58   ;;  %423 = vst [vmem:[%s5135_s27 + $0x1d8] sm:$0xff] %v422_v59   ;;  %v430_v61 = vld [vmem:[%s5130_s26 + $0x368] sm:$0xff]   ;;  %v434_v62 = vld [vmem:[%s5130_s26 + $0x370] sm:$0xff]  }
  0x2f   : > { %427 = vst [vmem:[%s5135_s27 + $0x1e0] sm:$0xff] %v426_v60   ;;  %431 = vst [vmem:[%s5135_s27 + $0x1e8] sm:$0xff] %v430_v61   ;;  %v438_v63 = vld [vmem:[%s5130_s26 + $0x378] sm:$0xff]   ;;  %v442_v0 = vld [vmem:[%s5130_s26 + $0x380] sm:$0xff]  }
  0x30   : > { %435 = vst [vmem:[%s5135_s27 + $0x1f0] sm:$0xff] %v434_v62   ;;  %v446_v1 = vld [vmem:[%s5130_s26 + $0x388] sm:$0xff]   ;;  %439 = vst [vmem:[%s5135_s27 + $0x1f8] sm:$0xff] %v438_v63   ;;  %v450_v2 = vld [vmem:[%s5130_s26 + $0x390] sm:$0xff]  }
  0x31   : > { %443 = vst [vmem:[%s5135_s27 + $0x200] sm:$0xff] %v442_v0   ;;  %447 = vst [vmem:[%s5135_s27 + $0x208] sm:$0xff] %v446_v1   ;;  %v454_v3 = vld [vmem:[%s5130_s26 + $0x398] sm:$0xff]   ;;  %v458_v4 = vld [vmem:[%s5130_s26 + $0x3a0] sm:$0xff]  }
  0x32   : > { %451 = vst [vmem:[%s5135_s27 + $0x210] sm:$0xff] %v450_v2   ;;  %455 = vst [vmem:[%s5135_s27 + $0x218] sm:$0xff] %v454_v3   ;;  %v462_v5 = vld [vmem:[%s5130_s26 + $0x3a8] sm:$0xff]   ;;  %v466_v6 = vld [vmem:[%s5130_s26 + $0x3b0] sm:$0xff]  }
  0x33   : > { %459 = vst [vmem:[%s5135_s27 + $0x220] sm:$0xff] %v458_v4   ;;  %v470_v7 = vld [vmem:[%s5130_s26 + $0x3b8] sm:$0xff]   ;;  %463 = vst [vmem:[%s5135_s27 + $0x228] sm:$0xff] %v462_v5  }
  0x34   : > { %467 = vst [vmem:[%s5135_s27 + $0x230] sm:$0xff] %v466_v6   ;;  %471 = vst [vmem:[%s5135_s27 + $0x238] sm:$0xff] %v470_v7  }
  0x35 PF: > { %p4537_p6 = scmp.ge.s32.totalorder %s5057_s16, 1  ;;  %p784_p7 = scmp.lt.s32.totalorder %s5057_s16, 3 }
  0x37   : > { %p785_p8 = pnand %p4537_p6, %p784_p7 }
  0x38   : > { %s791_s28 = sand.u32 (!%p785_p8), 1, %s5041_s12   ;;  %s5059_s4 = smov (!%p785_p8), 4  }
  0x39   : > { %788 = sbr.rel (%p785_p8) target bundleno = 908 (0x38c), region = 69  ;;  %s5060_s5 = smov (!%p785_p8), 8  }
  0x3a   : > { %s4951_s29 = smul.u32 (!%p785_p8), 576, %s791_s28  ;;  %s5061_s6 = smov (!%p785_p8), 12  }
  0x3b   : > { %s5062_s7 = smov (!%p785_p8), 16   ;;  %s5063_s8 = smov (!%p785_p8), 20  }
  0x3c   : > { %s5281_s30 = scalar_lea.vmem (!%p785_p8), [#allocation3], %s4951_s29  ;;  %s5064_s9 = smov (!%p785_p8), 24  }
  0x3d   : > { %s5065_s10 = smov (!%p785_p8), 28   ;;  %s5066_s23 = smov (!%p785_p8), 32  }
  0x3e   : > { %vm957_vm0 = vsmask.f32 3328  ;;  %vm958_vm1 = vsmask.f32 7440  ;;  %v912_v8 = vld [vmem:[%s5281_s30 + $0xc] sm:$0xf] }
  0x3f   : > { %v913_v9 = vld [vmem:[%s5281_s30 + $0x10] sm:$0xf]  ;;  %v909_v10 = vld [vmem:[%s5281_s30] sm:$0xf]  ;;  %v985_v11 = vshrl.u32 %v912_v8, 16  ;;  %v988_v12 = vshll.u32 %v912_v8, 16  ;;  %vm5292_vm2 = vmor %vm957_vm0, %vm958_vm1 }
  0x40   : > { %v994_v13 = vshll.u32 %v913_v9, 16  ;;  %v998_v14 = vshrl.u32 %v913_v9, 16  ;;  %v910_v15 = vld [vmem:[%s5281_s30 + $0x4] sm:$0xf]  ;;  %v961_v16 = vshrl.u32 %v909_v10, 16  ;;  %v964_v17 = vshll.u32 %v909_v10, 16 }
  0x41   : > { %v970_v18 = vshll.u32 %v910_v15, 16  ;;  %v974_v19 = vshrl.u32 %v910_v15, 16  ;;  %v914_v20 = vld [vmem:[%s5281_s30 + $0x14] sm:$0x1]  ;;  %v987_v21 = vrot.slane %v985_v11, 4  ;;  %v990_v22 = vrot.slane %v988_v12, 5 }
  0x42   : > { %v996_v23 = vrot.slane %v994_v13, 5  ;;  %v1000_v24 = vrot.slane %v998_v14, 4  ;;  %v911_v25 = vld [vmem:[%s5281_s30 + $0x8] sm:$0x1]  ;;  %v963_v26 = vrot.slane %v961_v16, 4  ;;  %v966_v27 = vrot.slane %v964_v17, 5 }
  0x43   : > { %v972_v28 = vrot.slane %v970_v18, 5  ;;  %v976_v29 = vrot.slane %v974_v19, 4  ;;  %v916_v30 = vld [vmem:[%s5281_s30 + $0x1c] sm:$0xf]  ;;  %v991_v31 = vor.u32 %v990_v22, %v987_v21  ;;  %v1004_v33 = vshll.u32 %v914_v20, 16  ;;  %s4538_s24 = sshll.u32 %s5049_s14, 4 }
  0x44   : > { %v1001_v32 = vor.u32 %v1000_v24, %v996_v23  ;;  %v980_v34 = vshll.u32 %v911_v25, 16  ;;  %v967_v36 = vor.u32 %v966_v27, %v963_v26  ;;  %v917_v38 = vld [vmem:[%s5281_s30 + $0x20] sm:$0x1]  ;;  %v1018_v39 = vshll.u32 %v916_v30, 16  ;;  %v915_v41 = vld [vmem:[%s5281_s30 + $0x18] sm:$0xf] }
  0x45   : > { %v977_v37 = vor.u32 %v976_v29, %v972_v28  ;;  %v1022_v40 = vshrl.u32 %v916_v30, 16  ;;  %v992_v42 = vrot.slane %v991_v31, 4  ;;  %v1006_v44 = vrot.slane %v1004_v33, 5  ;;  %v919_v50 = vld [vmem:[%s5281_s30 + $0x28] sm:$0xf]  ;;  %p834_p9 = scmp.lt.s32.totalorder %s4538_s24, 31 }
  0x46   : > { %v1002_v43 = vrot.slane %v1001_v32, 4  ;;  %v982_v45 = vrot.slane %v980_v34, 5  ;;  %v968_v46 = vrot.slane %v967_v36, 4  ;;  %v1020_v48 = vrot.slane %v1018_v39, 5  ;;  %v920_v55 = vld [vmem:[%s5281_s30 + $0x2c] sm:$0x1] }
  0x47   : > { %v978_v47 = vrot.slane %v977_v37, 4  ;;  %v1024_v49 = vrot.slane %v1022_v40, 4  ;;  %v997_v51 = vsel %vm5292_vm2, %v992_v42, %v996_v23  ;;  %v1028_v53 = vshll.u32 %v917_v38, 16  ;;  %v918_v56 = vld [vmem:[%s5281_s30 + $0x24] sm:$0xf]  ;;  %s6863_s24 = smov (!%p834_p9, %s4538_s24), 31 }
  0x48   : > { %v1007_v52 = vsel %vm5292_vm2, %v1002_v43, %v1006_v44  ;;  %v1009_v54 = vshrl.u32 %v915_v41, 16  ;;  %1348 = vrot.lane.b32.xlu1 %v997_v51, %s5059_s4  ;;  %v973_v57 = vsel %vm5292_vm2, %v968_v46, %v972_v28  ;;  %v1012_v60 = vshll.u32 %v915_v41, 16  ;;  %v922_v61 = vld [vmem:[%s5281_s30 + $0x34] sm:$0xf]  ;;  %v923_v6 = vld [vmem:[%s5281_s30 + $0x38] sm:$0x1] }
  0x49   : > { %v983_v58 = vsel %vm5292_vm2, %v978_v47, %v982_v45  ;;  %v1025_v59 = vor.u32 %v1024_v49, %v1020_v48  ;;  %1344 = vrot.lane.b32.xlu0 %v973_v57, %s5059_s4  ;;  %v1030_v62 = vrot.slane %v1028_v53, 5  ;;  %v1042_v0 = vshll.u32 %v919_v50, 16  ;;  %v921_v11 = vld [vmem:[%s5281_s30 + $0x30] sm:$0xf]  ;;  %v925_v16 = vld [vmem:[%s5281_s30 + $0x40] sm:$0xf] }
  0x4a   : > { %v1011_v63 = vrot.slane %v1009_v54, 4  ;;  %v1046_v1 = vshrl.u32 %v919_v50, 16  ;;  %v1014_v3 = vrot.slane %v1012_v60, 5  ;;  %v1052_v4 = vshll.u32 %v920_v55, 16  ;;  %v926_v25 = vld [vmem:[%s5281_s30 + $0x44] sm:$0x1] }
  0x4b   : > { %v1026_v2 = vrot.slane %v1025_v59, 4  ;;  %v1033_v5 = vshrl.u32 %v918_v56, 16  ;;  %v1044_v7 = vrot.slane %v1042_v0, 5  ;;  %v1036_v9 = vshll.u32 %v918_v56, 16  ;;  %v924_v30 = vld [vmem:[%s5281_s30 + $0x3c] sm:$0xf] }
  0x4c   : > { %v1048_v8 = vrot.slane %v1046_v1, 4  ;;  %v1066_v10 = vshll.u32 %v922_v61, 16  ;;  %1350 = vrot.lane.b32.xlu1 %v1007_v52, %s5059_s4  ;;  %v1015_v13 = vor.u32 %v1014_v3, %v1011_v63  ;;  %v1054_v14 = vrot.slane %v1052_v4, 5  ;;  %v928_v36 = vld [vmem:[%s5281_s30 + $0x4c] sm:$0xf]  ;;  %s4883_s26 = sshll.u32 %s6863_s24, 4 }
  0x4d   : > { %v1031_v12 = vsel %vm5292_vm2, %v1026_v2, %v1030_v62  ;;  %v1035_v15 = vrot.slane %v1033_v5, 4  ;;  %1346 = vrot.lane.b32.xlu0 %v983_v58, %s5059_s4  ;;  %v1038_v18 = vrot.slane %v1036_v9, 5  ;;  %v1070_v20 = vshrl.u32 %v922_v61, 16  ;;  %v929_v45 = vld [vmem:[%s5281_s30 + $0x50] sm:$0x1]  ;;  %s6748_s29 = scalar_lea.vmem %s6851_s3, %s4883_s26 }
  0x4e   : > { %v1049_v17 = vor.u32 %v1048_v8, %v1044_v7  ;;  %v1068_v19 = vrot.slane %v1066_v10, 5  ;;  %v1016_v21 = vrot.slane %v1015_v13, 4  ;;  %v1076_v22 = vshll.u32 %v923_v6, 16  ;;  %v927_v50 = vld [vmem:[%s5281_s30 + $0x48] sm:$0xf] }
  0x4f   : > { %v1057_v23 = vshrl.u32 %v921_v11, 16  ;;  %v1060_v24 = vshll.u32 %v921_v11, 16  ;;  %v1039_v27 = vor.u32 %v1038_v18, %v1035_v15  ;;  %v1072_v28 = vrot.slane %v1070_v20, 4  ;;  %v931_v55 = vld [vmem:[%s5281_s30 + $0x58] sm:$0xf] }
  0x50   : > { %v1050_v26 = vrot.slane %v1049_v17, 4  ;;  %v1090_v29 = vshll.u32 %v925_v16, 16  ;;  %1354 = vrot.lane.b32.xlu1 %v1031_v12, %s5059_s4  ;;  %v1021_v31 = vsel %vm5292_vm2, %v1016_v21, %v1020_v48  ;;  %v1078_v32 = vrot.slane %v1076_v22, 5  ;;  %v932_v0 = vld [vmem:[%s5281_s30 + $0x5c] sm:$0x1] }
  0x51   : > { %v1059_v33 = vrot.slane %v1057_v23, 4  ;;  %v1062_v34 = vrot.slane %v1060_v24, 5  ;;  %1352 = vrot.lane.b32.xlu0 %v1021_v31, %s5059_s4  ;;  %v1040_v38 = vrot.slane %v1039_v27, 4  ;;  %v1073_v39 = vor.u32 %v1072_v28, %v1068_v19  ;;  %v930_v5 = vld [vmem:[%s5281_s30 + $0x54] sm:$0xf] }
  0x52   : > { %v1055_v37 = vsel %vm5292_vm2, %v1050_v26, %v1054_v14  ;;  %v1092_v40 = vrot.slane %v1090_v29, 5  ;;  %v1094_v42 = vshrl.u32 %v925_v16, 16  ;;  %v1100_v43 = vshll.u32 %v926_v25, 16  ;;  %v934_v14 = vld [vmem:[%s5281_s30 + $0x64] sm:$0xf] }
  0x53   : > { %v1063_v41 = vor.u32 %v1062_v34, %v1059_v33  ;;  %v1081_v44 = vshrl.u32 %v924_v30, 16  ;;  %v1045_v46 = vsel %vm5292_vm2, %v1040_v38, %v1044_v7  ;;  %v1074_v47 = vrot.slane %v1073_v39, 4  ;;  %v935_v23 = vld [vmem:[%s5281_s30 + $0x68] sm:$0x1]  ;;  %v933_v24 = vld [vmem:[%s5281_s30 + $0x60] sm:$0xf] }
  0x54   : > { %v1084_v48 = vshll.u32 %v924_v30, 16  ;;  %v1114_v49 = vshll.u32 %v928_v36, 16  ;;  %1358 = vrot.lane.b32.xlu1 %v1055_v37, %s5059_s4  ;;  %v1096_v52 = vrot.slane %v1094_v42, 4  ;;  %v1102_v53 = vrot.slane %v1100_v43, 5  ;;  %v937_v33 = vld [vmem:[%s5281_s30 + $0x70] sm:$0xf] }
  0x55   : > { %v1064_v51 = vrot.slane %v1063_v41, 4  ;;  %v1083_v54 = vrot.slane %v1081_v44, 4  ;;  %1356 = vrot.lane.b32.xlu0 %v1045_v46, %s5059_s4  ;;  %v1079_v56 = vsel %vm5292_vm2, %v1074_v47, %v1078_v32  ;;  %v1118_v59 = vshrl.u32 %v928_v36, 16  ;;  %v938_v43 = vld [vmem:[%s5281_s30 + $0x74] sm:$0x1] }
  0x56   : > { %v1086_v57 = vrot.slane %v1084_v48, 5  ;;  %v1116_v58 = vrot.slane %v1114_v49, 5  ;;  %v1097_v61 = vor.u32 %v1096_v52, %v1092_v40  ;;  %v1124_v62 = vshll.u32 %v929_v45, 16  ;;  %v936_v44 = vld [vmem:[%s5281_s30 + $0x6c] sm:$0xf] }
  0x57   : > { %v1069_v60 = vsel %vm5292_vm2, %v1064_v51, %v1068_v19  ;;  %v1105_v63 = vshrl.u32 %v927_v50, 16  ;;  %v1120_v2 = vrot.slane %v1118_v59, 4  ;;  %v1108_v3 = vshll.u32 %v927_v50, 16 }
  0x58   : > { %v1087_v1 = vor.u32 %v1086_v57, %v1083_v54  ;;  %v1138_v4 = vshll.u32 %v931_v55, 16  ;;  %1362 = vrot.lane.b32.xlu1 %v1079_v56, %s5059_s4  ;;  %v1098_v6 = vrot.slane %v1097_v61, 4  ;;  %v1126_v7 = vrot.slane %v1124_v62, 5  ;;  %v941_v62 = vld [vmem:[%s5281_s30 + $0x80] sm:$0x1] }
  0x59   : > { %v1107_v8 = vrot.slane %v1105_v63, 4  ;;  %v1142_v9 = vshrl.u32 %v931_v55, 16  ;;  %1360 = vrot.lane.b32.xlu0 %v1069_v60, %s5059_s4  ;;  %v1121_v11 = vor.u32 %v1120_v2, %v1116_v58  ;;  %v1110_v12 = vrot.slane %v1108_v3, 5  ;;  %v939_v63 = vld [vmem:[%s5281_s30 + $0x78] sm:$0xf] }
  0x5a   : > { %v1088_v10 = vrot.slane %v1087_v1, 4  ;;  %v1140_v13 = vrot.slane %v1138_v4, 5  ;;  %v1103_v15 = vsel %vm5292_vm2, %v1098_v6, %v1102_v53  ;;  %v1148_v17 = vshll.u32 %v932_v0, 16  ;;  %v940_v53 = vld [vmem:[%s5281_s30 + $0x7c] sm:$0xf] }
  0x5b   : > { %v1144_v16 = vrot.slane %v1142_v9, 4  ;;  %v1129_v18 = vshrl.u32 %v930_v5, 16  ;;  %v1122_v20 = vrot.slane %v1121_v11, 4  ;;  %v1111_v21 = vor.u32 %v1110_v12, %v1107_v8  ;;  %v943_v8 = vld [vmem:[%s5281_s30 + $0x88] sm:$0xf] }
  0x5c   : > { %v1093_v19 = vsel %vm5292_vm2, %v1088_v10, %v1092_v40  ;;  %v1132_v22 = vshll.u32 %v930_v5, 16  ;;  %1366 = vrot.lane.b32.xlu1 %v1103_v15, %s5059_s4  ;;  %v1150_v26 = vrot.slane %v1148_v17, 5  ;;  %v1162_v28 = vshll.u32 %v934_v14, 16 }
  0x5d   : > { %v1145_v25 = vor.u32 %v1144_v16, %v1140_v13  ;;  %v1131_v27 = vrot.slane %v1129_v18, 4  ;;  %1364 = vrot.lane.b32.xlu0 %v1093_v19, %s5059_s4  ;;  %v1127_v29 = vsel %vm5292_vm2, %v1122_v20, %v1126_v7  ;;  %v1112_v30 = vrot.slane %v1111_v21, 4  ;;  %v942_v18 = vld [vmem:[%s5281_s30 + $0x84] sm:$0xf] }
  0x5e   : > { %v1134_v31 = vrot.slane %v1132_v22, 5  ;;  %v1166_v32 = vshrl.u32 %v934_v14, 16  ;;  %v1164_v36 = vrot.slane %v1162_v28, 5  ;;  %v1172_v37 = vshll.u32 %v935_v23, 16 }
  0x5f   : > { %v1146_v34 = vrot.slane %v1145_v25, 4  ;;  %v1153_v38 = vshrl.u32 %v933_v24, 16  ;;  %v1117_v39 = vsel %vm5292_vm2, %v1112_v30, %v1116_v58  ;;  %v1156_v42 = vshll.u32 %v933_v24, 16 }
  0x60   : > { %v1135_v40 = vor.u32 %v1134_v31, %v1131_v27  ;;  %v1168_v41 = vrot.slane %v1166_v32, 4  ;;  %1370 = vrot.lane.b32.xlu1 %v1127_v29, %s5059_s4  ;;  %v1174_v46 = vrot.slane %v1172_v37, 5  ;;  %v1186_v48 = vshll.u32 %v937_v33, 16  ;;  %v946_v27 = vld [vmem:[%s5281_s30 + $0x94] sm:$0xf] }
  0x61   : > { %v1151_v45 = vsel %vm5292_vm2, %v1146_v34, %v1150_v26  ;;  %v1155_v47 = vrot.slane %v1153_v38, 4  ;;  %1368 = vrot.lane.b32.xlu0 %v1117_v39, %s5059_s4  ;;  %v1158_v51 = vrot.slane %v1156_v42, 5  ;;  %v1190_v52 = vshrl.u32 %v937_v33, 16  ;;  %v947_v32 = vld [vmem:[%s5281_s30 + $0x98] sm:$0x1] }
  0x62   : > { %v1136_v49 = vrot.slane %v1135_v40, 4  ;;  %v1169_v50 = vor.u32 %v1168_v41, %v1164_v36  ;;  %v1188_v54 = vrot.slane %v1186_v48, 5  ;;  %v1196_v55 = vshll.u32 %v938_v43, 16  ;;  %v945_v38 = vld [vmem:[%s5281_s30 + $0x90] sm:$0xf] }
  0x63   : > { %v1177_v56 = vshrl.u32 %v936_v44, 16  ;;  %v1180_v57 = vshll.u32 %v936_v44, 16  ;;  %v1159_v60 = vor.u32 %v1158_v51, %v1155_v47  ;;  %v1192_v61 = vrot.slane %v1190_v52, 4  ;;  %v949_v47 = vld [vmem:[%s5281_s30 + $0xa0] sm:$0xf] }
  0x64   : > { %v1141_v58 = vsel %vm5292_vm2, %v1136_v49, %v1140_v13  ;;  %v1170_v59 = vrot.slane %v1169_v50, 4  ;;  %1374 = vrot.lane.b32.xlu1 %v1151_v45, %s5059_s4  ;;  %v1198_v0 = vrot.slane %v1196_v55, 5  ;;  %v1210_v3 = vshll.u32 %v940_v53, 16  ;;  %v944_v13 = vld [vmem:[%s5281_s30 + $0x8c] sm:$0x1] }
  0x65   : > { %v1179_v1 = vrot.slane %v1177_v56, 4  ;;  %v1182_v2 = vrot.slane %v1180_v57, 5  ;;  %1372 = vrot.lane.b32.xlu0 %v1141_v58, %s5059_s4  ;;  %v1160_v5 = vrot.slane %v1159_v60, 4  ;;  %v1193_v6 = vor.u32 %v1192_v61, %v1188_v54  ;;  %v950_v56 = vld [vmem:[%s5281_s30 + $0xa4] sm:$0x1] }
  0x66   : > { %v1175_v4 = vsel %vm5292_vm2, %v1170_v59, %v1174_v46  ;;  %v1214_v7 = vshrl.u32 %v940_v53, 16  ;;  %v1212_v10 = vrot.slane %v1210_v3, 5  ;;  %v1220_v11 = vshll.u32 %v941_v62, 16  ;;  %v948_v57 = vld [vmem:[%s5281_s30 + $0x9c] sm:$0xf] }
  0x67   : > { %v1183_v9 = vor.u32 %v1182_v2, %v1179_v1  ;;  %v1201_v12 = vshrl.u32 %v939_v63, 16  ;;  %v1165_v14 = vsel %vm5292_vm2, %v1160_v5, %v1164_v36  ;;  %v1194_v15 = vrot.slane %v1193_v6, 4  ;;  %v952_v2 = vld [vmem:[%s5281_s30 + $0xac] sm:$0xf] }
  0x68   : > { %v1216_v16 = vrot.slane %v1214_v7, 4  ;;  %v1204_v17 = vshll.u32 %v939_v63, 16  ;;  %1378 = vrot.lane.b32.xlu1 %v1175_v4, %s5059_s4  ;;  %v1222_v20 = vrot.slane %v1220_v11, 5  ;;  %v1234_v22 = vshll.u32 %v943_v8, 16  ;;  %v953_v11 = vld [vmem:[%s5281_s30 + $0xb0] sm:$0x1] }
  0x69   : > { %v1184_v19 = vrot.slane %v1183_v9, 4  ;;  %v1203_v21 = vrot.slane %v1201_v12, 4  ;;  %1376 = vrot.lane.b32.xlu0 %v1165_v14, %s5059_s4  ;;  %v1199_v23 = vsel %vm5292_vm2, %v1194_v15, %v1198_v0  ;;  %v1238_v26 = vshrl.u32 %v943_v8, 16  ;;  %v951_v12 = vld [vmem:[%s5281_s30 + $0xa8] sm:$0xf] }
  0x6a   : > { %v1217_v24 = vor.u32 %v1216_v16, %v1212_v10  ;;  %v1206_v25 = vrot.slane %v1204_v17, 5  ;;  %v1236_v29 = vrot.slane %v1234_v22, 5  ;;  %v1244_v30 = vshll.u32 %v944_v13, 16 }
  0x6b   : > { %v1189_v28 = vsel %vm5292_vm2, %v1184_v19, %v1188_v54  ;;  %v1225_v31 = vshrl.u32 %v942_v18, 16  ;;  %v1240_v36 = vrot.slane %v1238_v26, 4  ;;  %v1228_v37 = vshll.u32 %v942_v18, 16 }
  0x6c   : > { %v1218_v33 = vrot.slane %v1217_v24, 4  ;;  %v1207_v34 = vor.u32 %v1206_v25, %v1203_v21  ;;  %1382 = vrot.lane.b32.xlu1 %v1199_v23, %s5059_s4  ;;  %v1246_v39 = vrot.slane %v1244_v30, 5  ;;  %v1258_v41 = vshll.u32 %v946_v27, 16  ;;  %v955_v21 = vld [vmem:[%s5281_s30 + $0xb8] sm:$0xf] }
  0x6d   : > { %v1227_v40 = vrot.slane %v1225_v31, 4  ;;  %v1262_v42 = vshrl.u32 %v946_v27, 16  ;;  %1380 = vrot.lane.b32.xlu0 %v1189_v28, %s5059_s4  ;;  %v1241_v45 = vor.u32 %v1240_v36, %v1236_v29  ;;  %v1230_v46 = vrot.slane %v1228_v37, 5  ;;  %v956_v30 = vld [vmem:[%s5281_s30 + $0xbc] sm:$0x1] }
  0x6e   : > { %v1223_v43 = vsel %vm5292_vm2, %v1218_v33, %v1222_v20  ;;  %v1208_v44 = vrot.slane %v1207_v34, 4  ;;  %v1260_v48 = vrot.slane %v1258_v41, 5  ;;  %v1268_v50 = vshll.u32 %v947_v32, 16  ;;  %v954_v31 = vld [vmem:[%s5281_s30 + $0xb4] sm:$0xf] }
  0x6f   : > { %v1264_v49 = vrot.slane %v1262_v42, 4  ;;  %v1249_v51 = vshrl.u32 %v945_v38, 16  ;;  %v1242_v53 = vrot.slane %v1241_v45, 4  ;;  %v1231_v54 = vor.u32 %v1230_v46, %v1227_v40  ;;  %v1474_v45 = vld [vmem:[%s5281_s30 + $0x4] sm:$0xf] }
  0x70   : > { %v1213_v52 = vsel %vm5292_vm2, %v1208_v44, %v1212_v10  ;;  %v1252_v55 = vshll.u32 %v945_v38, 16  ;;  %1386 = vrot.lane.b32.xlu1 %v1223_v43, %s5059_s4  ;;  %v1270_v59 = vrot.slane %v1268_v50, 5  ;;  %v1282_v61 = vshll.u32 %v949_v47, 16 }
  0x71   : > { %v1265_v58 = vor.u32 %v1264_v49, %v1260_v48  ;;  %v1251_v60 = vrot.slane %v1249_v51, 4  ;;  %1384 = vrot.lane.b32.xlu0 %v1213_v52, %s5059_s4  ;;  %v1247_v62 = vsel %vm5292_vm2, %v1242_v53, %v1246_v39  ;;  %v1232_v63 = vrot.slane %v1231_v54, 4 }
  0x72   : > { %v1254_v0 = vrot.slane %v1252_v55, 5  ;;  %v1286_v1 = vshrl.u32 %v949_v47, 16  ;;  %v1284_v4 = vrot.slane %v1282_v61, 5  ;;  %v1292_v5 = vshll.u32 %v950_v56, 16  ;;  %v1475_v56 = vld [vmem:[%s5281_s30 + $0x8] sm:$0x1] }
  0x73   : > { %v1266_v3 = vrot.slane %v1265_v58, 4  ;;  %v1273_v6 = vshrl.u32 %v948_v57, 16  ;;  %v1237_v7 = vsel %vm5292_vm2, %v1232_v63, %v1236_v29  ;;  %v1276_v10 = vshll.u32 %v948_v57, 16 }
  0x74   : > { %v1255_v8 = vor.u32 %v1254_v0, %v1251_v60  ;;  %v1288_v9 = vrot.slane %v1286_v1, 4  ;;  %1390 = vrot.lane.b32.xlu1 %v1247_v62, %s5059_s4  ;;  %v1294_v14 = vrot.slane %v1292_v5, 5  ;;  %v1306_v16 = vshll.u32 %v952_v2, 16  ;;  %v1473_v62 = vld [vmem:[%s5281_s30] sm:$0xe] }
  0x75   : > { %v1271_v13 = vsel %vm5292_vm2, %v1266_v3, %v1270_v59  ;;  %v1275_v15 = vrot.slane %v1273_v6, 4  ;;  %1388 = vrot.lane.b32.xlu0 %v1237_v7, %s5059_s4  ;;  %v1278_v19 = vrot.slane %v1276_v10, 5  ;;  %v1310_v20 = vshrl.u32 %v952_v2, 16  ;;  %v1477_v59 = vld [vmem:[%s5281_s30 + $0x10] sm:$0xf] }
  0x76   : > { %v1256_v17 = vrot.slane %v1255_v8, 4  ;;  %v1289_v18 = vor.u32 %v1288_v9, %v1284_v4  ;;  %v1308_v22 = vrot.slane %v1306_v16, 5  ;;  %v1316_v23 = vshll.u32 %v953_v11, 16  ;;  %v846_v0 = vld [vmem:[%s5281_s30 + $0xc] sm:$0xf] }
  0x77   : > { %v1297_v24 = vshrl.u32 %v951_v12, 16  ;;  %v1300_v25 = vshll.u32 %v951_v12, 16  ;;  %v1279_v28 = vor.u32 %v1278_v19, %v1275_v15  ;;  %v1312_v29 = vrot.slane %v1310_v20, 4  ;;  %v844_v5 = vld [vmem:[%s5281_s30] sm:$0xf] }
  0x78   : > { %v1261_v26 = vsel %vm5292_vm2, %v1256_v17, %v1260_v48  ;;  %v1290_v27 = vrot.slane %v1289_v18, 4  ;;  %1394 = vrot.lane.b32.xlu1 %v1271_v13, %s5059_s4  ;;  %v1318_v32 = vrot.slane %v1316_v23, 5  ;;  %v1330_v36 = vshll.u32 %v955_v21, 16  ;;  %v1478_v8 = vld [vmem:[%s5281_s30 + $0x14] sm:$0x1] }
  0x79   : > { %v1299_v33 = vrot.slane %v1297_v24, 4  ;;  %v1302_v34 = vrot.slane %v1300_v25, 5  ;;  %1392 = vrot.lane.b32.xlu0 %v1261_v26, %s5059_s4  ;;  %v1280_v38 = vrot.slane %v1279_v28, 4  ;;  %v1313_v39 = vor.u32 %v1312_v29, %v1308_v22  ;;  %v1480_v9 = vld [vmem:[%s5281_s30 + $0x1c] sm:$0xf] }
  0x7a   : > { %v1295_v37 = vsel %vm5292_vm2, %v1290_v27, %v1294_v14  ;;  %v1334_v40 = vshrl.u32 %v955_v21, 16  ;;  %v1332_v42 = vrot.slane %v1330_v36, 5  ;;  %v1340_v43 = vshll.u32 %v956_v30, 16  ;;  %v1476_v11 = vld [vmem:[%s5281_s30 + $0xc] sm:$0xe] }
  0x7b   : > { %v1303_v41 = vor.u32 %v1302_v34, %v1299_v33  ;;  %v1321_v44 = vshrl.u32 %v954_v31, 16  ;;  %v1285_v46 = vsel %vm5292_vm2, %v1280_v38, %v1284_v4  ;;  %v1314_v47 = vrot.slane %v1313_v39, 4  ;;  %v847_v12 = vld [vmem:[%s5281_s30 + $0x10] sm:$0xf]  ;;  %v845_v13 = vld [vmem:[%s5281_s30 + $0x4] sm:$0xf] }
  0x7c   : > { %v1336_v48 = vrot.slane %v1334_v40, 4  ;;  %v1324_v49 = vshll.u32 %v954_v31, 16  ;;  %1398 = vrot.lane.b32.xlu1 %v1295_v37, %s5059_s4  ;;  %v1342_v51 = vrot.slane %v1340_v43, 5  ;;  %v1574_v57 = vrot.slane %v1474_v45, 5  ;;  %v1481_v20 = vld [vmem:[%s5281_s30 + $0x20] sm:$0x1] }
  0x7d   : > { %v1304_v50 = vrot.slane %v1303_v41, 4  ;;  %v1323_v52 = vrot.slane %v1321_v44, 4  ;;  %1396 = vrot.lane.b32.xlu0 %v1285_v46, %s5059_s4  ;;  %v1319_v53 = vsel %vm5292_vm2, %v1314_v47, %v1318_v32  ;;  %vm876_vm3 = vcmask 27648   ;;  %v1483_v21 = vld [vmem:[%s5281_s30 + $0x28] sm:$0xf] }
  0x7e   : > { %v1337_v54 = vor.u32 %v1336_v48, %v1332_v42  ;;  %v1326_v55 = vrot.slane %v1324_v49, 5  ;;  %vm1569_vm4 = vcmask 1042432   ;;  %vm1570_vm5 = vcmask 1046532   ;;  %879 = vst.msk [vmem:[#allocation2 + $0x8] sm:$0xf] %vm876_vm3, %v846_v0 }
  0x7f   : > { %v1309_v58 = vsel %vm5292_vm2, %v1304_v50, %v1308_v22  ;;  %v1577_v63 = vrot.slane %v1475_v56, 5  ;;  %v1576_v3 = vrot.slane %v1574_v57, 4  ;;  %v1581_v4 = vrot.slane %v1477_v59, 5  ;;  %vm5436_vm6 = vmor %vm1569_vm4, %vm1570_vm5  ;;  %877 = vst.msk [vmem:[#allocation2] sm:$0xf] %vm876_vm3, %v844_v5 }
  0x80   : > { %v1338_v60 = vrot.slane %v1337_v54, 4  ;;  %v1327_v61 = vor.u32 %v1326_v55, %v1323_v52  ;;  %1402 = vrot.lane.b32.xlu1 %v1319_v53, %s5059_s4  ;;  %v4541_v7 = vrot.slane %v1473_v62, 9  ;;  %v1584_v16 = vrot.slane %v1478_v8, 5  ;;  %880 = vst.msk [vmem:[#allocation2 + $0xc] sm:$0xf] %vm876_vm3, %v847_v12 }
  0x81   : > { %1400 = vrot.lane.b32.xlu0 %v1309_v58, %s5059_s4  ;;  %v1578_v14 = vsel %vm5436_vm6, %v1576_v3, %v1577_v63  ;;  %v1583_v15 = vrot.slane %v1581_v4, 4  ;;  %v1588_v17 = vrot.slane %v1480_v9, 5  ;;  %878 = vst.msk [vmem:[#allocation2 + $0x4] sm:$0xf] %vm876_vm3, %v845_v13  ;;  %v4542_v19 = vrot.slane %v1476_v11, 9 }
  0x82   : > { %v1343_v1 = vsel %vm5292_vm2, %v1338_v60, %v1342_v51  ;;  %v1328_v2 = vrot.slane %v1327_v61, 4  ;;  %v1575_v18 = vsel %vm5436_vm6, %v4541_v7, %v1574_v57  ;;  %v1479_v22 = vld [vmem:[%s5281_s30 + $0x18] sm:$0xe]  ;;  %v849_v23 = vld [vmem:[%s5281_s30 + $0x1c] sm:$0xf]  ;;  %v1591_v27 = vrot.slane %v1481_v20, 5 }
  0x83   : > { %882 = vst.msk [vmem:[#allocation2 + $0x14] sm:$0xf] %vm876_vm3, %v849_v23  ;;  %v848_v24 = vld [vmem:[%s5281_s30 + $0x18] sm:$0xf]  ;;  %v1585_v25 = vsel %vm5436_vm6, %v1583_v15, %v1584_v16  ;;  %v1590_v26 = vrot.slane %v1588_v17, 4  ;;  %v1595_v28 = vrot.slane %v1483_v21, 5  ;;  %v1582_v29 = vsel %vm5436_vm6, %v4542_v19, %v1581_v4 }
  0x84   : > { %v1333_v10 = vsel %vm5292_vm2, %v1328_v2, %v1332_v42  ;;  %1406 = vrot.lane.b32.xlu1 %v1343_v1, %s5059_s4  ;;  %881 = vst.msk [vmem:[#allocation2 + $0x10] sm:$0xf] %vm876_vm3, %v848_v24  ;;  %v4543_v30 = vrot.slane %v1479_v22, 9  ;;  %v1484_v31 = vld [vmem:[%s5281_s30 + $0x2c] sm:$0x1]  ;;  %vm1440_vm7 = vcmask 60448  }
  0x85   : > { %1404 = vrot.lane.b32.xlu0 %v1333_v10, %s5059_s4  ;;  %v1486_v32 = vld [vmem:[%s5281_s30 + $0x34] sm:$0xf]  ;;  %v1482_v33 = vld [vmem:[%s5281_s30 + $0x24] sm:$0xe]  ;;  %v851_v34 = vld [vmem:[%s5281_s30 + $0x28] sm:$0xf]  ;;  %v1592_v37 = vsel %vm5436_vm6, %v1590_v26, %v1591_v27 }
  0x86   : > { %884 = vst.msk [vmem:[#allocation2 + $0x1c] sm:$0xf] %vm876_vm3, %v851_v34  ;;  %v850_v36 = vld [vmem:[%s5281_s30 + $0x24] sm:$0xf]  ;;  %v1597_v38 = vrot.slane %v1595_v28, 4  ;;  %v1598_v39 = vrot.slane %v1484_v31, 5  ;;  %v1589_v42 = vsel %vm5436_vm6, %v4543_v30, %v1588_v17 }
  0x87   : > { %v1487_v40 = vld [vmem:[%s5281_s30 + $0x38] sm:$0x1]  ;;  %v1602_v41 = vrot.slane %v1486_v32, 5  ;;  %883 = vst.msk [vmem:[#allocation2 + $0x18] sm:$0xf] %vm876_vm3, %v850_v36  ;;  %v4544_v43 = vrot.slane %v1482_v33, 9 }
  0x88   : > { %1686 = vrot.lane.b32.xlu1 %v1578_v14, %s5060_s5  ;;  %v1489_v44 = vld [vmem:[%s5281_s30 + $0x40] sm:$0xf]  ;;  %v853_v45 = vld [vmem:[%s5281_s30 + $0x34] sm:$0xf]  ;;  %v1485_v46 = vld [vmem:[%s5281_s30 + $0x30] sm:$0xe]  ;;  %v1599_v49 = vsel %vm5436_vm6, %v1597_v38, %v1598_v39 }
  0x89   : > { %1684 = vrot.lane.b32.xlu0 %v1575_v18, %s5060_s5  ;;  %886 = vst.msk [vmem:[#allocation2 + $0x24] sm:$0xf] %vm876_vm3, %v853_v45  ;;  %v852_v47 = vld [vmem:[%s5281_s30 + $0x30] sm:$0xf]  ;;  %v1490_v48 = vld [vmem:[%s5281_s30 + $0x44] sm:$0x1]  ;;  %v1596_v54 = vsel %vm5436_vm6, %v4544_v43, %v1595_v28 }
  0x8a   : > { %885 = vst.msk [vmem:[#allocation2 + $0x20] sm:$0xf] %vm876_vm3, %v852_v47  ;;  %v1604_v50 = vrot.slane %v1602_v41, 4  ;;  %v1605_v51 = vrot.slane %v1487_v40, 5  ;;  %v1609_v52 = vrot.slane %v1489_v44, 5  ;;  %v4545_v55 = vrot.slane %v1485_v46, 9 }
  0x8b   : > { %v855_v53 = vld [vmem:[%s5281_s30 + $0x40] sm:$0xf]  ;;  %v1492_v56 = vld [vmem:[%s5281_s30 + $0x4c] sm:$0xf]  ;;  %v854_v57 = vld [vmem:[%s5281_s30 + $0x3c] sm:$0xf] }
  0x8c   : > { %1690 = vrot.lane.b32.xlu1 %v1585_v25, %s5060_s5  ;;  %888 = vst.msk [vmem:[#allocation2 + $0x2c] sm:$0xf] %vm876_vm3, %v855_v53  ;;  %v1488_v58 = vld [vmem:[%s5281_s30 + $0x3c] sm:$0xe]  ;;  %887 = vst.msk [vmem:[#allocation2 + $0x28] sm:$0xf] %vm876_vm3, %v854_v57  ;;  %v1606_v61 = vsel %vm5436_vm6, %v1604_v50, %v1605_v51  ;;  %v1603_v2 = vsel %vm5436_vm6, %v4545_v55, %v1602_v41 }
  0x8d   : > { %1688 = vrot.lane.b32.xlu0 %v1582_v29, %s5060_s5  ;;  %v1493_v59 = vld [vmem:[%s5281_s30 + $0x50] sm:$0x1]  ;;  %v857_v60 = vld [vmem:[%s5281_s30 + $0x4c] sm:$0xf]  ;;  %v1611_v62 = vrot.slane %v1609_v52, 4  ;;  %v1612_v63 = vrot.slane %v1490_v48, 5 }
  0x8e   : > { %v1616_v0 = vrot.slane %v1492_v56, 5  ;;  %890 = vst.msk [vmem:[#allocation2 + $0x34] sm:$0xf] %vm876_vm3, %v857_v60  ;;  %v856_v1 = vld [vmem:[%s5281_s30 + $0x48] sm:$0xf]  ;;  %v4546_v3 = vrot.slane %v1488_v58, 9 }
  0x8f   : > { %v5513_v4 = vld [vmem:[%s5281_s30 + $0x58] sm:$0xf]  ;;  %889 = vst.msk [vmem:[#allocation2 + $0x30] sm:$0xf] %vm876_vm3, %v856_v1  ;;  %v1491_v7 = vld [vmem:[%s5281_s30 + $0x48] sm:$0xe]  ;;  %v1613_v13 = vsel %vm5436_vm6, %v1611_v62, %v1612_v63 }
  0x90   : > { %1694 = vrot.lane.b32.xlu1 %v1592_v37, %s5060_s5  ;;  %v859_v5 = vld [vmem:[%s5281_s30 + $0x58] sm:$0xf]  ;;  %v1496_v8 = vld [vmem:[%s5281_s30 + $0x5c] sm:$0x1]  ;;  %v858_v9 = vld [vmem:[%s5281_s30 + $0x54] sm:$0xf]  ;;  %v1610_v18 = vsel %vm5436_vm6, %v4546_v3, %v1609_v52 }
  0x91   : > { %1692 = vrot.lane.b32.xlu0 %v1589_v42, %s5060_s5  ;;  %892 = vst.msk [vmem:[#allocation2 + $0x3c] sm:$0xf] %vm876_vm3, %v859_v5  ;;  %v1619_v10 = vrot.slane %v1493_v59, 5  ;;  %891 = vst.msk [vmem:[#allocation2 + $0x38] sm:$0xf] %vm876_vm3, %v858_v9  ;;  %v1618_v14 = vrot.slane %v1616_v0, 4 }
  0x92   : > { %v861_v11 = vld [vmem:[%s5281_s30 + $0x64] sm:$0xf]  ;;  %v860_v12 = vld [vmem:[%s5281_s30 + $0x60] sm:$0xf]  ;;  %v1623_v15 = vrot.slane %v5513_v4, 5  ;;  %v4547_v19 = vrot.slane %v1491_v7, 9 }
  0x93   : > { %894 = vst.msk [vmem:[#allocation2 + $0x44] sm:$0xf] %vm876_vm3, %v861_v11  ;;  %893 = vst.msk [vmem:[#allocation2 + $0x40] sm:$0xf] %vm876_vm3, %v860_v12  ;;  %v863_v16 = vld [vmem:[%s5281_s30 + $0x70] sm:$0xf]  ;;  %v1620_v28 = vsel %vm5436_vm6, %v1618_v14, %v1619_v10 }
  0x94   : > { %1698 = vrot.lane.b32.xlu1 %v1599_v49, %s5060_s5  ;;  %v862_v17 = vld [vmem:[%s5281_s30 + $0x6c] sm:$0xf]  ;;  %v1498_v20 = vld [vmem:[%s5281_s30 + $0x64] sm:$0xf]  ;;  %896 = vst.msk [vmem:[#allocation2 + $0x4c] sm:$0xf] %vm876_vm3, %v863_v16  ;;  %v1617_v33 = vsel %vm5436_vm6, %v4547_v19, %v1616_v0 }
  0x95   : > { %1696 = vrot.lane.b32.xlu0 %v1596_v54, %s5060_s5  ;;  %895 = vst.msk [vmem:[#allocation2 + $0x48] sm:$0xf] %vm876_vm3, %v862_v17  ;;  %v865_v21 = vld [vmem:[%s5281_s30 + $0x7c] sm:$0xf]  ;;  %v1494_v22 = vld [vmem:[%s5281_s30 + $0x54] sm:$0xe] }
  0x96   : > { %v1499_v23 = vld [vmem:[%s5281_s30 + $0x68] sm:$0x1]  ;;  %898 = vst.msk [vmem:[#allocation2 + $0x54] sm:$0xf] %vm876_vm3, %v865_v21  ;;  %v864_v24 = vld [vmem:[%s5281_s30 + $0x78] sm:$0xf] }
  0x97   : > { %v1626_v25 = vrot.slane %v1496_v8, 5  ;;  %897 = vst.msk [vmem:[#allocation2 + $0x50] sm:$0xf] %vm876_vm3, %v864_v24  ;;  %v867_v26 = vld [vmem:[%s5281_s30 + $0x88] sm:$0xf]  ;;  %v1625_v29 = vrot.slane %v1623_v15, 4 }
  0x98   : > { %1702 = vrot.lane.b32.xlu1 %v1606_v61, %s5060_s5  ;;  %v866_v27 = vld [vmem:[%s5281_s30 + $0x84] sm:$0xf]  ;;  %v1630_v30 = vrot.slane %v1498_v20, 5  ;;  %900 = vst.msk [vmem:[#allocation2 + $0x5c] sm:$0xf] %vm876_vm3, %v867_v26  ;;  %v4548_v34 = vrot.slane %v1494_v22, 9 }
  0x99   : > { %1700 = vrot.lane.b32.xlu0 %v1603_v2, %s5060_s5  ;;  %899 = vst.msk [vmem:[#allocation2 + $0x58] sm:$0xf] %vm876_vm3, %v866_v27  ;;  %v869_v31 = vld [vmem:[%s5281_s30 + $0x94] sm:$0xf]  ;;  %v868_v32 = vld [vmem:[%s5281_s30 + $0x90] sm:$0xf]  ;;  %v1627_v43 = vsel %vm5436_vm6, %v1625_v29, %v1626_v25 }
  0x9a   : > { %v1501_v36 = vld [vmem:[%s5281_s30 + $0x70] sm:$0xf]  ;;  %902 = vst.msk [vmem:[#allocation2 + $0x64] sm:$0xf] %vm876_vm3, %v869_v31  ;;  %901 = vst.msk [vmem:[#allocation2 + $0x60] sm:$0xf] %vm876_vm3, %v868_v32  ;;  %v1624_v48 = vsel %vm5436_vm6, %v4548_v34, %v1623_v15 }
  0x9b   : > { %v871_v37 = vld [vmem:[%s5281_s30 + $0xa0] sm:$0xf]  ;;  %v870_v39 = vld [vmem:[%s5281_s30 + $0x9c] sm:$0xf]  ;;  %v1633_v40 = vrot.slane %v1499_v23, 5  ;;  %v1632_v44 = vrot.slane %v1630_v30, 4 }
  0x9c   : > { %1706 = vrot.lane.b32.xlu1 %v1613_v13, %s5060_s5  ;;  %v1497_v38 = vld [vmem:[%s5281_s30 + $0x60] sm:$0xe]  ;;  %904 = vst.msk [vmem:[#allocation2 + $0x6c] sm:$0xf] %vm876_vm3, %v871_v37  ;;  %903 = vst.msk [vmem:[#allocation2 + $0x68] sm:$0xf] %vm876_vm3, %v870_v39 }
  0x9d   : > { %1704 = vrot.lane.b32.xlu0 %v1610_v18, %s5060_s5  ;;  %v873_v41 = vld [vmem:[%s5281_s30 + $0xac] sm:$0xf]  ;;  %v872_v42 = vld [vmem:[%s5281_s30 + $0xa8] sm:$0xf]  ;;  %v1637_v45 = vrot.slane %v1501_v36, 5  ;;  %v4549_v49 = vrot.slane %v1497_v38, 9  ;;  %v1634_v53 = vsel %vm5436_vm6, %v1632_v44, %v1633_v40 }
  0x9e   : > { %906 = vst.msk [vmem:[#allocation2 + $0x74] sm:$0xf] %vm876_vm3, %v873_v41  ;;  %905 = vst.msk [vmem:[#allocation2 + $0x70] sm:$0xf] %vm876_vm3, %v872_v42  ;;  %v875_v46 = vld [vmem:[%s5281_s30 + $0xb8] sm:$0xf] }
  0x9f   : > { %v874_v47 = vld [vmem:[%s5281_s30 + $0xb4] sm:$0xf]  ;;  %v1504_v51 = vld [vmem:[%s5281_s30 + $0x7c] sm:$0xf]  ;;  %908 = vst.msk [vmem:[#allocation2 + $0x7c] sm:$0xf] %vm876_vm3, %v875_v46  ;;  %v1631_v57 = vsel %vm5436_vm6, %v4549_v49, %v1630_v30 }
  0xa0   : > { %1710 = vrot.lane.b32.xlu1 %v1620_v28, %s5060_s5  ;;  %v1502_v50 = vld [vmem:[%s5281_s30 + $0x74] sm:$0x1]  ;;  %907 = vst.msk [vmem:[#allocation2 + $0x78] sm:$0xf] %vm876_vm3, %v874_v47  ;;  %v1500_v52 = vld [vmem:[%s5281_s30 + $0x6c] sm:$0xe] }
  0xa1   : > { %1708 = vrot.lane.b32.xlu0 %v1617_v33, %s5060_s5  ;;  %v1639_v54 = vrot.slane %v1637_v45, 4  ;;  %v1640_v55 = vrot.slane %v1502_v50, 5  ;;  %v1644_v56 = vrot.slane %v1504_v51, 5  ;;  %v4550_v58 = vrot.slane %v1500_v52, 9  ;;  %v1505_v59 = vld [vmem:[%s5281_s30 + $0x80] sm:$0x1] }
  0xa2   : > { %v1507_v60 = vld [vmem:[%s5281_s30 + $0x88] sm:$0xf]  ;;  %v1503_v61 = vld [vmem:[%s5281_s30 + $0x78] sm:$0xe]  ;;  %v1647_v0 = vrot.slane %v1505_v59, 5  ;;  %vm1780_vm8 = vcmask 93248  }
  0xa3   : > { %v1641_v62 = vsel %vm5436_vm6, %v1639_v54, %v1640_v55  ;;  %v1646_v63 = vrot.slane %v1644_v56, 4  ;;  %v1651_v1 = vrot.slane %v1507_v60, 5  ;;  %v1638_v2 = vsel %vm5436_vm6, %v4550_v58, %v1637_v45  ;;  %v1508_v4 = vld [vmem:[%s5281_s30 + $0x8c] sm:$0x1]  ;;  %v1510_v5 = vld [vmem:[%s5281_s30 + $0x94] sm:$0xf] }
  0xa4   : > { %1714 = vrot.lane.b32.xlu1 %v1627_v43, %s5060_s5  ;;  %v4551_v3 = vrot.slane %v1503_v61, 9  ;;  %v1506_v7 = vld [vmem:[%s5281_s30 + $0x84] sm:$0xe]  ;;  %v1654_v10 = vrot.slane %v1508_v4, 5  ;;  %v1658_v11 = vrot.slane %v1510_v5, 5  ;;  %vm1974_vm9 = vcmask 126048  }
  0xa5   : > { %1712 = vrot.lane.b32.xlu0 %v1624_v48, %s5060_s5  ;;  %v1648_v8 = vsel %vm5436_vm6, %v1646_v63, %v1647_v0  ;;  %v1653_v9 = vrot.slane %v1651_v1, 4  ;;  %v4552_v13 = vrot.slane %v1506_v7, 9  ;;  %v1511_v14 = vld [vmem:[%s5281_s30 + $0x98] sm:$0x1]  ;;  %v1513_v15 = vld [vmem:[%s5281_s30 + $0xa0] sm:$0xf] }
  0xa6   : > { %v1645_v12 = vsel %vm5436_vm6, %v4551_v3, %v1644_v56  ;;  %v1509_v16 = vld [vmem:[%s5281_s30 + $0x90] sm:$0xe]  ;;  %v1660_v18 = vrot.slane %v1658_v11, 4  ;;  %v1661_v19 = vrot.slane %v1511_v14, 5  ;;  %v1665_v20 = vrot.slane %v1513_v15, 5 }
  0xa7   : > { %v1655_v17 = vsel %vm5436_vm6, %v1653_v9, %v1654_v10  ;;  %v1652_v21 = vsel %vm5436_vm6, %v4552_v13, %v1651_v1  ;;  %v4553_v22 = vrot.slane %v1509_v16, 9  ;;  %v1514_v23 = vld [vmem:[%s5281_s30 + $0xa4] sm:$0x1]  ;;  %v1516_v24 = vld [vmem:[%s5281_s30 + $0xac] sm:$0xf]  ;;  %vm4185_vm10 = vcmask 1041408  }
  0xa8   : > { %1718 = vrot.lane.b32.xlu1 %v1634_v53, %s5060_s5  ;;  %v1512_v25 = vld [vmem:[%s5281_s30 + $0x9c] sm:$0xe]  ;;  %v1662_v26 = vsel %vm5436_vm6, %v1660_v18, %v1661_v19  ;;  %v1667_v27 = vrot.slane %v1665_v20, 4  ;;  %v1668_v28 = vrot.slane %v1514_v23, 5  ;;  %v1672_v29 = vrot.slane %v1516_v24, 5 }
  0xa9   : > { %1716 = vrot.lane.b32.xlu0 %v1631_v57, %s5060_s5  ;;  %v1659_v30 = vsel %vm5436_vm6, %v4553_v22, %v1658_v11  ;;  %v4554_v31 = vrot.slane %v1512_v25, 9  ;;  %v1517_v32 = vld [vmem:[%s5281_s30 + $0xb0] sm:$0x1]  ;;  %v1519_v33 = vld [vmem:[%s5281_s30 + $0xb8] sm:$0xf]  ;;  %vm2535_vm11 = vcmask 158848  }
  0xaa   : > { %v1515_v34 = vld [vmem:[%s5281_s30 + $0xa8] sm:$0xe]  ;;  %v1669_v36 = vsel %vm5436_vm6, %v1667_v27, %v1668_v28  ;;  %v1674_v37 = vrot.slane %v1672_v29, 4  ;;  %v1675_v38 = vrot.slane %v1517_v32, 5  ;;  %v1679_v39 = vrot.slane %v1519_v33, 5 }
  0xab   : > { %v1666_v41 = vsel %vm5436_vm6, %v4554_v31, %v1665_v20  ;;  %v4555_v42 = vrot.slane %v1515_v34, 9  ;;  %v1520_v43 = vld [vmem:[%s5281_s30 + $0xbc] sm:$0x1]  ;;  %v1518_v45 = vld [vmem:[%s5281_s30 + $0xb4] sm:$0xe]  ;;  %vm2872_vm12 = vcmask 191648  }
  0xac   : > { %1722 = vrot.lane.b32.xlu1 %v1641_v62, %s5060_s5  ;;  %v1676_v46 = vsel %vm5436_vm6, %v1674_v37, %v1675_v38  ;;  %v1681_v47 = vrot.slane %v1679_v39, 4  ;;  %v1682_v48 = vrot.slane %v1520_v43, 5  ;;  %v4556_v51 = vrot.slane %v1518_v45, 9  ;;  %v4558_v57 = vld [vmem:[%s5281_s30 + $0xc4] sm:$0xf] }
  0xad   : > { %1720 = vrot.lane.b32.xlu0 %v1638_v2, %s5060_s5  ;;  %v1673_v50 = vsel %vm5436_vm6, %v4555_v42, %v1672_v29  ;;  %v4557_v59 = vld [vmem:[%s5281_s30 + $0xc0] sm:$0xf]  ;;  %v4560_v61 = vld [vmem:[%s5281_s30 + $0xd0] sm:$0xf]  ;;  %v4559_v63 = vld [vmem:[%s5281_s30 + $0xcc] sm:$0xf] }
  0xae   : > { %v1683_v53 = vsel %vm5436_vm6, %v1681_v47, %v1682_v48  ;;  %v1680_v55 = vsel %vm5436_vm6, %v4556_v51, %v1679_v39  ;;  %v4562_v1 = vld [vmem:[%s5281_s30 + $0xdc] sm:$0xf]  ;;  %v4561_v3 = vld [vmem:[%s5281_s30 + $0xd8] sm:$0xf]  ;;  %v4564_v5 = vld [vmem:[%s5281_s30 + $0xe8] sm:$0xf] }
  0xaf   : > { %v4566_v10 = vld [vmem:[%s5281_s30 + $0xf4] sm:$0xf]  ;;  %v4568_v14 = vld [vmem:[%s5281_s30 + $0x100] sm:$0xf]  ;;  %v4567_v16 = vld [vmem:[%s5281_s30 + $0xfc] sm:$0xf] }
  0xb0   : > { %1726 = vrot.lane.b32.xlu1 %v1648_v8, %s5060_s5  ;;  %v4563_v8 = vld [vmem:[%s5281_s30 + $0xe4] sm:$0xf]  ;;  %v4570_v18 = vld [vmem:[%s5281_s30 + $0x10c] sm:$0xf]  ;;  %v4569_v20 = vld [vmem:[%s5281_s30 + $0x108] sm:$0xf] }
  0xb1   : > { %1724 = vrot.lane.b32.xlu0 %v1645_v12, %s5060_s5  ;;  %v4565_v12 = vld [vmem:[%s5281_s30 + $0xf0] sm:$0xf]  ;;  %v4572_v22 = vld [vmem:[%s5281_s30 + $0x118] sm:$0xf]  ;;  %v4571_v24 = vld [vmem:[%s5281_s30 + $0x114] sm:$0xf] }
  0xb2   : > { %v4573_v28 = vld [vmem:[%s5281_s30 + $0x120] sm:$0xf]  ;;  %v4575_v32 = vld [vmem:[%s5281_s30 + $0x12c] sm:$0xf]  ;;  %v4578_v34 = vld [vmem:[%s5281_s30 + $0x13c] sm:$0xf] }
  0xb3   : > { %v4577_v37 = vld [vmem:[%s5281_s30 + $0x138] sm:$0xf]  ;;  %v4580_v39 = vld [vmem:[%s5281_s30 + $0x148] sm:$0xf]  ;;  %v4579_v42 = vld [vmem:[%s5281_s30 + $0x144] sm:$0xf] }
  0xb4   : > { %1730 = vrot.lane.b32.xlu1 %v1655_v17, %s5060_s5  ;;  %v4589_v43 = vld [vmem:[%s5281_s30 + $0xc0] sm:$0xf]  ;;  %v4582_v47 = vld [vmem:[%s5281_s30 + $0x154] sm:$0xf]  ;;  %vm3066_vm13 = vcmask 224448   ;;  %vm3627_vm14 = vcmask 257248  }
  0xb5   : > { %1728 = vrot.lane.b32.xlu0 %v1652_v21, %s5060_s5  ;;  %v2056_v48 = vshrl.u32 %v4589_v43, 16  ;;  %vm3964_vm15 = vcmask 290048   ;;  %vm4136_vm0 = vcmask 293888  }
  0xb8   : > { %1734 = vrot.lane.b32.xlu1 %v1662_v26, %s5060_s5  ;;  %v4574_v26 = vld [vmem:[%s5281_s30 + $0x124] sm:$0xf] }
  0xb9   : > { %1732 = vrot.lane.b32.xlu0 %v1659_v30, %s5060_s5  ;;  %v4576_v30 = vld [vmem:[%s5281_s30 + $0x130] sm:$0xf] }
  0xba   : > { %v1349_v40 = vpop.permute.xlu1 %1348 }
  0xbb   : > { %1443 = vst.msk [vmem:[#allocation2 + $0x8] sm:$0xf] %vm1440_vm7, %v1349_v40  ;;  %v1345_v44 = vpop.permute.xlu0 %1344  ;;  %v4590_v40 = vld [vmem:[%s5281_s30 + $0xc4] sm:$0xf] }
  0xbc   : > { %1441 = vst.msk [vmem:[#allocation2] sm:$0xf] %vm1440_vm7, %v1345_v44  ;;  %1738 = vrot.lane.b32.xlu1 %v1669_v36, %s5060_s5  ;;  %v2065_v45 = vshll.u32 %v4590_v40, 16 }
  0xbd   : > { %1736 = vrot.lane.b32.xlu0 %v1666_v41, %s5060_s5 }
  0xbe   : > { %v1351_v49 = vpop.permute.xlu1 %1350 }
  0xbf   : > { %1444 = vst.msk [vmem:[#allocation2 + $0xc] sm:$0xf] %vm1440_vm7, %v1351_v49  ;;  %v1347_v52 = vpop.permute.xlu0 %1346  ;;  %v2059_v49 = vshll.u32 %v4589_v43, 16 }
  0xc0   : > { %1442 = vst.msk [vmem:[#allocation2 + $0x4] sm:$0xf] %vm1440_vm7, %v1347_v52  ;;  %1742 = vrot.lane.b32.xlu1 %v1676_v46, %s5060_s5  ;;  %v2069_v46 = vshrl.u32 %v4590_v40, 16  ;;  %v4581_v52 = vld [vmem:[%s5281_s30 + $0x150] sm:$0xf] }
  0xc1   : > { %1740 = vrot.lane.b32.xlu0 %v1673_v50, %s5060_s5  ;;  %v4593_v50 = vld [vmem:[%s5281_s30 + $0xd0] sm:$0xf] }
  0xc2   : > { %v1355_v54 = vpop.permute.xlu1 %1354 }
  0xc3   : > { %1446 = vst.msk [vmem:[#allocation2 + $0x14] sm:$0xf] %vm1440_vm7, %v1355_v54  ;;  %v1353_v56 = vpop.permute.xlu0 %1352 }
  0xc4   : > { %1445 = vst.msk [vmem:[#allocation2 + $0x10] sm:$0xf] %vm1440_vm7, %v1353_v56  ;;  %1746 = vrot.lane.b32.xlu1 %v1683_v53, %s5060_s5  ;;  %v4592_v53 = vld [vmem:[%s5281_s30 + $0xcc] sm:$0xf]  ;;  %v4595_v56 = vld [vmem:[%s5281_s30 + $0xd8] sm:$0xf] }
  0xc5   : > { %1744 = vrot.lane.b32.xlu0 %v1680_v55, %s5060_s5  ;;  %v4596_v55 = vld [vmem:[%s5281_s30 + $0xdc] sm:$0xf] }
  0xc6   : > { %v1359_v58 = vpop.permute.xlu1 %1358 }
  0xc7   : > { %1448 = vst.msk [vmem:[#allocation2 + $0x1c] sm:$0xf] %vm1440_vm7, %v1359_v58  ;;  %v1357_v60 = vpop.permute.xlu0 %1356  ;;  %v5738_v58 = vrot.slane %v2065_v45, 5 }
  0xc8   : > { %1447 = vst.msk [vmem:[#allocation2 + $0x18] sm:$0xf] %vm1440_vm7, %v1357_v60  ;;  %1880 = vrot.lane.b32.xlu1 %v4558_v57, %s5061_s6  ;;  %v4584_v57 = vld [vmem:[%s5281_s30 + $0x160] sm:$0xf]  ;;  %v2089_v60 = vshll.u32 %v4593_v50, 16 }
  0xc9   : > { %1878 = vrot.lane.b32.xlu0 %v4557_v59, %s5061_s6  ;;  %v2071_v59 = vrot.slane %v2069_v46, 4 }
  0xca   : > { %v1363_v62 = vpop.permute.xlu1 %1362 }
  0xcb   : > { %1450 = vst.msk [vmem:[#allocation2 + $0x24] sm:$0xf] %vm1440_vm7, %v1363_v62  ;;  %v1361_v0 = vpop.permute.xlu0 %1360  ;;  %v4591_v62 = vld [vmem:[%s5281_s30 + $0xc8] sm:$0x1] }
  0xcc   : > { %1449 = vst.msk [vmem:[#allocation2 + $0x20] sm:$0xf] %vm1440_vm7, %v1361_v0  ;;  %1884 = vrot.lane.b32.xlu1 %v4560_v61, %s5061_s6  ;;  %v2093_v61 = vshrl.u32 %v4593_v50, 16  ;;  %v2061_v0 = vrot.slane %v2059_v49, 5 }
  0xcd   : > { %1882 = vrot.lane.b32.xlu0 %v4559_v63, %s5061_s6  ;;  %v2058_v63 = vrot.slane %v2056_v48, 4 }
  0xce   : > { %v1367_v2 = vpop.permute.xlu1 %1366 }
  0xcf   : > { %1452 = vst.msk [vmem:[#allocation2 + $0x2c] sm:$0xf] %vm1440_vm7, %v1367_v2  ;;  %v1365_v4 = vpop.permute.xlu0 %1364  ;;  %v2083_v2 = vshll.u32 %v4592_v53, 16 }
  0xd0   : > { %1451 = vst.msk [vmem:[#allocation2 + $0x28] sm:$0xf] %vm1440_vm7, %v1365_v4  ;;  %1888 = vrot.lane.b32.xlu1 %v4562_v1, %s5061_s6  ;;  %v2080_v1 = vshrl.u32 %v4592_v53, 16  ;;  %v4583_v4 = vld [vmem:[%s5281_s30 + $0x15c] sm:$0xf] }
  0xd1   : > { %1886 = vrot.lane.b32.xlu0 %v4561_v3, %s5061_s6 }
  0xd2   : > { %v1371_v7 = vpop.permute.xlu1 %1370 }
  0xd3   : > { %1454 = vst.msk [vmem:[#allocation2 + $0x34] sm:$0xf] %vm1440_vm7, %v1371_v7  ;;  %v1369_v9 = vpop.permute.xlu0 %1368  ;;  %v2117_v7 = vshrl.u32 %v4596_v55, 16 }
  0xd4   : > { %1453 = vst.msk [vmem:[#allocation2 + $0x30] sm:$0xf] %vm1440_vm7, %v1369_v9  ;;  %1892 = vrot.lane.b32.xlu1 %v4564_v5, %s5061_s6  ;;  %v2113_v5 = vshll.u32 %v4596_v55, 16 }
  0xd5   : > { %1890 = vrot.lane.b32.xlu0 %v4563_v8, %s5061_s6  ;;  %v2104_v8 = vshrl.u32 %v4595_v56, 16 }
  0xd6   : > { %v1375_v11 = vpop.permute.xlu1 %1374 }
  0xd7   : > { %1456 = vst.msk [vmem:[#allocation2 + $0x3c] sm:$0xf] %vm1440_vm7, %v1375_v11  ;;  %v1373_v13 = vpop.permute.xlu0 %1372  ;;  %v4599_v11 = vld [vmem:[%s5281_s30 + $0xe8] sm:$0xf] }
  0xd8   : > { %1455 = vst.msk [vmem:[#allocation2 + $0x38] sm:$0xf] %vm1440_vm7, %v1373_v13  ;;  %1896 = vrot.lane.b32.xlu1 %v4566_v10, %s5061_s6  ;;  %v2107_v10 = vshll.u32 %v4595_v56, 16  ;;  %v2072_v13 = vor.u32 %v2071_v59, %v5738_v58 }
  0xd9   : > { %1894 = vrot.lane.b32.xlu0 %v4565_v12, %s5061_s6  ;;  %v4586_v12 = vld [vmem:[%s5281_s30 + $0x16c] sm:$0xf] }
  0xda   : > { %v1379_v15 = vpop.permute.xlu1 %1378 }
  0xdb   : > { %1458 = vst.msk [vmem:[#allocation2 + $0x44] sm:$0xf] %vm1440_vm7, %v1379_v15  ;;  %v1377_v17 = vpop.permute.xlu0 %1376  ;;  %v5749_v15 = vrot.slane %v2089_v60, 5 }
  0xdc   : > { %1457 = vst.msk [vmem:[#allocation2 + $0x40] sm:$0xf] %vm1440_vm7, %v1377_v17  ;;  %1900 = vrot.lane.b32.xlu1 %v4568_v14, %s5061_s6  ;;  %v2075_v14 = vshll.u32 %v4591_v62, 16  ;;  %v2062_v17 = vor.u32 %v2061_v0, %v2058_v63 }
  0xdd   : > { %1898 = vrot.lane.b32.xlu0 %v4567_v16, %s5061_s6  ;;  %v4598_v16 = vld [vmem:[%s5281_s30 + $0xe4] sm:$0xf] }
  0xde   : > { %v1383_v19 = vpop.permute.xlu1 %1382 }
  0xdf   : > { %1460 = vst.msk [vmem:[#allocation2 + $0x4c] sm:$0xf] %vm1440_vm7, %v1383_v19  ;;  %v1381_v21 = vpop.permute.xlu0 %1380  ;;  %v2095_v19 = vrot.slane %v2093_v61, 4 }
  0xe0   : > { %1459 = vst.msk [vmem:[#allocation2 + $0x48] sm:$0xf] %vm1440_vm7, %v1381_v21  ;;  %1904 = vrot.lane.b32.xlu1 %v4570_v18, %s5061_s6  ;;  %v4594_v18 = vld [vmem:[%s5281_s30 + $0xd4] sm:$0x1]  ;;  %v2085_v21 = vrot.slane %v2083_v2, 5 }
  0xe1   : > { %1902 = vrot.lane.b32.xlu0 %v4569_v20, %s5061_s6  ;;  %v2082_v20 = vrot.slane %v2080_v1, 4  ;;  %v2096_v40 = vor.u32 %v2095_v19, %v5749_v15 }
  0xe2   : > { %v1387_v23 = vpop.permute.xlu1 %1386 }
  0xe3   : > { %1462 = vst.msk [vmem:[#allocation2 + $0x54] sm:$0xf] %vm1440_vm7, %v1387_v23  ;;  %v1385_v25 = vpop.permute.xlu0 %1384  ;;  %v4585_v23 = vld [vmem:[%s5281_s30 + $0x168] sm:$0xf]  ;;  %v2086_v45 = vor.u32 %v2085_v21, %v2082_v20  ;;  %v2097_v61 = vrot.slane %v2096_v40, 4 }
  0xe4   : > { %1461 = vst.msk [vmem:[#allocation2 + $0x50] sm:$0xf] %vm1440_vm7, %v1385_v25  ;;  %1908 = vrot.lane.b32.xlu1 %v4572_v22, %s5061_s6  ;;  %v2119_v25 = vrot.slane %v2117_v7, 4 }
  0xe5   : > { %1906 = vrot.lane.b32.xlu0 %v4571_v24, %s5061_s6  ;;  %v5755_v24 = vrot.slane %v2113_v5, 5  ;;  %v2087_v1 = vrot.slane %v2086_v45, 4 }
  0xe6   : > { %v1391_v27 = vpop.permute.xlu1 %1390 }
  0xe7   : > { %1464 = vst.msk [vmem:[#allocation2 + $0x5c] sm:$0xf] %vm1440_vm7, %v1391_v27  ;;  %v1389_v29 = vpop.permute.xlu0 %1388  ;;  %v2137_v27 = vshll.u32 %v4599_v11, 16  ;;  %v2120_v46 = vor.u32 %v2119_v25, %v5755_v24  ;;  %v2092_v21 = vsel %vm5292_vm2, %v2087_v1, %v5749_v15  ;;  %v4617_v25 = vld [vmem:[%s5281_s30 + $0x130] sm:$0xf] }
  0xe8   : > { %1463 = vst.msk [vmem:[#allocation2 + $0x58] sm:$0xf] %vm1440_vm7, %v1389_v29  ;;  %1912 = vrot.lane.b32.xlu1 %v4574_v26, %s5061_s6  ;;  %v2106_v26 = vrot.slane %v2104_v8, 4  ;;  %v4597_v29 = vld [vmem:[%s5281_s30 + $0xe0] sm:$0x1]  ;;  %v2285_v40 = vshrl.u32 %v4617_v25, 16 }
  0xe9   : > { %1910 = vrot.lane.b32.xlu0 %v4573_v28, %s5061_s6  ;;  %v5768_v48 = vrot.slane %v2137_v27, 5  ;;  %v2121_v7 = vrot.slane %v2120_v46, 4 }
  0xea   : > { %v1395_v31 = vpop.permute.xlu1 %1394 }
  0xeb   : > { %1466 = vst.msk [vmem:[#allocation2 + $0x64] sm:$0xf] %vm1440_vm7, %v1395_v31  ;;  %v1393_v33 = vpop.permute.xlu0 %1392  ;;  %v2141_v31 = vshrl.u32 %v4599_v11, 16  ;;  %v4613_v11 = vld [vmem:[%s5281_s30 + $0x120] sm:$0xf] }
  0xec   : > { %1465 = vst.msk [vmem:[#allocation2 + $0x60] sm:$0xf] %vm1440_vm7, %v1393_v33  ;;  %1916 = vrot.lane.b32.xlu1 %v4576_v30, %s5061_s6  ;;  %v2109_v30 = vrot.slane %v2107_v10, 5  ;;  %v2131_v33 = vshll.u32 %v4598_v16, 16 }
  0xed   : > { %1914 = vrot.lane.b32.xlu0 %v4575_v32, %s5061_s6  ;;  %v2128_v32 = vshrl.u32 %v4598_v16, 16 }
  0xee   : > { %v1399_v36 = vpop.permute.xlu1 %1398  ;;  %v2110_v50 = vor.u32 %v2109_v30, %v2106_v26 }
  0xef   : > { %1468 = vst.msk [vmem:[#allocation2 + $0x6c] sm:$0xf] %vm1440_vm7, %v1399_v36  ;;  %v1397_v38 = vpop.permute.xlu0 %1396  ;;  %v2077_v36 = vrot.slane %v2075_v14, 5  ;;  %v2130_v53 = vrot.slane %v2128_v32, 4 }
  0xf0   : > { %1467 = vst.msk [vmem:[#allocation2 + $0x68] sm:$0xf] %vm1440_vm7, %v1397_v38  ;;  %1920 = vrot.lane.b32.xlu1 %v4578_v34, %s5061_s6  ;;  %v4588_v34 = vld [vmem:[%s5281_s30 + $0x178] sm:$0xf]  ;;  %v2073_v38 = vrot.slane %v2072_v13, 4  ;;  %v2111_v8 = vrot.slane %v2110_v50, 4 }
  0xf1   : > { %1918 = vrot.lane.b32.xlu0 %v4577_v37, %s5061_s6  ;;  %v2099_v37 = vshll.u32 %v4594_v18, 16 }
  0xf2   : > { %v1403_v41 = vpop.permute.xlu1 %1402  ;;  %v2078_v60 = vsel %vm5292_vm2, %v2073_v38, %v2077_v36  ;;  %v4615_v36 = vld [vmem:[%s5281_s30 + $0x128] sm:$0x1] }
  0xf3   : > { %1470 = vst.msk [vmem:[#allocation2 + $0x74] sm:$0xf] %vm1440_vm7, %v1403_v41  ;;  %v1401_v44 = vpop.permute.xlu0 %1400  ;;  %v4602_v41 = vld [vmem:[%s5281_s30 + $0xf4] sm:$0xf]  ;;  %v2101_v62 = vrot.slane %v2099_v37, 5  ;;  %v2267_v50 = vshll.u32 %v4615_v36, 16 }
  0xf4   : > { %1469 = vst.msk [vmem:[#allocation2 + $0x70] sm:$0xf] %vm1440_vm7, %v1401_v44  ;;  %1924 = vrot.lane.b32.xlu1 %v4580_v39, %s5061_s6  ;;  %v2063_v39 = vrot.slane %v2062_v17, 4  ;;  %v4587_v44 = vld [vmem:[%s5281_s30 + $0x174] sm:$0xf]  ;;  %v2161_v55 = vshll.u32 %v4602_v41, 16 }
  0xf5   : > { %1922 = vrot.lane.b32.xlu0 %v4579_v42, %s5061_s6  ;;  %v4601_v42 = vld [vmem:[%s5281_s30 + $0xf0] sm:$0xf]  ;;  %v2165_v56 = vshrl.u32 %v4602_v41, 16  ;;  %v2102_v17 = vsel %vm5292_vm2, %v2097_v61, %v2101_v62 }
  0xf6   : > { %v1407_v51 = vpop.permute.xlu1 %1406  ;;  %v2155_v59 = vshll.u32 %v4601_v42, 16  ;;  %v2068_v0 = vsel %vm5292_vm2, %v2063_v39, %v5738_v58  ;;  %v4603_v58 = vld [vmem:[%s5281_s30 + $0xf8] sm:$0x1]  ;;  %v2281_v39 = vshll.u32 %v4617_v25, 16 }
  0xf7   : > { %1472 = vst.msk [vmem:[#allocation2 + $0x7c] sm:$0xf] %vm1440_vm7, %v1407_v51  ;;  %v1405_v54 = vpop.permute.xlu0 %1404  ;;  %v4600_v51 = vld [vmem:[%s5281_s30 + $0xec] sm:$0x1]  ;;  %v2167_v13 = vrot.slane %v2165_v56, 4  ;;  %v2171_v30 = vshll.u32 %v4603_v58, 16 }
  0xf8   : > { %1471 = vst.msk [vmem:[#allocation2 + $0x78] sm:$0xf] %vm1440_vm7, %v1405_v54  ;;  %1928 = vrot.lane.b32.xlu1 %v4582_v47, %s5061_s6  ;;  %v2123_v47 = vshll.u32 %v4597_v29, 16  ;;  %v2133_v54 = vrot.slane %v2131_v33, 5  ;;  %v2157_v16 = vrot.slane %v2155_v59, 5 }
  0xf9   : > { %1926 = vrot.lane.b32.xlu0 %v4581_v52, %s5061_s6  ;;  %v2143_v52 = vrot.slane %v2141_v31, 4  ;;  %v4616_v31 = vld [vmem:[%s5281_s30 + $0x12c] sm:$0xf]  ;;  %v4618_v59 = vld [vmem:[%s5281_s30 + $0x134] sm:$0x1] }
  0xfa   : > { %v1687_v3 = vpop.permute.xlu1 %1686  ;;  %v2125_v2 = vrot.slane %v2123_v47, 5  ;;  %v2134_v10 = vor.u32 %v2133_v54, %v2130_v53  ;;  %v2283_v53 = vrot.slane %v2281_v39, 5  ;;  %v2287_v54 = vrot.slane %v2285_v40, 4  ;;  %v4642_v40 = vld [vmem:[%s5281_s30 + $0xd4] sm:$0x1] }
  0xfb   : > { %1782 = vst.msk [vmem:[#allocation2 + $0x4] sm:$0xf] %vm1780_vm8, %v1687_v3  ;;  %v1685_v9 = vpop.permute.xlu0 %1684  ;;  %v2147_v3 = vshll.u32 %v4600_v51, 16 }
  0xfc   : > { %1781 = vst.msk [vmem:[#allocation2] sm:$0xf] %vm1780_vm8, %v1685_v9  ;;  %1932 = vrot.lane.b32.xlu1 %v4584_v57, %s5061_s6  ;;  %v2152_v57 = vshrl.u32 %v4601_v42, 16  ;;  %v2144_v9 = vor.u32 %v2143_v52, %v5768_v48  ;;  %v2126_v27 = vsel %vm5292_vm2, %v2121_v7, %v2125_v2  ;;  %v2135_v32 = vrot.slane %v2134_v10, 4 }
  0xfd   : > { %1930 = vrot.lane.b32.xlu0 %v4583_v4, %s5061_s6  ;;  %v4614_v4 = vld [vmem:[%s5281_s30 + $0x124] sm:$0xf]  ;;  %v2149_v29 = vrot.slane %v2147_v3, 5  ;;  %v2288_v1 = vor.u32 %v2287_v54, %v2283_v53  ;;  %v2291_v2 = vshll.u32 %v4618_v59, 16 }
  0xfe   : > { %v1691_v22 = vpop.permute.xlu1 %1690  ;;  %v2154_v14 = vrot.slane %v2152_v57, 4  ;;  %v2257_v18 = vshll.u32 %v4614_v4, 16  ;;  %v2261_v19 = vshrl.u32 %v4614_v4, 16  ;;  %v2145_v15 = vrot.slane %v2144_v9, 4 }
  0xff   : > { %1784 = vst.msk [vmem:[#allocation2 + $0xc] sm:$0xf] %vm1780_vm8, %v1691_v22  ;;  %v1689_v28 = vpop.permute.xlu0 %1688  ;;  %v2248_v22 = vshrl.u32 %v4613_v11, 16  ;;  %v2140_v47 = vsel %vm5292_vm2, %v2135_v32, %v5768_v48  ;;  %v2269_v48 = vrot.slane %v2267_v50, 5  ;;  %v2293_v58 = vrot.slane %v2291_v2, 5 }
 0x100   : > { %1783 = vst.msk [vmem:[#allocation2 + $0x8] sm:$0xf] %vm1780_vm8, %v1689_v28  ;;  %1936 = vrot.lane.b32.xlu1 %v4586_v12, %s5061_s6  ;;  %v5787_v12 = vrot.slane %v2161_v55, 5  ;;  %v2116_v28 = vsel %vm5292_vm2, %v2111_v8, %v5755_v24  ;;  %v2259_v37 = vrot.slane %v2257_v18, 5  ;;  %v2263_v38 = vrot.slane %v2261_v19, 4 }
 0x101   : > { %1934 = vrot.lane.b32.xlu0 %v4585_v23, %s5061_s6  ;;  %v2251_v23 = vshll.u32 %v4613_v11, 16  ;;  %v2250_v41 = vrot.slane %v2248_v22, 4  ;;  %v2150_v46 = vsel %vm5292_vm2, %v2145_v15, %v2149_v29  ;;  %v4638_v8 = vld [vmem:[%s5281_s30 + $0xc4] sm:$0xf]  ;;  %v2289_v11 = vrot.slane %v2288_v1, 4 }
 0x102   : > { %v1695_v43 = vpop.permute.xlu1 %1694  ;;  %v2168_v33 = vor.u32 %v2167_v13, %v5787_v12  ;;  %v2264_v52 = vor.u32 %v2263_v38, %v2259_v37  ;;  %v4662_v18 = vld [vmem:[%s5281_s30 + $0x124] sm:$0xf]  ;;  %v4663_v29 = vld [vmem:[%s5281_s30 + $0x128] sm:$0x1]  ;;  %v4661_v15 = vld [vmem:[%s5281_s30 + $0x120] sm:$0xe] }
 0x103   : > { %1786 = vst.msk [vmem:[#allocation2 + $0x14] sm:$0xf] %vm1780_vm8, %v1695_v43  ;;  %v1693_v49 = vpop.permute.xlu0 %1692  ;;  %v2253_v42 = vrot.slane %v2251_v23, 5  ;;  %v2272_v43 = vshrl.u32 %v4616_v31, 16  ;;  %v2722_v25 = vrot.slane %v4662_v18, 5  ;;  %v4693_v39 = vrot.slane %v4661_v15, 9 }
 0x104   : > { %1785 = vst.msk [vmem:[#allocation2 + $0x10] sm:$0xf] %vm1780_vm8, %v1693_v49  ;;  %1940 = vrot.lane.b32.xlu1 %v4588_v34, %s5061_s6  ;;  %v2158_v34 = vor.u32 %v2157_v16, %v2154_v14  ;;  %v2173_v49 = vrot.slane %v2171_v30, 5  ;;  %v2169_v51 = vrot.slane %v2168_v33, 4  ;;  %v4641_v30 = vld [vmem:[%s5281_s30 + $0xd0] sm:$0xf] }
 0x105   : > { %1938 = vrot.lane.b32.xlu0 %v4587_v44, %s5061_s6  ;;  %v2275_v44 = vshll.u32 %v4616_v31, 16  ;;  %v2254_v57 = vor.u32 %v2253_v42, %v2250_v41  ;;  %v2724_v33 = vrot.slane %v2722_v25, 4  ;;  %v2673_v36 = vrot.slane %v4641_v30, 5  ;;  %v4640_v42 = vld [vmem:[%s5281_s30 + $0xcc] sm:$0xe] }
 0x106   : > { %v1699_v63 = vpop.permute.xlu1 %1698  ;;  %v2159_v56 = vrot.slane %v2158_v34, 4  ;;  %v2725_v34 = vrot.slane %v4663_v29, 5  ;;  %v4686_v50 = vrot.slane %v4640_v42, 9 }
 0x107   : > { %1788 = vst.msk [vmem:[#allocation2 + $0x1c] sm:$0xf] %vm1780_vm8, %v1699_v63  ;;  %v1697_v5 = vpop.permute.xlu0 %1696  ;;  %v2277_v61 = vrot.slane %v2275_v44, 5  ;;  %v2174_v63 = vsel %vm5292_vm2, %v2169_v51, %v2173_v49  ;;  %v2675_v44 = vrot.slane %v2673_v36, 4  ;;  %v2723_v49 = vsel %vm5436_vm6, %v4693_v39, %v2722_v25  ;;  %v4666_v51 = vld [vmem:[%s5281_s30 + $0x134] sm:$0x1] }
 0x108   : > { %1787 = vst.msk [vmem:[#allocation2 + $0x18] sm:$0xf] %vm1780_vm8, %v1697_v5  ;;  %2441 = vrot.lane.b32.xlu1 %v2078_v60, %s5062_s7  ;;  %v2274_v60 = vrot.slane %v2272_v43, 4  ;;  %v2164_v4 = vsel %vm5292_vm2, %v2159_v56, %v5787_v12  ;;  %v2255_v5 = vrot.slane %v2254_v57, 4  ;;  %v2666_v12 = vrot.slane %v4638_v8, 5 }
 0x109   : > { %2439 = vrot.lane.b32.xlu0 %v2068_v0, %s5062_s7  ;;  %v2265_v0 = vrot.slane %v2264_v52, 4  ;;  %v2726_v43 = vsel %vm5436_vm6, %v2724_v33, %v2725_v34  ;;  %v2732_v56 = vrot.slane %v4666_v51, 5  ;;  %v2674_v59 = vsel %vm5436_vm6, %v4686_v50, %v2673_v36  ;;  %v4702_v8 = vld [vmem:[%s5281_s30 + $0x184] sm:$0xf]  ;;  %v4737_v25 = vld [vmem:[%s5281_s30 + $0x190] sm:$0xf] }
 0x10a   : > { %v1703_v20 = vpop.permute.xlu1 %1702  ;;  %v2278_v7 = vor.u32 %v2277_v61, %v2274_v60  ;;  %v2260_v14 = vsel %vm5292_vm2, %v2255_v5, %v2259_v37  ;;  %v2668_v22 = vrot.slane %v2666_v12, 4  ;;  %v3181_v36 = vshll.u32 %v4737_v25, 16  ;;  %v4720_v50 = vld [vmem:[%s5281_s30 + $0x1f0] sm:$0xf] }
 0x10b   : > { %1790 = vst.msk [vmem:[#allocation2 + $0x24] sm:$0xf] %vm1780_vm8, %v1703_v20  ;;  %v1701_v26 = vpop.permute.xlu0 %1700  ;;  %v2270_v10 = vsel %vm5292_vm2, %v2265_v0, %v2269_v48  ;;  %v4637_v20 = vld [vmem:[%s5281_s30 + $0xc0] sm:$0xe] }
 0x10c   : > { %1789 = vst.msk [vmem:[#allocation2 + $0x20] sm:$0xf] %vm1780_vm8, %v1701_v26  ;;  %2445 = vrot.lane.b32.xlu1 %v2102_v17, %s5062_s7  ;;  %v2279_v16 = vrot.slane %v2278_v7, 4  ;;  %v4639_v17 = vld [vmem:[%s5281_s30 + $0xc8] sm:$0x1] }
 0x10d   : > { %2443 = vrot.lane.b32.xlu0 %v2092_v21, %s5062_s7  ;;  %v2294_v21 = vsel %vm5292_vm2, %v2289_v11, %v2293_v58  ;;  %v2669_v23 = vrot.slane %v4639_v17, 5  ;;  %v4701_v11 = vld [vmem:[%s5281_s30 + $0x180] sm:$0xf] }
 0x10e   : > { %v1707_v24 = vpop.permute.xlu1 %1706  ;;  %v4757_v58 = vld [vmem:[%s5281_s30 + $0x1e0] sm:$0xf] }
 0x10f   : > { %1792 = vst.msk [vmem:[#allocation2 + $0x2c] sm:$0xf] %vm1780_vm8, %v1707_v24  ;;  %v1705_v45 = vpop.permute.xlu0 %1704  ;;  %v2670_v32 = vsel %vm5436_vm6, %v2668_v22, %v2669_v23  ;;  %v4665_v24 = vld [vmem:[%s5281_s30 + $0x130] sm:$0xf]  ;;  %v3340_v22 = vshrl.u32 %v4757_v58, 16  ;;  %v3343_v23 = vshll.u32 %v4757_v58, 16 }
 0x110   : > { %1791 = vst.msk [vmem:[#allocation2 + $0x28] sm:$0xf] %vm1780_vm8, %v1705_v45  ;;  %2449 = vrot.lane.b32.xlu1 %v2126_v27, %s5062_s7  ;;  %v2284_v27 = vsel %vm5292_vm2, %v2279_v16, %v2283_v53  ;;  %v2676_v45 = vrot.slane %v4642_v40, 5  ;;  %v4664_v53 = vld [vmem:[%s5281_s30 + $0x12c] sm:$0xe]  ;;  %v3185_v40 = vshrl.u32 %v4737_v25, 16 }
 0x111   : > { %2447 = vrot.lane.b32.xlu0 %v2116_v28, %s5062_s7  ;;  %v4685_v28 = vrot.slane %v4637_v20, 9  ;;  %v4694_v60 = vrot.slane %v4664_v53, 9  ;;  %v4735_v16 = vld [vmem:[%s5281_s30 + $0x188] sm:$0x1]  ;;  %v3345_v39 = vrot.slane %v3343_v23, 5 }
 0x112   : > { %v1711_v55 = vpop.permute.xlu1 %1710  ;;  %v2677_v54 = vsel %vm5436_vm6, %v2675_v44, %v2676_v45  ;;  %v3167_v30 = vshll.u32 %v4735_v16, 16  ;;  %v4761_v44 = vld [vmem:[%s5281_s30 + $0x1f0] sm:$0xf]  ;;  %v4762_v16 = vld [vmem:[%s5281_s30 + $0x1f4] sm:$0x1] }
 0x113   : > { %1794 = vst.msk [vmem:[#allocation2 + $0x34] sm:$0xf] %vm1780_vm8, %v1711_v55  ;;  %v1709_v62 = vpop.permute.xlu0 %1708  ;;  %v2667_v38 = vsel %vm5436_vm6, %v4685_v28, %v2666_v12  ;;  %v3383_v23 = vshll.u32 %v4762_v16, 16 }
 0x114   : > { %1793 = vst.msk [vmem:[#allocation2 + $0x30] sm:$0xf] %vm1780_vm8, %v1709_v62  ;;  %2453 = vrot.lane.b32.xlu1 %v2150_v46, %s5062_s7  ;;  %v2729_v46 = vrot.slane %v4665_v24, 5  ;;  %v4734_v62 = vld [vmem:[%s5281_s30 + $0x184] sm:$0xf] }
 0x115   : > { %2451 = vrot.lane.b32.xlu0 %v2140_v47, %s5062_s7 }
 0x116   : > { %v1715_v3 = vpop.permute.xlu1 %1714  ;;  %v2731_v55 = vrot.slane %v2729_v46, 4  ;;  %v2730_v1 = vsel %vm5436_vm6, %v4694_v60, %v2729_v46  ;;  %v3169_v46 = vrot.slane %v3167_v30, 5  ;;  %v3377_v60 = vshrl.u32 %v4761_v44, 16 }
 0x117   : > { %1796 = vst.msk [vmem:[#allocation2 + $0x3c] sm:$0xf] %vm1780_vm8, %v1715_v3  ;;  %v1713_v9 = vpop.permute.xlu0 %1712  ;;  %v3157_v3 = vshll.u32 %v4734_v62, 16 }
 0x118   : > { %1795 = vst.msk [vmem:[#allocation2 + $0x38] sm:$0xf] %vm1780_vm8, %v1713_v9  ;;  %2457 = vrot.lane.b32.xlu1 %v2174_v63, %s5062_s7  ;;  %v2733_v48 = vsel %vm5436_vm6, %v2731_v55, %v2732_v56  ;;  %v4733_v63 = vld [vmem:[%s5281_s30 + $0x180] sm:$0xf]  ;;  %v4758_v9 = vld [vmem:[%s5281_s30 + $0x1e4] sm:$0xf] }
 0x119   : > { %2455 = vrot.lane.b32.xlu0 %v2164_v4, %s5062_s7  ;;  %v3161_v4 = vshrl.u32 %v4734_v62, 16  ;;  %v3148_v5 = vshrl.u32 %v4733_v63, 16  ;;  %v3151_v7 = vshll.u32 %v4733_v63, 16  ;;  %v3353_v20 = vshrl.u32 %v4758_v9, 16  ;;  %v4738_v56 = vld [vmem:[%s5281_s30 + $0x194] sm:$0x1] }
 0x11a   : > { %v1719_v13 = vpop.permute.xlu1 %1718  ;;  %v4719_v62 = vld [vmem:[%s5281_s30 + $0x1ec] sm:$0xf] }
 0x11b   : > { %1798 = vst.msk [vmem:[#allocation2 + $0x44] sm:$0xf] %vm1780_vm8, %v1719_v13  ;;  %v1717_v19 = vpop.permute.xlu0 %1716  ;;  %v5898_v13 = vrot.slane %v3157_v3, 5  ;;  %v3150_v17 = vrot.slane %v3148_v5, 4  ;;  %v3153_v18 = vrot.slane %v3151_v7, 5  ;;  %v3355_v34 = vrot.slane %v3353_v20, 4 }
 0x11c   : > { %1797 = vst.msk [vmem:[#allocation2 + $0x40] sm:$0xf] %vm1780_vm8, %v1717_v19  ;;  %2473 = vrot.lane.b32.xlu1 %v2270_v10, %s5062_s7  ;;  %v3349_v19 = vshll.u32 %v4758_v9, 16  ;;  %v3191_v7 = vshll.u32 %v4738_v56, 16 }
 0x11d   : > { %2471 = vrot.lane.b32.xlu0 %v2260_v14, %s5062_s7  ;;  %v3163_v14 = vrot.slane %v3161_v4, 4  ;;  %v3154_v15 = vor.u32 %v3153_v18, %v3150_v17 }
 0x11e   : > { %v1723_v26 = vpop.permute.xlu1 %1722  ;;  %v5913_v33 = vrot.slane %v3349_v19, 5  ;;  %v3193_v19 = vrot.slane %v3191_v7, 5 }
 0x11f   : > { %1800 = vst.msk [vmem:[#allocation2 + $0x4c] sm:$0xf] %vm1780_vm8, %v1723_v26  ;;  %v1721_v31 = vpop.permute.xlu0 %1720  ;;  %v3164_v29 = vor.u32 %v3163_v14, %v5898_v13 }
 0x120   : > { %1799 = vst.msk [vmem:[#allocation2 + $0x48] sm:$0xf] %vm1780_vm8, %v1721_v31  ;;  %2477 = vrot.lane.b32.xlu1 %v2294_v21, %s5062_s7  ;;  %v4718_v21 = vld [vmem:[%s5281_s30 + $0x1e4] sm:$0xf]  ;;  %v4736_v31 = vld [vmem:[%s5281_s30 + $0x18c] sm:$0xf]  ;;  %v3356_v53 = vor.u32 %v3355_v34, %v5913_v33 }
 0x121   : > { %2475 = vrot.lane.b32.xlu0 %v2284_v27, %s5062_s7  ;;  %v4717_v27 = vld [vmem:[%s5281_s30 + $0x1e0] sm:$0xf]  ;;  %v3172_v42 = vshrl.u32 %v4736_v31, 16  ;;  %v3165_v51 = vrot.slane %v3164_v29, 4  ;;  %v4782_v29 = vld [vmem:[%s5281_s30 + $0x184] sm:$0xf] }
 0x122   : > { %v1727_v37 = vpop.permute.xlu1 %1726  ;;  %v4806_v34 = vld [vmem:[%s5281_s30 + $0x1e4] sm:$0xf] }
 0x123   : > { %1802 = vst.msk [vmem:[#allocation2 + $0x54] sm:$0xf] %vm1780_vm8, %v1727_v37  ;;  %v1725_v41 = vpop.permute.xlu0 %1724  ;;  %v4704_v37 = vld [vmem:[%s5281_s30 + $0x190] sm:$0xf]  ;;  %v3170_v3 = vsel %vm5292_vm2, %v3165_v51, %v3169_v46 }
 0x124   : > { %1801 = vst.msk [vmem:[#allocation2 + $0x50] sm:$0xf] %vm1780_vm8, %v1725_v41  ;;  %2778 = vrot.lane.b32.xlu1 %v2670_v32, %s5063_s8  ;;  %v4759_v32 = vld [vmem:[%s5281_s30 + $0x1e8] sm:$0x1]  ;;  %v4703_v41 = vld [vmem:[%s5281_s30 + $0x18c] sm:$0xf] }
 0x125   : > { %2776 = vrot.lane.b32.xlu0 %v2667_v38, %s5063_s8  ;;  %v3342_v38 = vrot.slane %v3340_v22, 4 }
 0x126   : > { %v1731_v47 = vpop.permute.xlu1 %1730 }
 0x127   : > { %1804 = vst.msk [vmem:[#allocation2 + $0x5c] sm:$0xf] %vm1780_vm8, %v1731_v47  ;;  %v1729_v52 = vpop.permute.xlu0 %1728  ;;  %v3359_v47 = vshll.u32 %v4759_v32, 16  ;;  %v3346_v55 = vor.u32 %v3345_v39, %v3342_v38  ;;  %v3385_v32 = vrot.slane %v3383_v23, 5  ;;  %v4783_v39 = vld [vmem:[%s5281_s30 + $0x188] sm:$0x1] }
 0x128   : > { %1803 = vst.msk [vmem:[#allocation2 + $0x58] sm:$0xf] %vm1780_vm8, %v1729_v52  ;;  %2810 = vrot.lane.b32.xlu1 %v2726_v43, %s5063_s8  ;;  %v3175_v43 = vshll.u32 %v4736_v31, 16  ;;  %v3155_v52 = vrot.slane %v3154_v15, 4 }
 0x129   : > { %2808 = vrot.lane.b32.xlu0 %v2723_v49, %s5063_s8  ;;  %v4760_v49 = vld [vmem:[%s5281_s30 + $0x1ec] sm:$0xf]  ;;  %v3361_v5 = vrot.slane %v3359_v47, 5  ;;  %v3761_v47 = vrot.slane %v4783_v39, 5 }
 0x12a   : > { %v1735_v57 = vpop.permute.xlu1 %1734  ;;  %v3177_v63 = vrot.slane %v3175_v43, 5  ;;  %v3160_v4 = vsel %vm5292_vm2, %v3155_v52, %v5898_v13  ;;  %v3814_v43 = vrot.slane %v4806_v34, 5 }
 0x12b   : > { %1806 = vst.msk [vmem:[#allocation2 + $0x64] sm:$0xf] %vm1780_vm8, %v1735_v57  ;;  %v1733_v61 = vpop.permute.xlu0 %1732  ;;  %v3187_v57 = vrot.slane %v3185_v40, 4 }
 0x12c   : > { %1805 = vst.msk [vmem:[#allocation2 + $0x60] sm:$0xf] %vm1780_vm8, %v1733_v61  ;;  %2782 = vrot.lane.b32.xlu1 %v2677_v54, %s5063_s8  ;;  %v5925_v54 = vrot.slane %v3181_v36, 5 }
 0x12d   : > { %2780 = vrot.lane.b32.xlu0 %v2674_v59, %s5063_s8  ;;  %v3373_v59 = vshll.u32 %v4761_v44, 16  ;;  %v4805_v44 = vld [vmem:[%s5281_s30 + $0x1e0] sm:$0xe] }
 0x12e   : > { %v1739_v0 = vpop.permute.xlu1 %1738  ;;  %v3188_v9 = vor.u32 %v3187_v57, %v5925_v54  ;;  %v4837_v56 = vrot.slane %v4805_v44, 9  ;;  %v4619_v57 = vld [vmem:[%s5281_s30 + $0x138] sm:$0xf] }
 0x12f   : > { %1808 = vst.msk [vmem:[#allocation2 + $0x6c] sm:$0xf] %vm1780_vm8, %v1739_v0  ;;  %v1737_v2 = vpop.permute.xlu0 %1736  ;;  %v3364_v0 = vshrl.u32 %v4760_v49, 16  ;;  %v2296_v7 = vshrl.u32 %v4619_v57, 16 }
 0x130   : > { %1807 = vst.msk [vmem:[#allocation2 + $0x68] sm:$0xf] %vm1780_vm8, %v1737_v2  ;;  %2814 = vrot.lane.b32.xlu1 %v2733_v48, %s5063_s8  ;;  %v3174_v48 = vrot.slane %v3172_v42, 4  ;;  %v4807_v42 = vld [vmem:[%s5281_s30 + $0x1e8] sm:$0x1] }
 0x131   : > { %2812 = vrot.lane.b32.xlu0 %v2730_v1, %s5063_s8  ;;  %v3367_v1 = vshll.u32 %v4760_v49, 16  ;;  %v3366_v17 = vrot.slane %v3364_v0, 4  ;;  %v5978_v49 = vld [vmem:[%s5281_s30 + $0x190] sm:$0xf]  ;;  %v4784_v0 = vld [vmem:[%s5281_s30 + $0x18c] sm:$0xe] }
 0x132   : > { %v1743_v10 = vpop.permute.xlu1 %1742  ;;  %v3178_v14 = vor.u32 %v3177_v63, %v3174_v48  ;;  %v3765_v48 = vrot.slane %v5978_v49, 5 }
 0x133   : > { %1810 = vst.msk [vmem:[#allocation2 + $0x74] sm:$0xf] %vm1780_vm8, %v1743_v10  ;;  %v1741_v12 = vpop.permute.xlu0 %1740  ;;  %v5940_v10 = vrot.slane %v3373_v59, 5  ;;  %v3369_v18 = vrot.slane %v3367_v1, 5  ;;  %v5001_v59 = vld [vmem:[%s6849_s1 + $0x8] sm:$0xff]  }
 0x134   : > { %1809 = vst.msk [vmem:[#allocation2 + $0x70] sm:$0xf] %vm1780_vm8, %v1741_v12  ;;  %2972 = vrot.lane.b32.xlu1 %v4702_v8, %s5064_s9  ;;  %v3357_v8 = vrot.slane %v3356_v53, 4  ;;  %v3347_v12 = vrot.slane %v3346_v55, 4  ;;  %v5998_v1 = vld [vmem:[%s5281_s30 + $0x1f0] sm:$0xf] }
 0x135   : > { %2970 = vrot.lane.b32.xlu0 %v4701_v11, %s5064_s9  ;;  %v3379_v11 = vrot.slane %v3377_v60, 4  ;;  %v3816_v60 = vrot.slane %v3814_v43, 4 }
 0x136   : > { %v1747_v26 = vpop.permute.xlu1 %1746  ;;  %v3362_v20 = vsel %vm5292_vm2, %v3357_v8, %v3361_v5  ;;  %v2299_v8 = vshll.u32 %v4619_v57, 16  ;;  %v4644_v57 = vld [vmem:[%s5281_s30 + $0xdc] sm:$0xf] }
 0x137   : > { %1812 = vst.msk [vmem:[#allocation2 + $0x7c] sm:$0xf] %vm1780_vm8, %v1747_v26  ;;  %v1745_v28 = vpop.permute.xlu0 %1744  ;;  %v3380_v22 = vor.u32 %v3379_v11, %v5940_v10  ;;  %v3352_v26 = vsel %vm5292_vm2, %v3347_v12, %v5913_v33  ;;  %v3758_v33 = vrot.slane %v4782_v29, 5  ;;  %v3815_v11 = vsel %vm5436_vm6, %v4837_v56, %v3814_v43  ;;  %v4622_v12 = vld [vmem:[%s5281_s30 + $0x144] sm:$0xf] }
 0x138   : > { %1811 = vst.msk [vmem:[#allocation2 + $0x78] sm:$0xf] %vm1780_vm8, %v1745_v28  ;;  %3004 = vrot.lane.b32.xlu1 %v4718_v21, %s5064_s9  ;;  %v3189_v21 = vrot.slane %v3188_v9, 4  ;;  %v3370_v28 = vor.u32 %v3369_v18, %v3366_v17  ;;  %v4623_v9 = vld [vmem:[%s5281_s30 + $0x148] sm:$0xf]  ;;  %v3767_v17 = vrot.slane %v3765_v48, 4 }
 0x139   : > { %3002 = vrot.lane.b32.xlu0 %v4717_v27, %s5064_s9  ;;  %v3179_v27 = vrot.slane %v3178_v14, 4  ;;  %v3381_v15 = vrot.slane %v3380_v22, 4  ;;  %v3760_v46 = vrot.slane %v3758_v33, 4  ;;  %v5003_v14 = vld [vmem:[%s6849_s1] sm:$0xff]   ;;  %v4830_v18 = vrot.slane %v4784_v0, 9 }
 0x13a   : > { %v1881_v24 = vpop.permute.xlu1 %1880  ;;  %v3194_v31 = vsel %vm5292_vm2, %v3189_v21, %v3193_v19  ;;  %v3371_v38 = vrot.slane %v3370_v28, 4  ;;  %v4810_v19 = vld [vmem:[%s5281_s30 + $0x1f4] sm:$0x1]  ;;  %v2329_v22 = vshll.u32 %v4623_v9, 16  ;;  %v2333_v23 = vshrl.u32 %v4623_v9, 16 }
 0x13b   : > { %1976 = vst.msk [vmem:[#allocation2 + $0x4] sm:$0xf] %vm1974_vm9, %v1881_v24  ;;  %v1879_v45 = vpop.permute.xlu0 %1878  ;;  %v4781_v24 = vld [vmem:[%s5281_s30 + $0x180] sm:$0xe]  ;;  %v3762_v63 = vsel %vm5436_vm6, %v3760_v46, %v3761_v47  ;;  %v2301_v28 = vrot.slane %v2299_v8, 5  ;;  %v2320_v29 = vshrl.u32 %v4622_v12, 16 }
 0x13c   : > { %1975 = vst.msk [vmem:[#allocation2] sm:$0xf] %vm1974_vm9, %v1879_v45  ;;  %2976 = vrot.lane.b32.xlu1 %v4704_v37, %s5064_s9  ;;  %v3184_v37 = vsel %vm5292_vm2, %v3179_v27, %v5925_v54  ;;  %v3386_v45 = vsel %vm5292_vm2, %v3381_v15, %v3385_v32  ;;  %v3376_v52 = vsel %vm5292_vm2, %v3371_v38, %v5940_v10  ;;  %v4829_v53 = vrot.slane %v4781_v24, 9  ;;  %v4620_v54 = vld [vmem:[%s5281_s30 + $0x13c] sm:$0xf] }
 0x13d   : > { %2974 = vrot.lane.b32.xlu0 %v4703_v41, %s5064_s9  ;;  %v5000_v41 = vld [vmem:[%s6849_s1 + $0x10] ss:$0 sps:$4 sm:$0x33]   ;;  %v2298_v27 = vrot.slane %v2296_v7, 4  ;;  %v4808_v15 = vld [vmem:[%s5281_s30 + $0x1ec] sm:$0xe] }
 0x13e   : > { %v1885_v61 = vpop.permute.xlu1 %1884  ;;  %4947 = vmatprep.subr.msk.bf16.mxu0 %vm4185_vm10, %v5000_v41  ;;  %4948 = vmatprep.subr.msk.bf16.mxu1 %vm4185_vm10, %v5000_v41  ;;  %v3759_v5 = vsel %vm5436_vm6, %v4829_v53, %v3758_v33  ;;  %v3766_v33 = vsel %vm5436_vm6, %v4830_v18, %v3765_v48  ;;  %v2331_v39 = vrot.slane %v2329_v22, 5  ;;  %v4624_v43 = vld [vmem:[%s5281_s30 + $0x14c] sm:$0x1]  ;;  %v2322_v44 = vrot.slane %v2320_v29, 4  ;;  %v4667_v18 = vld [vmem:[%s5281_s30 + $0x138] sm:$0xe] }
 0x13f   : > { %1978 = vst.msk [vmem:[#allocation2 + $0xc] sm:$0xf] %vm1974_vm9, %v1885_v61  ;;  %v1883_v2 = vpop.permute.xlu0 %1882  ;;  %v3817_v61 = vrot.slane %v4807_v42, 5  ;;  %v2302_v42 = vor.u32 %v2301_v28, %v2298_v27  ;;  %v2680_v48 = vrot.slane %v4644_v57, 5  ;;  %v4671_v27 = vld [vmem:[%s5281_s30 + $0x148] sm:$0xf] }
 0x140   : > { %1977 = vst.msk [vmem:[#allocation2 + $0x8] sm:$0xf] %vm1974_vm9, %v1883_v2  ;;  %3008 = vrot.lane.b32.xlu1 %v4720_v50, %s5064_s9  ;;  %v4187_v50 = vsel %vm4185_vm10, %v5000_v41, 0  ;;  %v2305_v2 = vshll.u32 %v4620_v54, 16  ;;  %v4838_v41 = vrot.slane %v4808_v15, 9 }
 0x141   : > { %3006 = vrot.lane.b32.xlu0 %v4719_v62, %s5064_s9  ;;  %4904 = vmatpush3.bf16.msra.mxu0 %v4187_v50  ;;  %v4786_v62 = vld [vmem:[%s5281_s30 + $0x194] sm:$0x1]  ;;  %v3818_v16 = vsel %vm5436_vm6, %v3816_v60, %v3817_v61  ;;  %v2682_v8 = vrot.slane %v2680_v48, 4  ;;  %v4646_v29 = vld [vmem:[%s5281_s30 + $0xe4] sm:$0xe] }
 0x142   : > { %v1889_v58 = vpop.permute.xlu1 %1888  ;;  %4944 = vmatpush3.bf16.msra.mxu1 %v4187_v50  ;;  %4905 = vmatprep.subr.bf16.mxu0 %v5001_v59  ;;  %v4706_v57 = vld [vmem:[%s5281_s30 + $0x19c] sm:$0xf] }
 0x143   : > { %1980 = vst.msk [vmem:[#allocation2 + $0x14] sm:$0xf] %vm1974_vm9, %v1889_v58  ;;  %v1887_v13 = vpop.permute.xlu0 %1886  ;;  %4942 = vmatprep.subr.bf16.mxu1 %v5001_v59  ;;  %v3768_v58 = vrot.slane %v4786_v62, 5 }
 0x144   : > { %1979 = vst.msk [vmem:[#allocation2 + $0x10] sm:$0xf] %vm1974_vm9, %v1887_v13  ;;  %3533 = vrot.lane.b32.xlu1 %v3170_v3, %s5065_s10  ;;  %v2309_v3 = vshrl.u32 %v4620_v54, 16  ;;  %v3821_v13 = vrot.slane %v5998_v1, 5 }
 0x145   : > { %3531 = vrot.lane.b32.xlu0 %v3160_v4, %s5065_s10  ;;  %4906 = vmatpush3.bf16.msra.mxu0 %v5001_v59  ;;  %v3769_v32 = vsel %vm5436_vm6, %v3767_v17, %v3768_v58 }
 0x146   : > { %v1893_v25 = vpop.permute.xlu1 %1892  ;;  %4945 = vmatpush3.bf16.msra.mxu1 %v5001_v59  ;;  %v2311_v21 = vrot.slane %v2309_v3, 4  ;;  %4907 = vmatprep.subr.bf16.mxu0 %v5003_v14  ;;  %v3823_v34 = vrot.slane %v3821_v13, 4  ;;  %v3822_v54 = vsel %vm5436_vm6, %v4838_v41, %v3821_v13  ;;  %v4668_v3 = vld [vmem:[%s5281_s30 + $0x13c] sm:$0xf] }
 0x147   : > { %1982 = vst.msk [vmem:[#allocation2 + $0x1c] sm:$0xf] %vm1974_vm9, %v1893_v25  ;;  %v1891_v30 = vpop.permute.xlu0 %1890  ;;  %4943 = vmatprep.subr.bf16.mxu1 %v5003_v14 }
 0x148   : > { %1981 = vst.msk [vmem:[#allocation2 + $0x18] sm:$0xf] %vm1974_vm9, %v1891_v30  ;;  %3565 = vrot.lane.b32.xlu1 %v3362_v20, %s5065_s10  ;;  %v6017_v20 = vrot.slane %v2305_v2, 5  ;;  %v2323_v30 = vshll.u32 %v4622_v12, 16  ;;  %v4645_v2 = vld [vmem:[%s5281_s30 + $0xe0] sm:$0x1] }
 0x149   : > { %3563 = vrot.lane.b32.xlu0 %v3352_v26, %s5065_s10  ;;  %v4621_v26 = vld [vmem:[%s5281_s30 + $0x140] sm:$0x1]  ;;  %4908 = vmatpush3.bf16.msra.mxu0 %v5003_v14  ;;  %v2683_v9 = vrot.slane %v4645_v2, 5 }
 0x14a   : > { %v1897_v36 = vpop.permute.xlu1 %1896  ;;  %4946 = vmatpush3.bf16.msra.mxu1 %v5003_v14  ;;  %v2315_v38 = vshll.u32 %v4621_v26, 16  ;;  %v4669_v14 = vld [vmem:[%s5281_s30 + $0x140] sm:$0x1]  ;;  %v4648_v26 = vld [vmem:[%s5281_s30 + $0xec] sm:$0x1] }
 0x14b   : > { %1984 = vst.msk [vmem:[#allocation2 + $0x24] sm:$0xf] %vm1974_vm9, %v1897_v36  ;;  %v1895_v40 = vpop.permute.xlu0 %1894  ;;  %v3824_v36 = vrot.slane %v4810_v19, 5  ;;  %v2684_v13 = vsel %vm5436_vm6, %v2682_v8, %v2683_v9  ;;  %v2690_v15 = vrot.slane %v4648_v26, 5  ;;  %v4722_v9 = vld [vmem:[%s5281_s30 + $0x1fc] sm:$0xf] }
 0x14c   : > { %1983 = vst.msk [vmem:[#allocation2 + $0x20] sm:$0xf] %vm1974_vm9, %v1895_v40  ;;  %3537 = vrot.lane.b32.xlu1 %v3194_v31, %s5065_s10  ;;  %v2335_v40 = vrot.slane %v2333_v23, 4  ;;  %v2317_v50 = vrot.slane %v2315_v38, 5 }
 0x14d   : > { %3535 = vrot.lane.b32.xlu0 %v3184_v37, %s5065_s10  ;;  %v2312_v37 = vor.u32 %v2311_v21, %v6017_v20  ;;  %v3825_v47 = vsel %vm5436_vm6, %v3823_v34, %v3824_v36  ;;  %v4688_v36 = vrot.slane %v4646_v29, 9 }
 0x14e   : > { %v1901_v51 = vpop.permute.xlu1 %1900 }
 0x14f   : > { %1986 = vst.msk [vmem:[#allocation2 + $0x2c] sm:$0xf] %vm1974_vm9, %v1901_v51  ;;  %v1899_v55 = vpop.permute.xlu0 %1898  ;;  %v2313_v49 = vrot.slane %v2312_v37, 4  ;;  %v2336_v51 = vor.u32 %v2335_v40, %v2331_v39  ;;  %v4672_v37 = vld [vmem:[%s5281_s30 + $0x14c] sm:$0x1] }
 0x150   : > { %1985 = vst.msk [vmem:[#allocation2 + $0x28] sm:$0xf] %vm1974_vm9, %v1899_v55  ;;  %3569 = vrot.lane.b32.xlu1 %v3386_v45, %s5065_s10  ;;  %v2325_v45 = vrot.slane %v2323_v30, 5  ;;  %v2303_v55 = vrot.slane %v2302_v42, 4  ;;  %v2746_v41 = vrot.slane %v4672_v37, 5 }
 0x151   : > { %3567 = vrot.lane.b32.xlu0 %v3376_v52, %s5065_s10  ;;  %v2339_v52 = vshll.u32 %v4624_v43, 16  ;;  %v2318_v60 = vsel %vm5292_vm2, %v2313_v49, %v2317_v50  ;;  %v2337_v61 = vrot.slane %v2336_v51, 4 }
 0x152   : > { %v1905_v4 = vpop.permute.xlu1 %1904  ;;  %v2326_v56 = vor.u32 %v2325_v45, %v2322_v44  ;;  %v2308_v0 = vsel %vm5292_vm2, %v2303_v55, %v6017_v20  ;;  %v2739_v20 = vrot.slane %v4669_v14, 5 }
 0x153   : > { %1988 = vst.msk [vmem:[#allocation2 + $0x34] sm:$0xf] %vm1974_vm9, %v1905_v4  ;;  %v1903_v10 = vpop.permute.xlu0 %1902  ;;  %v2341_v62 = vrot.slane %v2339_v52, 5 }
 0x154   : > { %1987 = vst.msk [vmem:[#allocation2 + $0x30] sm:$0xf] %vm1974_vm9, %v1903_v10  ;;  %3870 = vrot.lane.b32.xlu1 %v3762_v63, %s5066_s23  ;;  %v2327_v1 = vrot.slane %v2326_v56, 4  ;;  %v2736_v10 = vrot.slane %v4668_v3, 5  ;;  %v4741_v3 = vld [vmem:[%s5281_s30 + $0x1a0] sm:$0x1] }
 0x155   : > { %3868 = vrot.lane.b32.xlu0 %v3759_v5, %s5066_s23  ;;  %v4643_v5 = vld [vmem:[%s5281_s30 + $0xd8] sm:$0xe]  ;;  %v2342_v7 = vsel %vm5292_vm2, %v2337_v61, %v2341_v62 }
 0x156   : > { %v1909_v25 = vpop.permute.xlu1 %1908  ;;  %v2332_v58 = vsel %vm5292_vm2, %v2327_v1, %v2331_v39  ;;  %v4687_v12 = vrot.slane %v4643_v5, 9  ;;  %v2738_v19 = vrot.slane %v2736_v10, 4  ;;  %v4670_v39 = vld [vmem:[%s5281_s30 + $0x144] sm:$0xe]  ;;  %v4705_v62 = vld [vmem:[%s5281_s30 + $0x198] sm:$0xf] }
 0x157   : > { %1990 = vst.msk [vmem:[#allocation2 + $0x3c] sm:$0xf] %vm1974_vm9, %v1909_v25  ;;  %v1907_v31 = vpop.permute.xlu0 %1906  ;;  %v4695_v25 = vrot.slane %v4667_v18, 9  ;;  %v4696_v44 = vrot.slane %v4670_v39, 9  ;;  %v4742_v18 = vld [vmem:[%s5281_s30 + $0x1a4] sm:$0xf] }
 0x158   : > { %1989 = vst.msk [vmem:[#allocation2 + $0x38] sm:$0xf] %vm1974_vm9, %v1907_v31  ;;  %3902 = vrot.lane.b32.xlu1 %v3818_v16, %s5066_s23  ;;  %v4647_v16 = vld [vmem:[%s5281_s30 + $0xe8] sm:$0xf]  ;;  %v2681_v23 = vsel %vm5436_vm6, %v4687_v12, %v2680_v48  ;;  %v2740_v30 = vsel %vm5436_vm6, %v2738_v19, %v2739_v20  ;;  %v3220_v29 = vshrl.u32 %v4742_v18, 16 }
 0x159   : > { %3900 = vrot.lane.b32.xlu0 %v3815_v11, %s5066_s23  ;;  %v2687_v21 = vrot.slane %v4647_v16, 5  ;;  %v2737_v34 = vsel %vm5436_vm6, %v4695_v25, %v2736_v10  ;;  %v3215_v16 = vshll.u32 %v4741_v3, 16 }
 0x15a   : > { %v1913_v24 = vpop.permute.xlu1 %1912 }
 0x15b   : > { %1992 = vst.msk [vmem:[#allocation2 + $0x44] sm:$0xf] %vm1974_vm9, %v1913_v24  ;;  %v1911_v46 = vpop.permute.xlu0 %1910  ;;  %v2689_v31 = vrot.slane %v2687_v21, 4  ;;  %v2688_v43 = vsel %vm5436_vm6, %v4688_v36, %v2687_v21  ;;  %v4724_v36 = vld [vmem:[%s5281_s30 + $0x208] sm:$0xf] }
 0x15c   : > { %1991 = vst.msk [vmem:[#allocation2 + $0x40] sm:$0xf] %vm1974_vm9, %v1911_v46  ;;  %3874 = vrot.lane.b32.xlu1 %v3769_v32, %s5066_s23  ;;  %v2743_v32 = vrot.slane %v4671_v27, 5  ;;  %v4740_v46 = vld [vmem:[%s5281_s30 + $0x19c] sm:$0xf] }
 0x15d   : > { %3872 = vrot.lane.b32.xlu0 %v3766_v33, %s5066_s23  ;;  %v2691_v40 = vsel %vm5436_vm6, %v2689_v31, %v2690_v15  ;;  %v4767_v31 = vld [vmem:[%s5281_s30 + $0x208] sm:$0xf] }
 0x15e   : > { %v1917_v53 = vpop.permute.xlu1 %1916  ;;  %v2745_v24 = vrot.slane %v2743_v32, 4  ;;  %v2744_v51 = vsel %vm5436_vm6, %v4696_v44, %v2743_v32  ;;  %v3425_v44 = vshrl.u32 %v4767_v31, 16 }
 0x15f   : > { %1994 = vst.msk [vmem:[#allocation2 + $0x4c] sm:$0xf] %vm1974_vm9, %v1917_v53  ;;  %v1915_v59 = vpop.permute.xlu0 %1914  ;;  %v3205_v53 = vshll.u32 %v4740_v46, 16 }
 0x160   : > { %1993 = vst.msk [vmem:[#allocation2 + $0x48] sm:$0xf] %vm1974_vm9, %v1915_v59  ;;  %3906 = vrot.lane.b32.xlu1 %v3825_v47, %s5066_s23  ;;  %v4739_v47 = vld [vmem:[%s5281_s30 + $0x198] sm:$0xf]  ;;  %v2747_v49 = vsel %vm5436_vm6, %v2745_v24, %v2746_v41  ;;  %v4764_v59 = vld [vmem:[%s5281_s30 + $0x1fc] sm:$0xf] }
 0x161   : > { %3904 = vrot.lane.b32.xlu0 %v3822_v54, %s5066_s23  ;;  %v3209_v54 = vshrl.u32 %v4740_v46, 16  ;;  %v3196_v55 = vshrl.u32 %v4739_v47, 16  ;;  %v3199_v56 = vshll.u32 %v4739_v47, 16  ;;  %v3401_v5 = vshrl.u32 %v4764_v59, 16  ;;  %v4723_v24 = vld [vmem:[%s5281_s30 + $0x204] sm:$0xf] }
 0x162   : > { %v1921_v63 = vpop.permute.xlu1 %1920  ;;  %v4744_v46 = vld [vmem:[%s5281_s30 + $0x1ac] sm:$0x1]  ;;  %v3222_v47 = vrot.slane %v3220_v29, 4  ;;  %v4791_v29 = vld [vmem:[%s5281_s30 + $0x1a8] sm:$0xf] }
 0x163   : > { %1996 = vst.msk [vmem:[#allocation2 + $0x54] sm:$0xf] %vm1974_vm9, %v1921_v63  ;;  %v1919_v4 = vpop.permute.xlu0 %1918  ;;  %v6111_v63 = vrot.slane %v3205_v53, 5  ;;  %v3198_v1 = vrot.slane %v3196_v55, 4  ;;  %v3201_v2 = vrot.slane %v3199_v56, 5  ;;  %v3403_v19 = vrot.slane %v3401_v5, 4 }
 0x164   : > { %1995 = vst.msk [vmem:[#allocation2 + $0x50] sm:$0xf] %vm1974_vm9, %v1919_v4  ;;  %2481 = vrot.lane.b32.xlu1 %v2318_v60, %s5062_s7  ;;  %v4763_v60 = vld [vmem:[%s5281_s30 + $0x1f8] sm:$0xf]  ;;  %v3397_v4 = vshll.u32 %v4764_v59, 16  ;;  %v3239_v59 = vshll.u32 %v4744_v46, 16 }
 0x165   : > { %2479 = vrot.lane.b32.xlu0 %v2308_v0, %s5062_s7  ;;  %v3211_v0 = vrot.slane %v3209_v54, 4  ;;  %v3391_v8 = vshll.u32 %v4763_v60, 16 }
 0x166   : > { %v1925_v11 = vpop.permute.xlu1 %1924 }
 0x167   : > { %1998 = vst.msk [vmem:[#allocation2 + $0x5c] sm:$0xf] %vm1974_vm9, %v1925_v11  ;;  %v1923_v17 = vpop.permute.xlu0 %1922  ;;  %v4721_v11 = vld [vmem:[%s5281_s30 + $0x1f8] sm:$0xf]  ;;  %v3212_v14 = vor.u32 %v3211_v0, %v6111_v63  ;;  %v3393_v21 = vrot.slane %v3391_v8, 5 }
 0x168   : > { %1997 = vst.msk [vmem:[#allocation2 + $0x58] sm:$0xf] %vm1974_vm9, %v1923_v17  ;;  %2485 = vrot.lane.b32.xlu1 %v2342_v7, %s5062_s7  ;;  %v3388_v7 = vshrl.u32 %v4763_v60, 16  ;;  %v3202_v17 = vor.u32 %v3201_v2, %v3198_v1  ;;  %v4768_v1 = vld [vmem:[%s5281_s30 + $0x20c] sm:$0x1] }
 0x169   : > { %2483 = vrot.lane.b32.xlu0 %v2332_v58, %s5062_s7  ;;  %v4743_v58 = vld [vmem:[%s5281_s30 + $0x1a8] sm:$0xf]  ;;  %v3213_v32 = vrot.slane %v3212_v14, 4 }
 0x16a   : > { %v1929_v22 = vpop.permute.xlu1 %1928  ;;  %v3390_v20 = vrot.slane %v3388_v7, 4  ;;  %v3229_v25 = vshll.u32 %v4743_v58, 16  ;;  %v3233_v26 = vshrl.u32 %v4743_v58, 16  ;;  %v3203_v37 = vrot.slane %v3202_v17, 4 }
 0x16b   : > { %2000 = vst.msk [vmem:[#allocation2 + $0x64] sm:$0xf] %vm1974_vm9, %v1929_v22  ;;  %v1927_v28 = vpop.permute.xlu0 %1926  ;;  %v4708_v22 = vld [vmem:[%s5281_s30 + $0x1a8] sm:$0xf]  ;;  %v3241_v7 = vrot.slane %v3239_v59, 5 }
 0x16c   : > { %1999 = vst.msk [vmem:[#allocation2 + $0x60] sm:$0xf] %vm1974_vm9, %v1927_v28  ;;  %2786 = vrot.lane.b32.xlu1 %v2684_v13, %s5063_s8  ;;  %v6125_v13 = vrot.slane %v3397_v4, 5  ;;  %v4707_v28 = vld [vmem:[%s5281_s30 + $0x1a4] sm:$0xf]  ;;  %v6140_v41 = vrot.slane %v3229_v25, 5  ;;  %v3208_v54 = vsel %vm5292_vm2, %v3203_v37, %v6111_v63 }
 0x16d   : > { %2784 = vrot.lane.b32.xlu0 %v2681_v23, %s5063_s8  ;;  %v4765_v23 = vld [vmem:[%s5281_s30 + $0x200] sm:$0x1]  ;;  %v6178_v25 = vld [vmem:[%s5281_s30 + $0x1fc] sm:$0xf] }
 0x16e   : > { %v1933_v33 = vpop.permute.xlu1 %1932  ;;  %v3407_v39 = vshll.u32 %v4765_v23, 16  ;;  %v4789_v23 = vld [vmem:[%s5281_s30 + $0x1a0] sm:$0x1] }
 0x16f   : > { %2002 = vst.msk [vmem:[#allocation2 + $0x6c] sm:$0xf] %vm1974_vm9, %v1933_v33  ;;  %v1931_v38 = vpop.permute.xlu0 %1930  ;;  %v3217_v33 = vrot.slane %v3215_v16, 5 }
 0x170   : > { %2001 = vst.msk [vmem:[#allocation2 + $0x68] sm:$0xf] %vm1974_vm9, %v1931_v38  ;;  %2818 = vrot.lane.b32.xlu1 %v2740_v30, %s5063_s8  ;;  %v3223_v30 = vshll.u32 %v4742_v18, 16  ;;  %v3404_v38 = vor.u32 %v3403_v19, %v6125_v13  ;;  %v3409_v56 = vrot.slane %v3407_v39, 5  ;;  %v4811_v39 = vld [vmem:[%s5281_s30 + $0x1f8] sm:$0xe] }
 0x171   : > { %2816 = vrot.lane.b32.xlu0 %v2737_v34, %s5063_s8  ;;  %v4766_v34 = vld [vmem:[%s5281_s30 + $0x204] sm:$0xf]  ;;  %v3218_v53 = vsel %vm5292_vm2, %v3213_v32, %v3217_v33  ;;  %v4626_v32 = vld [vmem:[%s5281_s30 + $0x154] sm:$0xf]  ;;  %v4625_v33 = vld [vmem:[%s5281_s30 + $0x150] sm:$0xf] }
 0x172   : > { %v1937_v42 = vpop.permute.xlu1 %1936  ;;  %v3405_v55 = vrot.slane %v3404_v38, 4  ;;  %v4813_v38 = vld [vmem:[%s5281_s30 + $0x200] sm:$0x1]  ;;  %v2344_v46 = vshrl.u32 %v4625_v33, 16 }
 0x173   : > { %2004 = vst.msk [vmem:[#allocation2 + $0x74] sm:$0xf] %vm1974_vm9, %v1937_v42  ;;  %v1935_v45 = vpop.permute.xlu0 %1934  ;;  %v3235_v42 = vrot.slane %v3233_v26, 4 }
 0x174   : > { %2003 = vst.msk [vmem:[#allocation2 + $0x70] sm:$0xf] %vm1974_vm9, %v1935_v45  ;;  %2790 = vrot.lane.b32.xlu1 %v2691_v40, %s5063_s8  ;;  %v3394_v40 = vor.u32 %v3393_v21, %v3390_v20  ;;  %v3410_v4 = vsel %vm5292_vm2, %v3405_v55, %v3409_v56  ;;  %v4605_v55 = vld [vmem:[%s5281_s30 + $0x100] sm:$0xf] }
 0x175   : > { %2788 = vrot.lane.b32.xlu0 %v2688_v43, %s5063_s8  ;;  %v3421_v43 = vshll.u32 %v4767_v31, 16  ;;  %v3775_v31 = vrot.slane %v4789_v23, 5 }
 0x176   : > { %v1941_v50 = vpop.permute.xlu1 %1940 }
 0x177   : > { %2006 = vst.msk [vmem:[#allocation2 + $0x7c] sm:$0xf] %vm1974_vm9, %v1941_v50  ;;  %v1939_v52 = vpop.permute.xlu0 %1938  ;;  %v3412_v50 = vshrl.u32 %v4766_v34, 16  ;;  %v6153_v60 = vrot.slane %v3421_v43, 5  ;;  %v6202_v43 = vld [vmem:[%s5281_s30 + $0x208] sm:$0xf] }
 0x178   : > { %2005 = vst.msk [vmem:[#allocation2 + $0x78] sm:$0xf] %vm1974_vm9, %v1939_v52  ;;  %2822 = vrot.lane.b32.xlu1 %v2747_v49, %s5063_s8  ;;  %v3225_v49 = vrot.slane %v3223_v30, 5 }
 0x179   : > { %2820 = vrot.lane.b32.xlu0 %v2744_v51, %s5063_s8  ;;  %v3415_v51 = vshll.u32 %v4766_v34, 16  ;;  %v3414_v2 = vrot.slane %v3412_v50, 4 }
 0x17a   : > { %v2442_v61 = vpop.permute.xlu1 %2441  ;;  %v3226_v0 = vor.u32 %v3225_v49, %v3222_v47  ;;  %v2347_v47 = vshll.u32 %v4625_v33, 16 }
 0x17b   : > { %2537 = vst.msk [vmem:[#allocation2 + $0x4] sm:$0xf] %vm2535_vm11, %v2442_v61  ;;  %v2440_v48 = vpop.permute.xlu0 %2439  ;;  %v3427_v61 = vrot.slane %v3425_v44, 4  ;;  %v3417_v3 = vrot.slane %v3415_v51, 5  ;;  %v2353_v44 = vshll.u32 %v4626_v32, 16  ;;  %v3831_v51 = vrot.slane %v4813_v38, 5 }
 0x17c   : > { %2536 = vst.msk [vmem:[#allocation2] sm:$0xf] %vm2535_vm11, %v2440_v48  ;;  %2980 = vrot.lane.b32.xlu1 %v4706_v57, %s5064_s9  ;;  %v3236_v57 = vor.u32 %v3235_v42, %v6140_v41  ;;  %v3395_v48 = vrot.slane %v3394_v40, 4  ;;  %v4790_v42 = vld [vmem:[%s5281_s30 + $0x1a4] sm:$0xe] }
 0x17d   : > { %2978 = vrot.lane.b32.xlu0 %v4705_v62, %s5064_s9  ;;  %v3428_v8 = vor.u32 %v3427_v61, %v6153_v60  ;;  %v3418_v14 = vor.u32 %v3417_v3, %v3414_v2  ;;  %v3835_v61 = vrot.slane %v6202_v43, 5  ;;  %v2346_v2 = vrot.slane %v2344_v46, 4  ;;  %v4630_v46 = vld [vmem:[%s5281_s30 + $0x164] sm:$0x1] }
 0x17e   : > { %v2446_v10 = vpop.permute.xlu1 %2445  ;;  %v3237_v5 = vrot.slane %v3236_v57, 4  ;;  %v3400_v58 = vsel %vm5292_vm2, %v3395_v48, %v6125_v13  ;;  %v4816_v48 = vld [vmem:[%s5281_s30 + $0x20c] sm:$0x1]  ;;  %v2349_v3 = vrot.slane %v2347_v47, 5 }
 0x17f   : > { %2539 = vst.msk [vmem:[#allocation2 + $0xc] sm:$0xf] %vm2535_vm11, %v2446_v10  ;;  %v2444_v12 = vpop.permute.xlu0 %2443  ;;  %v4788_v10 = vld [vmem:[%s5281_s30 + $0x19c] sm:$0xf]  ;;  %v3429_v19 = vrot.slane %v3428_v8, 4  ;;  %v2189_v8 = vshrl.u32 %v4605_v55, 16 }
 0x180   : > { %2538 = vst.msk [vmem:[#allocation2 + $0x8] sm:$0xf] %vm2535_vm11, %v2444_v12  ;;  %3012 = vrot.lane.b32.xlu1 %v4722_v9, %s5064_s9  ;;  %v3431_v9 = vshll.u32 %v4768_v1, 16  ;;  %v3227_v12 = vrot.slane %v3226_v0, 4  ;;  %v3772_v17 = vrot.slane %v4788_v10, 5  ;;  %v3242_v18 = vsel %vm5292_vm2, %v3237_v5, %v3241_v7 }
 0x181   : > { %3010 = vrot.lane.b32.xlu0 %v4721_v11, %s5064_s9  ;;  %v6216_v0 = vrot.slane %v2353_v44, 5  ;;  %v4627_v5 = vld [vmem:[%s5281_s30 + $0x158] sm:$0x1]  ;;  %v2185_v7 = vshll.u32 %v4605_v55, 16  ;;  %v2350_v23 = vor.u32 %v2349_v3, %v2346_v2  ;;  %v2387_v55 = vshll.u32 %v4630_v46, 16 }
 0x182   : > { %v2450_v27 = vpop.permute.xlu1 %2449  ;;  %v3433_v13 = vrot.slane %v3431_v9, 5  ;;  %v3232_v21 = vsel %vm5292_vm2, %v3227_v12, %v6140_v41  ;;  %v3779_v41 = vrot.slane %v4791_v29, 5  ;;  %v4629_v12 = vld [vmem:[%s5281_s30 + $0x160] sm:$0xf] }
 0x183   : > { %2541 = vst.msk [vmem:[#allocation2 + $0x14] sm:$0xf] %vm2535_vm11, %v2450_v27  ;;  %v2448_v15 = vpop.permute.xlu0 %2447  ;;  %v4787_v27 = vld [vmem:[%s5281_s30 + $0x198] sm:$0xe]  ;;  %v2351_v44 = vrot.slane %v2350_v23, 4 }
 0x184   : > { %2540 = vst.msk [vmem:[#allocation2 + $0x10] sm:$0xf] %vm2535_vm11, %v2448_v15  ;;  %2984 = vrot.lane.b32.xlu1 %v4708_v22, %s5064_s9  ;;  %v3419_v22 = vrot.slane %v3418_v14, 4  ;;  %v3434_v30 = vsel %vm5292_vm2, %v3429_v19, %v3433_v13  ;;  %v3828_v15 = vrot.slane %v6178_v25, 5  ;;  %v4831_v37 = vrot.slane %v4787_v27, 9 }
 0x185   : > { %2982 = vrot.lane.b32.xlu0 %v4707_v28, %s5064_s9  ;;  %v3774_v28 = vrot.slane %v3772_v17, 4  ;;  %v3781_v57 = vrot.slane %v3779_v41, 4  ;;  %v3838_v19 = vrot.slane %v4816_v48, 5  ;;  %v4628_v13 = vld [vmem:[%s5281_s30 + $0x15c] sm:$0xf]  ;;  %v6236_v25 = vrot.slane %v2185_v7, 5 }
 0x186   : > { %v2454_v45 = vpop.permute.xlu1 %2453  ;;  %v3830_v50 = vrot.slane %v3828_v15, 4  ;;  %v2377_v27 = vshll.u32 %v4629_v12, 16  ;;  %v2371_v33 = vshll.u32 %v4628_v13, 16  ;;  %v4674_v7 = vld [vmem:[%s5281_s30 + $0x154] sm:$0xf] }
 0x187   : > { %2543 = vst.msk [vmem:[#allocation2 + $0x1c] sm:$0xf] %vm2535_vm11, %v2454_v45  ;;  %v2452_v52 = vpop.permute.xlu0 %2451  ;;  %v2357_v45 = vshrl.u32 %v4626_v32, 16  ;;  %v3776_v49 = vsel %vm5436_vm6, %v3774_v28, %v3775_v31  ;;  %v2381_v28 = vshrl.u32 %v4629_v12, 16  ;;  %v2368_v32 = vshrl.u32 %v4628_v13, 16 }
 0x188   : > { %2542 = vst.msk [vmem:[#allocation2 + $0x18] sm:$0xf] %vm2535_vm11, %v2452_v52  ;;  %3016 = vrot.lane.b32.xlu1 %v4724_v36, %s5064_s9  ;;  %v3424_v36 = vsel %vm5292_vm2, %v3419_v22, %v6153_v60  ;;  %v4832_v60 = vrot.slane %v4790_v42, 9  ;;  %v2363_v22 = vshll.u32 %v4627_v5, 16  ;;  %v4651_v5 = vld [vmem:[%s5281_s30 + $0xf8] sm:$0x1] }
 0x189   : > { %3014 = vrot.lane.b32.xlu0 %v4723_v24, %s5064_s9  ;;  %v4792_v24 = vld [vmem:[%s5281_s30 + $0x1ac] sm:$0x1]  ;;  %v2359_v1 = vrot.slane %v2357_v45, 4  ;;  %v2383_v42 = vrot.slane %v2381_v28, 4  ;;  %v2370_v47 = vrot.slane %v2368_v32, 4  ;;  %v2750_v12 = vrot.slane %v4674_v7, 5 }
 0x18a   : > { %v2458_v62 = vpop.permute.xlu1 %2457  ;;  %v3782_v59 = vrot.slane %v4792_v24, 5 }
 0x18b   : > { %2545 = vst.msk [vmem:[#allocation2 + $0x24] sm:$0xf] %vm2535_vm11, %v2458_v62  ;;  %v2456_v63 = vpop.permute.xlu0 %2455  ;;  %v4604_v62 = vld [vmem:[%s5281_s30 + $0xfc] sm:$0xf] }
 0x18c   : > { %2544 = vst.msk [vmem:[#allocation2 + $0x20] sm:$0xf] %vm2535_vm11, %v2456_v63  ;;  %3541 = vrot.lane.b32.xlu1 %v3218_v53, %s5065_s10  ;;  %v3773_v53 = vsel %vm5436_vm6, %v4831_v37, %v3772_v17  ;;  %v3832_v63 = vsel %vm5436_vm6, %v3830_v50, %v3831_v51  ;;  %v3780_v17 = vsel %vm5436_vm6, %v4832_v60, %v3779_v41  ;;  %v2379_v41 = vrot.slane %v2377_v27, 5 }
 0x18d   : > { %3539 = vrot.lane.b32.xlu0 %v3208_v54, %s5065_s10  ;;  %v4839_v54 = vrot.slane %v4811_v39, 9  ;;  %v2365_v39 = vrot.slane %v2363_v22, 5  ;;  %v2752_v22 = vrot.slane %v2750_v12, 4 }
 0x18e   : > { %v2474_v11 = vpop.permute.xlu1 %2473 }
 0x18f   : > { %2553 = vst.msk [vmem:[#allocation2 + $0x44] sm:$0xf] %vm2535_vm11, %v2474_v11  ;;  %v2472_v16 = vpop.permute.xlu0 %2471  ;;  %v3829_v10 = vsel %vm5436_vm6, %v4839_v54, %v3828_v15  ;;  %v2176_v11 = vshrl.u32 %v4604_v62, 16  ;;  %v2384_v54 = vor.u32 %v2383_v42, %v2379_v41 }
 0x190   : > { %2552 = vst.msk [vmem:[#allocation2 + $0x40] sm:$0xf] %vm2535_vm11, %v2472_v16  ;;  %3573 = vrot.lane.b32.xlu1 %v3410_v4, %s5065_s10  ;;  %v4814_v4 = vld [vmem:[%s5281_s30 + $0x204] sm:$0xe]  ;;  %v3783_v16 = vsel %vm5436_vm6, %v3781_v57, %v3782_v59  ;;  %v2356_v57 = vsel %vm5292_vm2, %v2351_v44, %v6216_v0 }
 0x191   : > { %3571 = vrot.lane.b32.xlu0 %v3400_v58, %s5065_s10  ;;  %v2179_v58 = vshll.u32 %v4604_v62, 16  ;;  %v2178_v31 = vrot.slane %v2176_v11, 4 }
 0x192   : > { %v2478_v20 = vpop.permute.xlu1 %2477 }
 0x193   : > { %2555 = vst.msk [vmem:[#allocation2 + $0x4c] sm:$0xf] %vm2535_vm11, %v2478_v20  ;;  %v2476_v26 = vpop.permute.xlu0 %2475  ;;  %v4840_v20 = vrot.slane %v4814_v4, 9  ;;  %v2181_v15 = vrot.slane %v2179_v58, 5  ;;  %v2697_v58 = vrot.slane %v4651_v5, 5 }
 0x194   : > { %2554 = vst.msk [vmem:[#allocation2 + $0x48] sm:$0xf] %vm2535_vm11, %v2476_v26  ;;  %3545 = vrot.lane.b32.xlu1 %v3242_v18, %s5065_s10  ;;  %v3837_v18 = vrot.slane %v3835_v61, 4  ;;  %v2191_v26 = vrot.slane %v2189_v8, 4 }
 0x195   : > { %3543 = vrot.lane.b32.xlu0 %v3232_v21, %s5065_s10  ;;  %v2360_v21 = vor.u32 %v2359_v1, %v6216_v0  ;;  %v3836_v37 = vsel %vm5436_vm6, %v4840_v20, %v3835_v61  ;;  %v2182_v45 = vor.u32 %v2181_v15, %v2178_v31  ;;  %v4650_v61 = vld [vmem:[%s5281_s30 + $0xf4] sm:$0xf]  ;;  %v2385_v1 = vrot.slane %v2384_v54, 4  ;;  %v4673_v20 = vld [vmem:[%s5281_s30 + $0x150] sm:$0xe] }
 0x196   : > { %v2779_v34 = vpop.permute.xlu1 %2778  ;;  %v2389_v0 = vrot.slane %v2387_v55, 5  ;;  %v2694_v2 = vrot.slane %v4650_v61, 5  ;;  %v4697_v28 = vrot.slane %v4673_v20, 9  ;;  %v4652_v15 = vld [vmem:[%s5281_s30 + $0xfc] sm:$0xe] }
 0x197   : > { %2874 = vst.msk [vmem:[#allocation2 + $0x4] sm:$0xf] %vm2872_vm12, %v2779_v34  ;;  %v2777_v40 = vpop.permute.xlu0 %2776  ;;  %v2361_v38 = vrot.slane %v2360_v21, 4  ;;  %v2183_v59 = vrot.slane %v2182_v45, 4  ;;  %v4710_v61 = vld [vmem:[%s5281_s30 + $0x1b4] sm:$0xf] }
 0x198   : > { %2873 = vst.msk [vmem:[#allocation2] sm:$0xf] %vm2872_vm12, %v2777_v40  ;;  %3577 = vrot.lane.b32.xlu1 %v3434_v30, %s5065_s10  ;;  %v4606_v30 = vld [vmem:[%s5281_s30 + $0x104] sm:$0x1]  ;;  %v2192_v40 = vor.u32 %v2191_v26, %v6236_v25  ;;  %v2696_v11 = vrot.slane %v2694_v2, 4 }
 0x199   : > { %3575 = vrot.lane.b32.xlu0 %v3424_v36, %s5065_s10  ;;  %v3839_v36 = vsel %vm5436_vm6, %v3837_v18, %v3838_v19  ;;  %v2195_v24 = vshll.u32 %v4606_v30, 16  ;;  %v2366_v51 = vsel %vm5292_vm2, %v2361_v38, %v2365_v39  ;;  %v4675_v18 = vld [vmem:[%s5281_s30 + $0x158] sm:$0x1]  ;;  %v4653_v19 = vld [vmem:[%s5281_s30 + $0x100] sm:$0xf]  ;;  %v2751_v38 = vsel %vm5436_vm6, %v4697_v28, %v2750_v12 }
 0x19a   : > { %v2811_v52 = vpop.permute.xlu1 %2810  ;;  %v2698_v21 = vsel %vm5436_vm6, %v2696_v11, %v2697_v58  ;;  %v2753_v23 = vrot.slane %v4675_v18, 5  ;;  %v4677_v30 = vld [vmem:[%s5281_s30 + $0x160] sm:$0xf]  ;;  %v4690_v39 = vrot.slane %v4652_v15, 9  ;;  %v4726_v58 = vld [vmem:[%s5281_s30 + $0x214] sm:$0xf] }
 0x19b   : > { %2890 = vst.msk [vmem:[#allocation2 + $0x44] sm:$0xf] %vm2872_vm12, %v2811_v52  ;;  %v2809_v56 = vpop.permute.xlu0 %2808  ;;  %v2193_v52 = vrot.slane %v2192_v40, 4  ;;  %v4678_v40 = vld [vmem:[%s5281_s30 + $0x164] sm:$0x1] }
 0x19c   : > { %2889 = vst.msk [vmem:[#allocation2 + $0x40] sm:$0xf] %vm2872_vm12, %v2809_v56  ;;  %3878 = vrot.lane.b32.xlu1 %v3776_v49, %s5066_s23  ;;  %v2373_v49 = vrot.slane %v2371_v33, 5  ;;  %v2754_v32 = vsel %vm5436_vm6, %v2752_v22, %v2753_v23  ;;  %v2760_v44 = vrot.slane %v4678_v40, 5  ;;  %v4711_v22 = vld [vmem:[%s5281_s30 + $0x1bc] sm:$0xf] }
 0x19d   : > { %3876 = vrot.lane.b32.xlu0 %v3773_v53, %s5066_s23  ;;  %v2197_v53 = vrot.slane %v2195_v24, 5  ;;  %v4728_v40 = vld [vmem:[%s5281_s30 + $0x220] sm:$0xf] }
 0x19e   : > { %v2783_v9 = vpop.permute.xlu1 %2782  ;;  %v2374_v60 = vor.u32 %v2373_v49, %v2370_v47 }
 0x19f   : > { %2876 = vst.msk [vmem:[#allocation2 + $0xc] sm:$0xf] %vm2872_vm12, %v2783_v9  ;;  %v2781_v14 = vpop.permute.xlu0 %2780  ;;  %v2198_v48 = vsel %vm5292_vm2, %v2193_v52, %v2197_v53  ;;  %v4649_v9 = vld [vmem:[%s5281_s30 + $0xf0] sm:$0xe] }
 0x1a0   : > { %2875 = vst.msk [vmem:[#allocation2 + $0x8] sm:$0xf] %vm2872_vm12, %v2781_v14  ;;  %3910 = vrot.lane.b32.xlu1 %v3832_v63, %s5066_s23  ;;  %v2188_v63 = vsel %vm5292_vm2, %v2183_v59, %v6236_v25  ;;  %v2375_v4 = vrot.slane %v2374_v60, 4  ;;  %v2701_v25 = vrot.slane %v4653_v19, 5  ;;  %v4712_v19 = vld [vmem:[%s5281_s30 + $0x1c0] sm:$0xf] }
 0x1a1   : > { %3908 = vrot.lane.b32.xlu0 %v3829_v10, %s5066_s23  ;;  %v2390_v10 = vsel %vm5292_vm2, %v2385_v1, %v2389_v0  ;;  %v4709_v0 = vld [vmem:[%s5281_s30 + $0x1b0] sm:$0xf] }
 0x1a2   : > { %v2815_v29 = vpop.permute.xlu1 %2814  ;;  %v2703_v33 = vrot.slane %v2701_v25, 4  ;;  %v2702_v46 = vsel %vm5436_vm6, %v4690_v39, %v2701_v25  ;;  %v4772_v39 = vld [vmem:[%s5281_s30 + $0x21c] sm:$0xf] }
 0x1a3   : > { %2892 = vst.msk [vmem:[#allocation2 + $0x4c] sm:$0xf] %vm2872_vm12, %v2815_v29  ;;  %v2813_v34 = vpop.permute.xlu0 %2812  ;;  %v4654_v29 = vld [vmem:[%s5281_s30 + $0x104] sm:$0x1] }
 0x1a4   : > { %2891 = vst.msk [vmem:[#allocation2 + $0x48] sm:$0xf] %vm2872_vm12, %v2813_v34  ;;  %3882 = vrot.lane.b32.xlu1 %v3783_v16, %s5066_s23  ;;  %v2380_v16 = vsel %vm5292_vm2, %v2375_v4, %v2379_v41  ;;  %v2704_v34 = vrot.slane %v4654_v29, 5  ;;  %v4676_v41 = vld [vmem:[%s5281_s30 + $0x15c] sm:$0xe] }
 0x1a5   : > { %3880 = vrot.lane.b32.xlu0 %v3780_v17, %s5066_s23  ;;  %v4689_v17 = vrot.slane %v4649_v9, 9  ;;  %v4698_v47 = vrot.slane %v4676_v41, 9  ;;  %v4771_v29 = vld [vmem:[%s5281_s30 + $0x218] sm:$0x1] }
 0x1a6   : > { %v2973_v43 = vpop.permute.xlu1 %2972  ;;  %v2705_v42 = vsel %vm5436_vm6, %v2703_v33, %v2704_v34  ;;  %v4773_v34 = vld [vmem:[%s5281_s30 + $0x220] sm:$0xf] }
 0x1a7   : > { %3068 = vst.msk [vmem:[#allocation2 + $0x4] sm:$0xf] %vm3066_vm13, %v2973_v43  ;;  %v2971_v50 = vpop.permute.xlu0 %2970  ;;  %v2695_v27 = vsel %vm5436_vm6, %v4689_v17, %v2694_v2  ;;  %v4747_v2 = vld [vmem:[%s5281_s30 + $0x1b8] sm:$0x1]  ;;  %v4749_v17 = vld [vmem:[%s5281_s30 + $0x1c0] sm:$0xf] }
 0x1a8   : > { %3067 = vst.msk [vmem:[#allocation2] sm:$0xf] %vm3066_vm13, %v2971_v50  ;;  %3914 = vrot.lane.b32.xlu1 %v3839_v36, %s5066_s23  ;;  %v2757_v36 = vrot.slane %v4677_v30, 5  ;;  %v4746_v50 = vld [vmem:[%s5281_s30 + $0x1b4] sm:$0xf]  ;;  %v3263_v12 = vshll.u32 %v4747_v2, 16 }
 0x1a9   : > { %3912 = vrot.lane.b32.xlu0 %v3836_v37, %s5066_s23  ;;  %v3277_v30 = vshll.u32 %v4749_v17, 16 }
 0x1aa   : > { %v3005_v56 = vpop.permute.xlu1 %3004  ;;  %v2759_v43 = vrot.slane %v2757_v36, 4  ;;  %v2758_v54 = vsel %vm5436_vm6, %v4698_v47, %v2757_v36  ;;  %v3265_v28 = vrot.slane %v3263_v12, 5 }
 0x1ab   : > { %3084 = vst.msk [vmem:[#allocation2 + $0x44] sm:$0xf] %vm3066_vm13, %v3005_v56  ;;  %v3003_v62 = vpop.permute.xlu0 %3002  ;;  %v3253_v56 = vshll.u32 %v4746_v50, 16 }
 0x1ac   : > { %3083 = vst.msk [vmem:[#allocation2 + $0x40] sm:$0xf] %vm3066_vm13, %v3003_v62  ;;  %2489 = vrot.lane.b32.xlu1 %v2366_v51, %s5062_s7  ;;  %v4745_v51 = vld [vmem:[%s5281_s30 + $0x1b0] sm:$0xf]  ;;  %v2761_v52 = vsel %vm5436_vm6, %v2759_v43, %v2760_v44  ;;  %v4770_v62 = vld [vmem:[%s5281_s30 + $0x214] sm:$0xf] }
 0x1ad   : > { %2487 = vrot.lane.b32.xlu0 %v2356_v57, %s5062_s7  ;;  %v3257_v57 = vshrl.u32 %v4746_v50, 16  ;;  %v3244_v59 = vshrl.u32 %v4745_v51, 16  ;;  %v3247_v60 = vshll.u32 %v4745_v51, 16  ;;  %v3449_v9 = vshrl.u32 %v4770_v62, 16 }
 0x1ae   : > { %v2977_v3 = vpop.permute.xlu1 %2976  ;;  %v3455_v43 = vshll.u32 %v4771_v29, 16  ;;  %v3473_v50 = vshrl.u32 %v4773_v34, 16 }
 0x1af   : > { %3070 = vst.msk [vmem:[#allocation2 + $0xc] sm:$0xf] %vm3066_vm13, %v2977_v3  ;;  %v2975_v8 = vpop.permute.xlu0 %2974  ;;  %v3259_v4 = vrot.slane %v3257_v57, 4  ;;  %v3246_v5 = vrot.slane %v3244_v59, 4  ;;  %v3249_v7 = vrot.slane %v3247_v60, 5  ;;  %v3451_v25 = vrot.slane %v3449_v9, 4 }
 0x1b0   : > { %3069 = vst.msk [vmem:[#allocation2 + $0x8] sm:$0xf] %vm3066_vm13, %v2975_v8  ;;  %2461 = vrot.lane.b32.xlu1 %v2198_v48, %s5062_s7  ;;  %v4769_v48 = vld [vmem:[%s5281_s30 + $0x210] sm:$0xf]  ;;  %v3445_v8 = vshll.u32 %v4770_v62, 16  ;;  %v3475_v2 = vrot.slane %v3473_v50, 4 }
 0x1b1   : > { %2459 = vrot.lane.b32.xlu0 %v2188_v63, %s5062_s7  ;;  %v6331_v63 = vrot.slane %v3253_v56, 5  ;;  %v3439_v11 = vshll.u32 %v4769_v48, 16  ;;  %v3250_v20 = vor.u32 %v3249_v7, %v3246_v5  ;;  %v4774_v7 = vld [vmem:[%s5281_s30 + $0x224] sm:$0x1] }
 0x1b2   : > { %v3009_v14 = vpop.permute.xlu1 %3008  ;;  %v6346_v23 = vrot.slane %v3445_v8, 5 }
 0x1b3   : > { %3086 = vst.msk [vmem:[#allocation2 + $0x4c] sm:$0xf] %vm3066_vm13, %v3009_v14  ;;  %v3007_v13 = vpop.permute.xlu0 %3006  ;;  %v3251_v41 = vrot.slane %v3250_v20, 4  ;;  %v4794_v20 = vld [vmem:[%s5281_s30 + $0x1b4] sm:$0xf] }
 0x1b4   : > { %3085 = vst.msk [vmem:[#allocation2 + $0x48] sm:$0xf] %vm3066_vm13, %v3007_v13  ;;  %2493 = vrot.lane.b32.xlu1 %v2390_v10, %s5062_s7  ;;  %v3436_v10 = vshrl.u32 %v4769_v48, 16  ;;  %v3260_v13 = vor.u32 %v3259_v4, %v6331_v63 }
 0x1b5   : > { %2491 = vrot.lane.b32.xlu0 %v2380_v16, %s5062_s7  ;;  %v4725_v16 = vld [vmem:[%s5281_s30 + $0x210] sm:$0xf]  ;;  %v3256_v4 = vsel %vm5292_vm2, %v3251_v41, %v6331_v63  ;;  %v6415_v41 = vld [vmem:[%s5281_s30 + $0x1c0] sm:$0xf] }
 0x1b6   : > { %v3534_v26 = vpop.permute.xlu1 %3533 }
 0x1b7   : > { %3629 = vst.msk [vmem:[#allocation2 + $0x4] sm:$0xf] %vm3627_vm14, %v3534_v26  ;;  %v3532_v31 = vpop.permute.xlu0 %3531  ;;  %v3438_v26 = vrot.slane %v3436_v10, 4 }
 0x1b8   : > { %3628 = vst.msk [vmem:[#allocation2] sm:$0xf] %vm3627_vm14, %v3532_v31  ;;  %2794 = vrot.lane.b32.xlu1 %v2698_v21, %s5063_s8  ;;  %v4748_v21 = vld [vmem:[%s5281_s30 + $0x1bc] sm:$0xf]  ;;  %v3281_v31 = vshrl.u32 %v4749_v17, 16 }
 0x1b9   : > { %2792 = vrot.lane.b32.xlu0 %v2695_v27, %s5063_s8  ;;  %v3441_v27 = vrot.slane %v3439_v11, 5  ;;  %v3271_v33 = vshll.u32 %v4748_v21, 16 }
 0x1ba   : > { %v3566_v37 = vpop.permute.xlu1 %3565  ;;  %v3283_v47 = vrot.slane %v3281_v31, 4 }
 0x1bb   : > { %3645 = vst.msk [vmem:[#allocation2 + $0x44] sm:$0xf] %vm3627_vm14, %v3566_v37  ;;  %v3564_v24 = vpop.permute.xlu0 %3563  ;;  %v3442_v44 = vor.u32 %v3441_v27, %v3438_v26  ;;  %v3786_v27 = vrot.slane %v4794_v20, 5 }
 0x1bc   : > { %3644 = vst.msk [vmem:[#allocation2 + $0x40] sm:$0xf] %vm3627_vm14, %v3564_v24  ;;  %2826 = vrot.lane.b32.xlu1 %v2754_v32, %s5063_s8  ;;  %v3268_v32 = vshrl.u32 %v4748_v21, 16  ;;  %v4727_v24 = vld [vmem:[%s5281_s30 + $0x21c] sm:$0xf] }
 0x1bd   : > { %2824 = vrot.lane.b32.xlu0 %v2751_v38, %s5063_s8  ;;  %v3261_v38 = vrot.slane %v3260_v13, 4  ;;  %v3443_v48 = vrot.slane %v3442_v44, 4 }
 0x1be   : > { %v3538_v45 = vpop.permute.xlu1 %3537 }
 0x1bf   : > { %3631 = vst.msk [vmem:[#allocation2 + $0xc] sm:$0xf] %vm3627_vm14, %v3538_v45  ;;  %v3536_v49 = vpop.permute.xlu0 %3535  ;;  %v4750_v45 = vld [vmem:[%s5281_s30 + $0x1c4] sm:$0x1]  ;;  %v3266_v59 = vsel %vm5292_vm2, %v3261_v38, %v3265_v28  ;;  %v6397_v28 = vld [vmem:[%s5281_s30 + $0x214] sm:$0xf] }
 0x1c0   : > { %3630 = vst.msk [vmem:[#allocation2 + $0x8] sm:$0xf] %vm3627_vm14, %v3536_v49  ;;  %2798 = vrot.lane.b32.xlu1 %v2705_v42, %s5063_s8  ;;  %v3452_v42 = vor.u32 %v3451_v25, %v6346_v23  ;;  %v3469_v49 = vshll.u32 %v4773_v34, 16  ;;  %v3287_v62 = vshll.u32 %v4750_v45, 16  ;;  %v3842_v34 = vrot.slane %v6397_v28, 5 }
 0x1c1   : > { %2796 = vrot.lane.b32.xlu0 %v2702_v46, %s5063_s8  ;;  %v6361_v46 = vrot.slane %v3277_v30, 5  ;;  %v4817_v45 = vld [vmem:[%s5281_s30 + $0x210] sm:$0xe] }
 0x1c2   : > { %v3570_v53 = vpop.permute.xlu1 %3569  ;;  %v3453_v60 = vrot.slane %v3452_v42, 4  ;;  %v3289_v12 = vrot.slane %v3287_v62, 5 }
 0x1c3   : > { %3647 = vst.msk [vmem:[#allocation2 + $0x4c] sm:$0xf] %vm3627_vm14, %v3570_v53  ;;  %v3568_v55 = vpop.permute.xlu0 %3567  ;;  %v3273_v53 = vrot.slane %v3271_v33, 5  ;;  %v4793_v33 = vld [vmem:[%s5281_s30 + $0x1b0] sm:$0xe] }
 0x1c4   : > { %3646 = vst.msk [vmem:[#allocation2 + $0x48] sm:$0xf] %vm3627_vm14, %v3568_v55  ;;  %2830 = vrot.lane.b32.xlu1 %v2761_v52, %s5063_s8  ;;  %v3270_v52 = vrot.slane %v3268_v32, 4  ;;  %v3463_v55 = vshll.u32 %v4772_v39, 16  ;;  %v4833_v44 = vrot.slane %v4793_v33, 9 }
 0x1c5   : > { %2828 = vrot.lane.b32.xlu0 %v2758_v54, %s5063_s8  ;;  %v3460_v54 = vshrl.u32 %v4772_v39, 16  ;;  %v3788_v39 = vrot.slane %v3786_v27, 4 }
 0x1c6   : > { %v3871_v1 = vpop.permute.xlu1 %3870  ;;  %v3274_v5 = vor.u32 %v3273_v53, %v3270_v52  ;;  %v3465_v9 = vrot.slane %v3463_v55, 5  ;;  %v3844_v53 = vrot.slane %v3842_v34, 4  ;;  %v3793_v55 = vrot.slane %v6415_v41, 5  ;;  %v4635_v41 = vld [vmem:[%s5281_s30 + $0x178] sm:$0xf] }
 0x1c7   : > { %3966 = vst.msk [vmem:[#allocation2 + $0x4] sm:$0xf] %vm3964_vm15, %v3871_v1  ;;  %v3869_v3 = vpop.permute.xlu0 %3868  ;;  %v3284_v1 = vor.u32 %v3283_v47, %v6361_v46  ;;  %v3462_v8 = vrot.slane %v3460_v54, 4  ;;  %v6423_v47 = vld [vmem:[%s5281_s30 + $0x220] sm:$0xf]  ;;  %v3787_v62 = vsel %vm5436_vm6, %v4833_v44, %v3786_v27 }
 0x1c8   : > { %3965 = vst.msk [vmem:[#allocation2] sm:$0xf] %vm3964_vm15, %v3869_v3  ;;  %2988 = vrot.lane.b32.xlu1 %v4710_v61, %s5064_s9  ;;  %v3457_v61 = vrot.slane %v3455_v43, 5 }
 0x1c9   : > { %2986 = vrot.lane.b32.xlu0 %v4709_v0, %s5064_s9  ;;  %v6371_v0 = vrot.slane %v3469_v49, 5  ;;  %v3285_v63 = vrot.slane %v3284_v1, 4  ;;  %v3466_v13 = vor.u32 %v3465_v9, %v3462_v8  ;;  %v4796_v1 = vld [vmem:[%s5281_s30 + $0x1bc] sm:$0xe] }
 0x1ca   : > { %v3903_v14 = vpop.permute.xlu1 %3902 }
 0x1cb   : > { %3982 = vst.msk [vmem:[#allocation2 + $0x44] sm:$0xf] %vm3964_vm15, %v3903_v14  ;;  %v3901_v18 = vpop.permute.xlu0 %3900  ;;  %v3476_v14 = vor.u32 %v3475_v2, %v6371_v0  ;;  %v3467_v31 = vrot.slane %v3466_v13, 4  ;;  %v3849_v2 = vrot.slane %v6423_v47, 5  ;;  %v4834_v13 = vrot.slane %v4796_v1, 9 }
 0x1cc   : > { %3981 = vst.msk [vmem:[#allocation2 + $0x40] sm:$0xf] %vm3964_vm15, %v3901_v18  ;;  %3020 = vrot.lane.b32.xlu1 %v4726_v58, %s5064_s9  ;;  %v3458_v58 = vsel %vm5292_vm2, %v3453_v60, %v3457_v61  ;;  %v3448_v18 = vsel %vm5292_vm2, %v3443_v48, %v6346_v23  ;;  %v3290_v23 = vsel %vm5292_vm2, %v3285_v63, %v3289_v12  ;;  %v4631_v60 = vld [vmem:[%s5281_s30 + $0x168] sm:$0xf]  ;;  %v4841_v48 = vrot.slane %v4817_v45, 9 }
 0x1cd   : > { %3018 = vrot.lane.b32.xlu0 %v4725_v16, %s5064_s9  ;;  %v3479_v16 = vshll.u32 %v4774_v7, 16  ;;  %v3477_v25 = vrot.slane %v3476_v14, 4  ;;  %v3472_v43 = vsel %vm5292_vm2, %v3467_v31, %v6371_v0  ;;  %v4822_v0 = vld [vmem:[%s5281_s30 + $0x224] sm:$0x1]  ;;  %v2392_v63 = vshrl.u32 %v4631_v60, 16 }
 0x1ce   : > { %v3875_v15 = vpop.permute.xlu1 %3874  ;;  %v2395_v12 = vshll.u32 %v4631_v60, 16  ;;  %v3851_v20 = vrot.slane %v3849_v2, 4  ;;  %v4634_v47 = vld [vmem:[%s5281_s30 + $0x174] sm:$0xf] }
 0x1cf   : > { %3968 = vst.msk [vmem:[#allocation2 + $0xc] sm:$0xf] %vm3964_vm15, %v3875_v15  ;;  %v3873_v36 = vpop.permute.xlu0 %3872  ;;  %v5002_v37 = vld [vmem:[#allocation2] sm:$0xff]   ;;  %v3481_v26 = vrot.slane %v3479_v16, 5  ;;  %v4795_v15 = vld [vmem:[%s5281_s30 + $0x1b8] sm:$0x1] }
 0x1d0   : > { %3967 = vst.msk [vmem:[#allocation2 + $0x8] sm:$0xf] %vm3964_vm15, %v3873_v36  ;;  %2992 = vrot.lane.b32.xlu1 %v4712_v19, %s5064_s9  ;;  %4909 = vmatprep.mubr.msk.bf16.mxu0 %vm4136_vm0, %v5002_v37  ;;  %v3275_v19 = vrot.slane %v3274_v5, 4  ;;  %v4608_v36 = vld [vmem:[%s5281_s30 + $0x10c] sm:$0xf]  ;;  %v3795_v16 = vrot.slane %v3793_v55, 4 }
 0x1d1   : > { %2990 = vrot.lane.b32.xlu0 %v4711_v22, %s5064_s9  ;;  %v4607_v37 = vld [vmem:[%s5281_s30 + $0x108] sm:$0xf]  ;;  %v3482_v38 = vsel %vm5292_vm2, %v3477_v25, %v3481_v26  ;;  %v2209_v49 = vshll.u32 %v4608_v36, 16  ;;  %v2213_v50 = vshrl.u32 %v4608_v36, 16 }
 0x1d2   : > { %v3907_v51 = vpop.permute.xlu1 %3906  ;;  %v3280_v30 = vsel %vm5292_vm2, %v3275_v19, %v6361_v46  ;;  %v2203_v52 = vshll.u32 %v4607_v37, 16  ;;  %v3843_v19 = vsel %vm5436_vm6, %v4841_v48, %v3842_v34  ;;  %v4633_v34 = vld [vmem:[%s5281_s30 + $0x170] sm:$0x1]  ;;  %v2419_v48 = vshll.u32 %v4634_v47, 16 }
 0x1d3   : > { %3984 = vst.msk [vmem:[#allocation2 + $0x4c] sm:$0xf] %vm3964_vm15, %v3907_v51  ;;  %v3905_v56 = vpop.permute.xlu0 %3904  ;;  %v5004_v57 = vld [vmem:[#allocation2 + $0x40] sm:$0xff]   ;;  %v2200_v51 = vshrl.u32 %v4607_v37, 16  ;;  %v6441_v5 = vrot.slane %v2209_v49, 5  ;;  %v2215_v7 = vrot.slane %v2213_v50, 4 }
 0x1d4   : > { %3983 = vst.msk [vmem:[#allocation2 + $0x48] sm:$0xf] %vm3964_vm15, %v3905_v56  ;;  %3024 = vrot.lane.b32.xlu1 %v4728_v40, %s5064_s9  ;;  %4925 = vmatprep.mubr.msk.bf16.mxu1 %vm4136_vm0, %v5004_v57  ;;  %v3789_v40 = vrot.slane %v4795_v15, 5  ;;  %v4798_v57 = vld [vmem:[%s5281_s30 + $0x1c4] sm:$0x1]  ;;  %v2205_v9 = vrot.slane %v2203_v52, 5 }
 0x1d5   : > { %3022 = vrot.lane.b32.xlu0 %v4727_v24, %s5064_s9  ;;  %v4819_v24 = vld [vmem:[%s5281_s30 + $0x218] sm:$0x1]  ;;  %v2202_v8 = vrot.slane %v2200_v51, 4  ;;  %v2216_v26 = vor.u32 %v2215_v7, %v6441_v5  ;;  %v2394_v15 = vrot.slane %v2392_v63, 4  ;;  %v2411_v51 = vshll.u32 %v4633_v34, 16 }
 0x1d6   : > { %v2482_v3 = vpop.permute.xlu1 %2481  ;;  %v3845_v54 = vrot.slane %v4819_v24, 5  ;;  %v3790_v56 = vsel %vm5436_vm6, %v3788_v39, %v3789_v40  ;;  %v3794_v39 = vsel %vm5436_vm6, %v4834_v13, %v3793_v55  ;;  %v2425_v55 = vshll.u32 %v4635_v41, 16  ;;  %v4657_v34 = vld [vmem:[%s5281_s30 + $0x110] sm:$0x1] }
 0x1d7   : > { %2557 = vst.msk [vmem:[#allocation2 + $0x54] sm:$0xf] %vm2535_vm11, %v2482_v3  ;;  %v2480_v10 = vpop.permute.xlu0 %2479  ;;  %v5005_v11 = vld [vmem:[#allocation2 + $0x8] sm:$0xff]   ;;  %v2206_v28 = vor.u32 %v2205_v9, %v2202_v8  ;;  %v2217_v45 = vrot.slane %v2216_v26, 4 }
 0x1d8   : > { %2556 = vst.msk [vmem:[#allocation2 + $0x50] sm:$0xf] %vm2535_vm11, %v2480_v10  ;;  %3549 = vrot.lane.b32.xlu1 %v3266_v59, %s5065_s10  ;;  %4910 = vmatmul.mubr.msk.bf16.vlgmr.msra.gmra.mxu0 %vm4136_vm0, %v5005_v11  ;;  %v4632_v59 = vld [vmem:[%s5281_s30 + $0x16c] sm:$0xf]  ;;  %v4609_v10 = vld [vmem:[%s5281_s30 + $0x110] sm:$0x1]  ;;  %v3846_v14 = vsel %vm5436_vm6, %v3844_v53, %v3845_v54 }
 0x1d9   : > { %3547 = vrot.lane.b32.xlu0 %v3256_v4, %s5065_s10  ;;  %v4820_v4 = vld [vmem:[%s5281_s30 + $0x21c] sm:$0xe]  ;;  %v2401_v11 = vshll.u32 %v4632_v59, 16  ;;  %v2219_v27 = vshll.u32 %v4609_v10, 16  ;;  %v2207_v49 = vrot.slane %v2206_v28, 4  ;;  %v2427_v9 = vrot.slane %v2425_v55, 5 }
 0x1da   : > { %v2486_v17 = vpop.permute.xlu1 %2485  ;;  %v4842_v25 = vrot.slane %v4820_v4, 9  ;;  %v2413_v4 = vrot.slane %v2411_v51, 5  ;;  %v4656_v26 = vld [vmem:[%s5281_s30 + $0x10c] sm:$0xf] }
 0x1db   : > { %2559 = vst.msk [vmem:[#allocation2 + $0x5c] sm:$0xf] %vm2535_vm11, %v2486_v17  ;;  %v2484_v21 = vpop.permute.xlu0 %2483  ;;  %v5006_v22 = vld [vmem:[#allocation2 + $0x48] sm:$0xff]   ;;  %v3796_v17 = vrot.slane %v4798_v57, 5 }
 0x1dc   : > { %2558 = vst.msk [vmem:[#allocation2 + $0x58] sm:$0xf] %vm2535_vm11, %v2484_v21  ;;  %3581 = vrot.lane.b32.xlu1 %v3458_v58, %s5065_s10  ;;  %4926 = vmatmul.mubr.msk.bf16.vlgmr.msra.gmra.mxu1 %vm4136_vm0, %v5006_v22  ;;  %v2405_v58 = vshrl.u32 %v4632_v59, 16  ;;  %v3852_v21 = vrot.slane %v4822_v0, 5  ;;  %v4611_v22 = vld [vmem:[%s5281_s30 + $0x118] sm:$0xf]  ;;  %v3850_v44 = vsel %vm5436_vm6, %v4842_v25, %v3849_v2  ;;  %v2212_v2 = vsel %vm5292_vm2, %v2207_v49, %v6441_v5 }
 0x1dd   : > { %3579 = vrot.lane.b32.xlu0 %v3448_v18, %s5065_s10  ;;  %v3797_v33 = vsel %vm5436_vm6, %v3795_v16, %v3796_v17  ;;  %v2233_v36 = vshll.u32 %v4611_v22, 16  ;;  %v2237_v37 = vshrl.u32 %v4611_v22, 16  ;;  %v4612_v59 = vld [vmem:[%s5281_s30 + $0x11c] sm:$0x1]  ;;  %v2421_v16 = vrot.slane %v2419_v48, 5 }
 0x1de   : > { %v2787_v29 = vpop.permute.xlu1 %2786  ;;  %v2407_v31 = vrot.slane %v2405_v58, 4  ;;  %v2243_v8 = vshll.u32 %v4612_v59, 16  ;;  %v4679_v49 = vld [vmem:[%s5281_s30 + $0x168] sm:$0xe]  ;;  %v4683_v59 = vld [vmem:[%s5281_s30 + $0x178] sm:$0xf] }
 0x1df   : > { %2878 = vst.msk [vmem:[#allocation2 + $0x14] sm:$0xf] %vm2872_vm12, %v2787_v29  ;;  %v2785_v32 = vpop.permute.xlu0 %2784  ;;  %v4610_v29 = vld [vmem:[%s5281_s30 + $0x114] sm:$0xf]  ;;  %v6476_v53 = vrot.slane %v2233_v36, 5  ;;  %v2239_v54 = vrot.slane %v2237_v37, 4 }
 0x1e0   : > { %2877 = vst.msk [vmem:[#allocation2 + $0x10] sm:$0xf] %vm2872_vm12, %v2785_v32  ;;  %3553 = vrot.lane.b32.xlu1 %v3290_v23, %s5065_s10  ;;  %v2397_v32 = vrot.slane %v2395_v12, 5  ;;  %v2224_v40 = vshrl.u32 %v4610_v29, 16  ;;  %v2227_v24 = vshll.u32 %v4610_v29, 16 }
 0x1e1   : > { %3551 = vrot.lane.b32.xlu0 %v3280_v30, %s5065_s10  ;;  %v6457_v30 = vrot.slane %v2401_v11, 5  ;;  %v2240_v7 = vor.u32 %v2239_v54, %v6476_v53  ;;  %v4636_v12 = vld [vmem:[%s5281_s30 + $0x17c] sm:$0x1]  ;;  %v4680_v36 = vld [vmem:[%s5281_s30 + $0x16c] sm:$0xf] }
 0x1e2   : > { %v2819_v42 = vpop.permute.xlu1 %2818  ;;  %v2398_v52 = vor.u32 %v2397_v32, %v2394_v15  ;;  %v2226_v60 = vrot.slane %v2224_v40, 4 }
 0x1e3   : > { %2894 = vst.msk [vmem:[#allocation2 + $0x54] sm:$0xf] %vm2872_vm12, %v2819_v42  ;;  %v2817_v46 = vpop.permute.xlu0 %2816  ;;  %v2408_v50 = vor.u32 %v2407_v31, %v6457_v30  ;;  %v2708_v31 = vrot.slane %v4656_v26, 5  ;;  %v4714_v26 = vld [vmem:[%s5281_s30 + $0x1cc] sm:$0xf] }
 0x1e4   : > { %2893 = vst.msk [vmem:[#allocation2 + $0x50] sm:$0xf] %vm2872_vm12, %v2817_v46  ;;  %3585 = vrot.lane.b32.xlu1 %v3482_v38, %s5065_s10  ;;  %v2221_v46 = vrot.slane %v2219_v27, 5  ;;  %v2399_v58 = vrot.slane %v2398_v52, 4 }
 0x1e5   : > { %3583 = vrot.lane.b32.xlu0 %v3472_v43, %s5065_s10  ;;  %v3853_v43 = vsel %vm5436_vm6, %v3851_v20, %v3852_v21  ;;  %v2435_v20 = vshll.u32 %v4636_v12, 16  ;;  %v2710_v40 = vrot.slane %v2708_v31, 4 }
 0x1e6   : > { %v2791_v61 = vpop.permute.xlu1 %2790  ;;  %v2222_v0 = vsel %vm5292_vm2, %v2217_v45, %v2221_v46  ;;  %v2404_v22 = vsel %vm5292_vm2, %v2399_v58, %v6457_v30  ;;  %v4681_v45 = vld [vmem:[%s5281_s30 + $0x170] sm:$0x1]  ;;  %v4659_v46 = vld [vmem:[%s5281_s30 + $0x118] sm:$0xf] }
 0x1e7   : > { %2880 = vst.msk [vmem:[#allocation2 + $0x1c] sm:$0xf] %vm2872_vm12, %v2791_v61  ;;  %v2789_v3 = vpop.permute.xlu0 %2788  ;;  %v2229_v61 = vrot.slane %v2227_v24, 5  ;;  %v2437_v30 = vrot.slane %v2435_v20, 5  ;;  %v2711_v24 = vrot.slane %v4657_v34, 5  ;;  %v2767_v52 = vrot.slane %v4681_v45, 5 }
 0x1e8   : > { %2879 = vst.msk [vmem:[#allocation2 + $0x18] sm:$0xf] %vm2872_vm12, %v2789_v3  ;;  %3886 = vrot.lane.b32.xlu1 %v3790_v56, %s5066_s23  ;;  %v2429_v56 = vshrl.u32 %v4635_v41, 16  ;;  %v2409_v3 = vrot.slane %v2408_v50, 4  ;;  %v2764_v41 = vrot.slane %v4680_v36, 5 }
 0x1e9   : > { %3884 = vrot.lane.b32.xlu0 %v3787_v62, %s5066_s23  ;;  %v2416_v62 = vshrl.u32 %v4634_v47, 16  ;;  %v2230_v63 = vor.u32 %v2229_v61, %v2226_v60  ;;  %v2712_v50 = vsel %vm5436_vm6, %v2710_v40, %v2711_v24  ;;  %v4658_v61 = vld [vmem:[%s5281_s30 + $0x114] sm:$0xe]  ;;  %v4755_v45 = vld [vmem:[%s5281_s30 + $0x1d8] sm:$0xf] }
 0x1ea   : > { %v2823_v18 = vpop.permute.xlu1 %2822  ;;  %v2431_v10 = vrot.slane %v2429_v56, 4  ;;  %v2414_v5 = vsel %vm5292_vm2, %v2409_v3, %v2413_v4  ;;  %v2766_v51 = vrot.slane %v2764_v41, 4  ;;  %v4699_v56 = vrot.slane %v4679_v49, 9  ;;  %v4716_v49 = vld [vmem:[%s5281_s30 + $0x1d8] sm:$0xf] }
 0x1eb   : > { %2896 = vst.msk [vmem:[#allocation2 + $0x5c] sm:$0xf] %vm2872_vm12, %v2823_v18  ;;  %v2821_v23 = vpop.permute.xlu0 %2820  ;;  %v2241_v18 = vrot.slane %v2240_v7, 4  ;;  %v4692_v4 = vrot.slane %v4658_v61, 9  ;;  %v4684_v7 = vld [vmem:[%s5281_s30 + $0x17c] sm:$0x1] }
 0x1ec   : > { %2895 = vst.msk [vmem:[#allocation2 + $0x58] sm:$0xf] %vm2872_vm12, %v2821_v23  ;;  %3918 = vrot.lane.b32.xlu1 %v3846_v14, %s5066_s23  ;;  %v2418_v14 = vrot.slane %v2416_v62, 4  ;;  %v2432_v13 = vor.u32 %v2431_v10, %v2427_v9  ;;  %v2231_v23 = vrot.slane %v2230_v63, 4  ;;  %v2768_v62 = vsel %vm5436_vm6, %v2766_v51, %v2767_v52  ;;  %v4754_v52 = vld [vmem:[%s5281_s30 + $0x1d4] sm:$0xf] }
 0x1ed   : > { %3916 = vrot.lane.b32.xlu0 %v3843_v19, %s5066_s23  ;;  %v2245_v19 = vrot.slane %v2243_v8, 5  ;;  %v2765_v3 = vsel %vm5436_vm6, %v4699_v56, %v2764_v41  ;;  %v2774_v58 = vrot.slane %v4684_v7, 5  ;;  %v4730_v41 = vld [vmem:[%s5281_s30 + $0x22c] sm:$0xf]  ;;  %v3325_v61 = vshll.u32 %v4755_v45, 16 }
 0x1ee   : > { %v2981_v38 = vpop.permute.xlu1 %2980  ;;  %v2422_v25 = vor.u32 %v2421_v16, %v2418_v14  ;;  %v2433_v29 = vrot.slane %v2432_v13, 4  ;;  %v2236_v32 = vsel %vm5292_vm2, %v2231_v23, %v6476_v53  ;;  %v2715_v53 = vrot.slane %v4659_v46, 5  ;;  %v4752_v16 = vld [vmem:[%s5281_s30 + $0x1cc] sm:$0xf] }
 0x1ef   : > { %3072 = vst.msk [vmem:[#allocation2 + $0x14] sm:$0xf] %vm3066_vm13, %v2981_v38  ;;  %v2979_v42 = vpop.permute.xlu0 %2978  ;;  %v2246_v28 = vsel %vm5292_vm2, %v2241_v18, %v2245_v19  ;;  %v4655_v38 = vld [vmem:[%s5281_s30 + $0x108] sm:$0xe]  ;;  %v3301_v19 = vshll.u32 %v4752_v16, 16  ;;  %v3305_v13 = vshrl.u32 %v4752_v16, 16 }
 0x1f0   : > { %3071 = vst.msk [vmem:[#allocation2 + $0x10] sm:$0xf] %vm3066_vm13, %v2979_v42  ;;  %3890 = vrot.lane.b32.xlu1 %v3797_v33, %s5066_s23  ;;  %v2423_v33 = vrot.slane %v2422_v25, 4  ;;  %v2717_v48 = vrot.slane %v2715_v53, 4  ;;  %v2716_v12 = vsel %vm5436_vm6, %v4692_v4, %v2715_v53  ;;  %v4715_v53 = vld [vmem:[%s5281_s30 + $0x1d4] sm:$0xf] }
 0x1f1   : > { %3888 = vrot.lane.b32.xlu0 %v3794_v39, %s5066_s23  ;;  %v2438_v39 = vsel %vm5292_vm2, %v2433_v29, %v2437_v30  ;;  %v4776_v29 = vld [vmem:[%s5281_s30 + $0x22c] sm:$0xf]  ;;  %v4775_v30 = vld [vmem:[%s5281_s30 + $0x228] sm:$0xf]  ;;  %v6604_v16 = vrot.slane %v3325_v61, 5 }
 0x1f2   : > { %v3013_v57 = vpop.permute.xlu1 %3012  ;;  %v3484_v40 = vshrl.u32 %v4775_v30, 16  ;;  %v3487_v24 = vshll.u32 %v4775_v30, 16  ;;  %v4824_v61 = vld [vmem:[%s5281_s30 + $0x22c] sm:$0xf] }
 0x1f3   : > { %3088 = vst.msk [vmem:[#allocation2 + $0x54] sm:$0xf] %vm3066_vm13, %v3013_v57  ;;  %v3011_v1 = vpop.permute.xlu0 %3010  ;;  %v4660_v57 = vld [vmem:[%s5281_s30 + $0x11c] sm:$0x1] }
 0x1f4   : > { %3087 = vst.msk [vmem:[#allocation2 + $0x50] sm:$0xf] %vm3066_vm13, %v3011_v1  ;;  %3922 = vrot.lane.b32.xlu1 %v3853_v43, %s5066_s23  ;;  %v2428_v43 = vsel %vm5292_vm2, %v2423_v33, %v2427_v9  ;;  %v2718_v1 = vrot.slane %v4660_v57, 5  ;;  %v4682_v9 = vld [vmem:[%s5281_s30 + $0x174] sm:$0xe]  ;;  %v3486_v56 = vrot.slane %v3484_v40, 4 }
 0x1f5   : > { %3920 = vrot.lane.b32.xlu0 %v3850_v44, %s5066_s23  ;;  %v4691_v44 = vrot.slane %v4655_v38, 9  ;;  %v4700_v14 = vrot.slane %v4682_v9, 9  ;;  %v3493_v38 = vshll.u32 %v4776_v29, 16  ;;  %v3489_v57 = vrot.slane %v3487_v24, 5  ;;  %v4732_v9 = vld [vmem:[%s5281_s30 + $0x238] sm:$0xf] }
 0x1f6   : > { %v2985_v11 = vpop.permute.xlu1 %2984  ;;  %v2719_v10 = vsel %vm5436_vm6, %v2717_v48, %v2718_v1  ;;  %v3316_v1 = vshrl.u32 %v4754_v52, 16 }
 0x1f7   : > { %3074 = vst.msk [vmem:[#allocation2 + $0x1c] sm:$0xf] %vm3066_vm13, %v2985_v11  ;;  %v2983_v17 = vpop.permute.xlu0 %2982  ;;  %v2709_v55 = vsel %vm5436_vm6, %v4691_v44, %v2708_v31  ;;  %v4729_v44 = vld [vmem:[%s5281_s30 + $0x228] sm:$0xf] }
 0x1f8   : > { %3073 = vst.msk [vmem:[#allocation2 + $0x18] sm:$0xf] %vm3066_vm13, %v2983_v17  ;;  %2465 = vrot.lane.b32.xlu1 %v2222_v0, %s5062_s7  ;;  %v2771_v0 = vrot.slane %v4683_v59, 5 }
 0x1f9   : > { %2463 = vrot.lane.b32.xlu0 %v2212_v2, %s5062_s7 }
 0x1fa   : > { %v3017_v21 = vpop.permute.xlu1 %3016  ;;  %v2773_v11 = vrot.slane %v2771_v0, 4 }
 0x1fb   : > { %3090 = vst.msk [vmem:[#allocation2 + $0x5c] sm:$0xf] %vm3066_vm13, %v3017_v21  ;;  %v3015_v27 = vpop.permute.xlu0 %3014  ;;  %v2772_v21 = vsel %vm5436_vm6, %v4700_v14, %v2771_v0  ;;  %v3319_v0 = vshll.u32 %v4754_v52, 16  ;;  %v4756_v14 = vld [vmem:[%s5281_s30 + $0x1dc] sm:$0x1] }
 0x1fc   : > { %3089 = vst.msk [vmem:[#allocation2 + $0x58] sm:$0xf] %vm3066_vm13, %v3015_v27  ;;  %2497 = vrot.lane.b32.xlu1 %v2414_v5, %s5062_s7  ;;  %v4751_v5 = vld [vmem:[%s5281_s30 + $0x1c8] sm:$0xf]  ;;  %v2775_v18 = vsel %vm5436_vm6, %v2773_v11, %v2774_v58  ;;  %v6567_v27 = vrot.slane %v3301_v19, 5 }
 0x1fd   : > { %2495 = vrot.lane.b32.xlu0 %v2404_v22, %s5062_s7  ;;  %v3292_v23 = vshrl.u32 %v4751_v5, 16  ;;  %v3295_v25 = vshll.u32 %v4751_v5, 16 }
 0x1fe   : > { %v3542_v15 = vpop.permute.xlu1 %3541 }
 0x1ff   : > { %3633 = vst.msk [vmem:[#allocation2 + $0x14] sm:$0xf] %vm3627_vm14, %v3542_v15  ;;  %v3540_v37 = vpop.permute.xlu0 %3539  ;;  %v4713_v15 = vld [vmem:[%s5281_s30 + $0x1c8] sm:$0xf]  ;;  %v3294_v34 = vrot.slane %v3292_v23, 4  ;;  %v3297_v36 = vrot.slane %v3295_v25, 5 }
 0x200   : > { %3632 = vst.msk [vmem:[#allocation2 + $0x10] sm:$0xf] %vm3627_vm14, %v3540_v37  ;;  %2469 = vrot.lane.b32.xlu1 %v2246_v28, %s5062_s7  ;;  %v3307_v28 = vrot.slane %v3305_v13, 4  ;;  %v4753_v37 = vld [vmem:[%s5281_s30 + $0x1d0] sm:$0x1]  ;;  %v3318_v13 = vrot.slane %v3316_v1, 4 }
 0x201   : > { %2467 = vrot.lane.b32.xlu0 %v2236_v32, %s5062_s7  ;;  %v3298_v51 = vor.u32 %v3297_v36, %v3294_v34 }
 0x202   : > { %v3574_v42 = vpop.permute.xlu1 %3573 }
 0x203   : > { %3649 = vst.msk [vmem:[#allocation2 + $0x54] sm:$0xf] %vm3627_vm14, %v3574_v42  ;;  %v3572_v47 = vpop.permute.xlu0 %3571  ;;  %v3308_v42 = vor.u32 %v3307_v28, %v6567_v27  ;;  %v3299_v11 = vrot.slane %v3298_v51, 4 }
 0x204   : > { %3648 = vst.msk [vmem:[#allocation2 + $0x50] sm:$0xf] %vm3627_vm14, %v3572_v47  ;;  %2501 = vrot.lane.b32.xlu1 %v2438_v39, %s5062_s7  ;;  %v3497_v39 = vshrl.u32 %v4776_v29, 16 }
 0x205   : > { %2499 = vrot.lane.b32.xlu0 %v2428_v43, %s5062_s7  ;;  %v3309_v59 = vrot.slane %v3308_v42, 4  ;;  %v3304_v28 = vsel %vm5292_vm2, %v3299_v11, %v6567_v27 }
 0x206   : > { %v3546_v54 = vpop.permute.xlu1 %3545 }
 0x207   : > { %3635 = vst.msk [vmem:[#allocation2 + $0x1c] sm:$0xf] %vm3627_vm14, %v3546_v54  ;;  %v3544_v60 = vpop.permute.xlu0 %3543  ;;  %v6588_v54 = vrot.slane %v3493_v38, 5  ;;  %v4780_v38 = vld [vmem:[%s5281_s30 + $0x23c] sm:$0x1] }
 0x208   : > { %3634 = vst.msk [vmem:[#allocation2 + $0x18] sm:$0xf] %vm3627_vm14, %v3544_v60  ;;  %2802 = vrot.lane.b32.xlu1 %v2712_v50, %s5063_s8  ;;  %v3311_v50 = vshll.u32 %v4753_v37, 16  ;;  %v4777_v60 = vld [vmem:[%s5281_s30 + $0x230] sm:$0x1] }
 0x209   : > { %2800 = vrot.lane.b32.xlu0 %v2709_v55, %s5063_s8  ;;  %v3499_v55 = vrot.slane %v3497_v39, 4 }
 0x20a   : > { %v3578_v2 = vpop.permute.xlu1 %3577  ;;  %v3313_v7 = vrot.slane %v3311_v50, 5  ;;  %v4800_v50 = vld [vmem:[%s5281_s30 + $0x1cc] sm:$0xf] }
 0x20b   : > { %3651 = vst.msk [vmem:[#allocation2 + $0x5c] sm:$0xf] %vm3627_vm14, %v3578_v2  ;;  %v3576_v8 = vpop.permute.xlu0 %3575  ;;  %v4779_v2 = vld [vmem:[%s5281_s30 + $0x238] sm:$0xf]  ;;  %v3500_v58 = vor.u32 %v3499_v55, %v6588_v54  ;;  %v3800_v55 = vrot.slane %v4800_v50, 5 }
 0x20c   : > { %3650 = vst.msk [vmem:[#allocation2 + $0x58] sm:$0xf] %vm3627_vm14, %v3576_v8  ;;  %2834 = vrot.lane.b32.xlu1 %v2768_v62, %s5063_s8  ;;  %v3329_v62 = vshrl.u32 %v4755_v45, 16  ;;  %v4778_v8 = vld [vmem:[%s5281_s30 + $0x234] sm:$0xf]  ;;  %v3517_v5 = vshll.u32 %v4779_v2, 16 }
 0x20d   : > { %2832 = vrot.lane.b32.xlu0 %v2765_v3, %s5063_s8  ;;  %v3501_v29 = vrot.slane %v3500_v58, 4  ;;  %v4823_v58 = vld [vmem:[%s5281_s30 + $0x228] sm:$0xe] }
 0x20e   : > { %v3879_v63 = vpop.permute.xlu1 %3878 }
 0x20f   : > { %3970 = vst.msk [vmem:[#allocation2 + $0x14] sm:$0xf] %vm3964_vm15, %v3879_v63  ;;  %v3877_v17 = vpop.permute.xlu0 %3876  ;;  %v3503_v63 = vshll.u32 %v4777_v60, 16  ;;  %v4801_v60 = vld [vmem:[%s5281_s30 + $0x1d0] sm:$0x1] }
 0x210   : > { %3969 = vst.msk [vmem:[#allocation2 + $0x10] sm:$0xf] %vm3964_vm15, %v3877_v17  ;;  %2806 = vrot.lane.b32.xlu1 %v2719_v10, %s5063_s8  ;;  %v4731_v10 = vld [vmem:[%s5281_s30 + $0x234] sm:$0xf]  ;;  %v3331_v17 = vrot.slane %v3329_v62, 4 }
 0x211   : > { %2804 = vrot.lane.b32.xlu0 %v2716_v12, %s5063_s8  ;;  %v3490_v12 = vor.u32 %v3489_v57, %v3486_v56  ;;  %v3505_v30 = vrot.slane %v3503_v63, 5 }
 0x212   : > { %v3911_v20 = vpop.permute.xlu1 %3910 }
 0x213   : > { %3986 = vst.msk [vmem:[#allocation2 + $0x54] sm:$0xf] %vm3964_vm15, %v3911_v20  ;;  %v3909_v22 = vpop.permute.xlu0 %3908  ;;  %v3321_v20 = vrot.slane %v3319_v0, 5  ;;  %v3491_v36 = vrot.slane %v3490_v12, 4  ;;  %v3506_v24 = vsel %vm5292_vm2, %v3501_v29, %v3505_v30  ;;  %v3802_v0 = vrot.slane %v3800_v55, 4 }
 0x214   : > { %3985 = vst.msk [vmem:[#allocation2 + $0x50] sm:$0xf] %vm3964_vm15, %v3909_v22  ;;  %2838 = vrot.lane.b32.xlu1 %v2775_v18, %s5063_s8  ;;  %v3521_v18 = vshrl.u32 %v4779_v2, 16  ;;  %v3511_v22 = vshll.u32 %v4778_v8, 16  ;;  %v3803_v2 = vrot.slane %v4801_v60, 5 }
 0x215   : > { %2836 = vrot.lane.b32.xlu0 %v2772_v21, %s5063_s8  ;;  %v3508_v21 = vshrl.u32 %v4778_v8, 16  ;;  %v3322_v37 = vor.u32 %v3321_v20, %v3318_v13  ;;  %v4802_v20 = vld [vmem:[%s5281_s30 + $0x1d4] sm:$0xe]  ;;  %v4828_v30 = vld [vmem:[%s5281_s30 + $0x23c] sm:$0x1] }
 0x216   : > { %v3883_v31 = vpop.permute.xlu1 %3882  ;;  %v3513_v40 = vrot.slane %v3511_v22, 5  ;;  %v3804_v35 = vsel %vm5436_vm6, %v3802_v0, %v3803_v2  ;;  %v4836_v29 = vrot.slane %v4802_v20, 9 }
 0x217   : > { %3972 = vst.msk [vmem:[#allocation2 + $0x1c] sm:$0xf] %vm3964_vm15, %v3883_v31  ;;  %v3881_v32 = vpop.permute.xlu0 %3880  ;;  %v5007_v33 = vld [vmem:[#allocation2 + $0x10] sm:$0xff]   ;;  %v3332_v31 = vor.u32 %v3331_v17, %v6604_v16  ;;  %v3510_v39 = vrot.slane %v3508_v21, 4 }
 0x218   : > { %3971 = vst.msk [vmem:[#allocation2 + $0x18] sm:$0xf] %vm3964_vm15, %v3881_v32  ;;  %2996 = vrot.lane.b32.xlu1 %v4714_v26, %s5064_s9  ;;  %4913 = vmatprep.mubr.msk.bf16.mxu0 %vm4136_vm0, %v5007_v33  ;;  %v3314_v26 = vsel %vm5292_vm2, %v3309_v59, %v3313_v7  ;;  %v3519_v32 = vrot.slane %v3517_v5, 5  ;;  %v3523_v33 = vrot.slane %v3521_v18, 4  ;;  %v4843_v5 = vrot.slane %v4823_v58, 9 }
 0x219   : > { %2994 = vrot.lane.b32.xlu0 %v4713_v15, %s5064_s9  ;;  %v3335_v15 = vshll.u32 %v4756_v14, 16  ;;  %v4804_v18 = vld [vmem:[%s5281_s30 + $0x1dc] sm:$0x1] }
 0x21a   : > { %v3915_v43 = vpop.permute.xlu1 %3914 }
 0x21b   : > { %3988 = vst.msk [vmem:[#allocation2 + $0x5c] sm:$0xf] %vm3964_vm15, %v3915_v43  ;;  %v3913_v46 = vpop.permute.xlu0 %3912  ;;  %v5008_v47 = vld [vmem:[#allocation2 + $0x50] sm:$0xff]   ;;  %v3337_v42 = vrot.slane %v3335_v15, 5  ;;  %v3524_v43 = vor.u32 %v3523_v33, %v3519_v32 }
 0x21c   : > { %3987 = vst.msk [vmem:[#allocation2 + $0x58] sm:$0xf] %vm3964_vm15, %v3913_v46  ;;  %3028 = vrot.lane.b32.xlu1 %v4730_v41, %s5064_s9  ;;  %4929 = vmatprep.mubr.msk.bf16.mxu1 %vm4136_vm0, %v5008_v47  ;;  %v3333_v41 = vrot.slane %v3332_v31, 4  ;;  %v3496_v46 = vsel %vm5292_vm2, %v3491_v36, %v6588_v54  ;;  %v3323_v47 = vrot.slane %v3322_v37, 4  ;;  %v4826_v15 = vld [vmem:[%s5281_s30 + $0x234] sm:$0xe] }
 0x21d   : > { %3026 = vrot.lane.b32.xlu0 %v4729_v44, %s5064_s9  ;;  %v3527_v44 = vshll.u32 %v4780_v38, 16  ;;  %v4844_v38 = vrot.slane %v4826_v15, 9 }
 0x21e   : > { %v2490_v48 = vpop.permute.xlu1 %2489  ;;  %v3338_v52 = vsel %vm5292_vm2, %v3333_v41, %v3337_v42  ;;  %v3328_v57 = vsel %vm5292_vm2, %v3323_v47, %v6604_v16 }
 0x21f   : > { %2561 = vst.msk [vmem:[#allocation2 + $0x64] sm:$0xf] %vm2535_vm11, %v2490_v48  ;;  %v2488_v3 = vpop.permute.xlu0 %2487  ;;  %v5009_v4 = vld [vmem:[#allocation2 + $0x18] sm:$0xff]   ;;  %v3529_v54 = vrot.slane %v3527_v44, 5  ;;  %v4799_v48 = vld [vmem:[%s5281_s30 + $0x1c8] sm:$0xe] }
 0x220   : > { %2560 = vst.msk [vmem:[#allocation2 + $0x60] sm:$0xf] %vm2535_vm11, %v2488_v3  ;;  %3000 = vrot.lane.b32.xlu1 %v4716_v49, %s5064_s9  ;;  %4914 = vmatmul.mubr.msk.bf16.gmra.mxu0 %vm4136_vm0, %v5009_v4  ;;  %v3514_v49 = vor.u32 %v3513_v40, %v3510_v39  ;;  %v3856_v3 = vrot.slane %v4824_v61, 5  ;;  %v4835_v8 = vrot.slane %v4799_v48, 9 }
 0x221   : > { %2998 = vrot.lane.b32.xlu0 %v4715_v53, %s5064_s9  ;;  %v3525_v53 = vrot.slane %v3524_v43, 4 }
 0x222   : > { %v2462_v19 = vpop.permute.xlu1 %2461  ;;  %v3515_v59 = vrot.slane %v3514_v49, 4  ;;  %v3858_v63 = vrot.slane %v3856_v3, 4  ;;  %v3801_v17 = vsel %vm5436_vm6, %v4835_v8, %v3800_v55 }
 0x223   : > { %2547 = vst.msk [vmem:[#allocation2 + $0x2c] sm:$0xf] %vm2535_vm11, %v2462_v19  ;;  %v2460_v23 = vpop.permute.xlu0 %2459  ;;  %v5010_v25 = vld [vmem:[#allocation2 + $0x58] sm:$0xff]   ;;  %v3530_v1 = vsel %vm5292_vm2, %v3525_v53, %v3529_v54 }
 0x224   : > { %2546 = vst.msk [vmem:[#allocation2 + $0x28] sm:$0xf] %vm2535_vm11, %v2460_v23  ;;  %3032 = vrot.lane.b32.xlu1 %v4732_v9, %s5064_s9  ;;  %4930 = vmatmul.mubr.msk.bf16.gmra.mxu1 %vm4136_vm0, %v5010_v25  ;;  %v3520_v7 = vsel %vm5292_vm2, %v3515_v59, %v3519_v32  ;;  %v4825_v9 = vld [vmem:[%s5281_s30 + $0x230] sm:$0x1]  ;;  %v4827_v19 = vld [vmem:[%s5281_s30 + $0x238] sm:$0xf] }
 0x225   : > { %3030 = vrot.lane.b32.xlu0 %v4731_v10, %s5064_s9  ;;  %v4803_v10 = vld [vmem:[%s5281_s30 + $0x1d8] sm:$0xf]  ;;  %v3859_v12 = vrot.slane %v4825_v9, 5  ;;  %v3810_v23 = vrot.slane %v4804_v18, 5  ;;  %v3863_v25 = vrot.slane %v4827_v19, 5 }
 0x226   : > { %v2494_v34 = vpop.permute.xlu1 %2493  ;;  %v3807_v14 = vrot.slane %v4803_v10, 5 }
 0x227   : > { %2563 = vst.msk [vmem:[#allocation2 + $0x6c] sm:$0xf] %vm2535_vm11, %v2494_v34  ;;  %v2492_v27 = vpop.permute.xlu0 %2491  ;;  %v3860_v21 = vsel %vm5436_vm6, %v3858_v63, %v3859_v12  ;;  %v3865_v33 = vrot.slane %v3863_v25, 4  ;;  %v3866_v34 = vrot.slane %v4828_v30, 5 }
 0x228   : > { %2562 = vst.msk [vmem:[#allocation2 + $0x68] sm:$0xf] %vm2535_vm11, %v2492_v27  ;;  %3557 = vrot.lane.b32.xlu1 %v3314_v26, %s5065_s10  ;;  %v3809_v22 = vrot.slane %v3807_v14, 4  ;;  %v3808_v37 = vsel %vm5436_vm6, %v4836_v29, %v3807_v14 }
 0x229   : > { %3555 = vrot.lane.b32.xlu0 %v3304_v28, %s5065_s10  ;;  %v3857_v28 = vsel %vm5436_vm6, %v4843_v5, %v3856_v3  ;;  %v3867_v40 = vsel %vm5436_vm6, %v3865_v33, %v3866_v34 }
 0x22a   : > { %v2795_v45 = vpop.permute.xlu1 %2794  ;;  %v3811_v32 = vsel %vm5436_vm6, %v3809_v22, %v3810_v23 }
 0x22b   : > { %2882 = vst.msk [vmem:[#allocation2 + $0x24] sm:$0xf] %vm2872_vm12, %v2795_v45  ;;  %v2793_v51 = vpop.permute.xlu0 %2792 }
 0x22c   : > { %2881 = vst.msk [vmem:[#allocation2 + $0x20] sm:$0xf] %vm2872_vm12, %v2793_v51  ;;  %3589 = vrot.lane.b32.xlu1 %v3506_v24, %s5065_s10  ;;  %v3864_v24 = vsel %vm5436_vm6, %v4844_v38, %v3863_v25  ;;  %v6741_v25 = vld [vmem:[%s6850_s2] ss:$0 sm:$0xff] }
 0x22d   : > { %3587 = vrot.lane.b32.xlu0 %v3496_v46, %s5065_s10 }
 0x22e   : > { %v2827_v56 = vpop.permute.xlu1 %2826 }
 0x22f   : > { %2898 = vst.msk [vmem:[#allocation2 + $0x64] sm:$0xf] %vm2872_vm12, %v2827_v56  ;;  %v2825_v62 = vpop.permute.xlu0 %2824 }
 0x230   : > { %2897 = vst.msk [vmem:[#allocation2 + $0x60] sm:$0xf] %vm2872_vm12, %v2825_v62  ;;  %3561 = vrot.lane.b32.xlu1 %v3338_v52, %s5065_s10 }
 0x231   : > { %3559 = vrot.lane.b32.xlu0 %v3328_v57, %s5065_s10 }
 0x232   : > { %v2799_v4 = vpop.permute.xlu1 %2798 }
 0x233   : > { %2884 = vst.msk [vmem:[#allocation2 + $0x2c] sm:$0xf] %vm2872_vm12, %v2799_v4  ;;  %v2797_v11 = vpop.permute.xlu0 %2796 }
 0x234   : > { %2883 = vst.msk [vmem:[#allocation2 + $0x28] sm:$0xf] %vm2872_vm12, %v2797_v11  ;;  %3593 = vrot.lane.b32.xlu1 %v3530_v1, %s5065_s10 }
 0x235   : > { %3591 = vrot.lane.b32.xlu0 %v3520_v7, %s5065_s10 }
 0x236   : > { %v2831_v16 = vpop.permute.xlu1 %2830 }
 0x237   : > { %2900 = vst.msk [vmem:[#allocation2 + $0x6c] sm:$0xf] %vm2872_vm12, %v2831_v16  ;;  %v2829_v13 = vpop.permute.xlu0 %2828 }
 0x238   : > { %2899 = vst.msk [vmem:[#allocation2 + $0x68] sm:$0xf] %vm2872_vm12, %v2829_v13  ;;  %3894 = vrot.lane.b32.xlu1 %v3804_v35, %s5066_s23 }
 0x239   : > { %3892 = vrot.lane.b32.xlu0 %v3801_v17, %s5066_s23 }
 0x23a   : > { %v2989_v26 = vpop.permute.xlu1 %2988 }
 0x23b   : > { %3076 = vst.msk [vmem:[#allocation2 + $0x24] sm:$0xf] %vm3066_vm13, %v2989_v26  ;;  %v2987_v31 = vpop.permute.xlu0 %2986 }
 0x23c   : > { %3075 = vst.msk [vmem:[#allocation2 + $0x20] sm:$0xf] %vm3066_vm13, %v2987_v31  ;;  %3926 = vrot.lane.b32.xlu1 %v3860_v21, %s5066_s23 }
 0x23d   : > { %3924 = vrot.lane.b32.xlu0 %v3857_v28, %s5066_s23 }
 0x23e   : > { %v3021_v36 = vpop.permute.xlu1 %3020 }
 0x23f   : > { %3092 = vst.msk [vmem:[#allocation2 + $0x64] sm:$0xf] %vm3066_vm13, %v3021_v36  ;;  %v3019_v39 = vpop.permute.xlu0 %3018 }
 0x240   : > { %3091 = vst.msk [vmem:[#allocation2 + $0x60] sm:$0xf] %vm3066_vm13, %v3019_v39  ;;  %3898 = vrot.lane.b32.xlu1 %v3811_v32, %s5066_s23 }
 0x241   : > { %3896 = vrot.lane.b32.xlu0 %v3808_v37, %s5066_s23 }
 0x242   : > { %v2993_v27 = vpop.permute.xlu1 %2992 }
 0x243   : > { %3078 = vst.msk [vmem:[#allocation2 + $0x2c] sm:$0xf] %vm3066_vm13, %v2993_v27  ;;  %v2991_v41 = vpop.permute.xlu0 %2990 }
 0x244   : > { %3077 = vst.msk [vmem:[#allocation2 + $0x28] sm:$0xf] %vm3066_vm13, %v2991_v41  ;;  %3930 = vrot.lane.b32.xlu1 %v3867_v40, %s5066_s23 }
 0x245   : > { %3928 = vrot.lane.b32.xlu0 %v3864_v24, %s5066_s23 }
 0x246   : > { %v3025_v42 = vpop.permute.xlu1 %3024 }
 0x247   : > { %3094 = vst.msk [vmem:[#allocation2 + $0x6c] sm:$0xf] %vm3066_vm13, %v3025_v42  ;;  %v3023_v43 = vpop.permute.xlu0 %3022 }
 0x248   : > { %3093 = vst.msk [vmem:[#allocation2 + $0x68] sm:$0xf] %vm3066_vm13, %v3023_v43 }
 0x24a   : > { %v3550_v44 = vpop.permute.xlu1 %3549 }
 0x24b   : > { %3637 = vst.msk [vmem:[#allocation2 + $0x24] sm:$0xf] %vm3627_vm14, %v3550_v44  ;;  %v3548_v6 = vpop.permute.xlu0 %3547 }
 0x24c   : > { %3636 = vst.msk [vmem:[#allocation2 + $0x20] sm:$0xf] %vm3627_vm14, %v3548_v6 }
 0x24e   : > { %v3582_v45 = vpop.permute.xlu1 %3581 }
 0x24f   : > { %3653 = vst.msk [vmem:[#allocation2 + $0x64] sm:$0xf] %vm3627_vm14, %v3582_v45  ;;  %v3580_v46 = vpop.permute.xlu0 %3579 }
 0x250   : > { %3652 = vst.msk [vmem:[#allocation2 + $0x60] sm:$0xf] %vm3627_vm14, %v3580_v46 }
 0x252   : > { %v3554_v47 = vpop.permute.xlu1 %3553 }
 0x253   : > { %3639 = vst.msk [vmem:[#allocation2 + $0x2c] sm:$0xf] %vm3627_vm14, %v3554_v47  ;;  %v3552_v49 = vpop.permute.xlu0 %3551 }
 0x254   : > { %3638 = vst.msk [vmem:[#allocation2 + $0x28] sm:$0xf] %vm3627_vm14, %v3552_v49 }
 0x256   : > { %v3586_v50 = vpop.permute.xlu1 %3585 }
 0x257   : > { %3655 = vst.msk [vmem:[#allocation2 + $0x6c] sm:$0xf] %vm3627_vm14, %v3586_v50  ;;  %v3584_v51 = vpop.permute.xlu0 %3583 }
 0x258   : > { %3654 = vst.msk [vmem:[#allocation2 + $0x68] sm:$0xf] %vm3627_vm14, %v3584_v51 }
 0x25a   : > { %v3887_v52 = vpop.permute.xlu1 %3886 }
 0x25b   : > { %3974 = vst.msk [vmem:[#allocation2 + $0x24] sm:$0xf] %vm3964_vm15, %v3887_v52  ;;  %v3885_v53 = vpop.permute.xlu0 %3884 }
 0x25c   : > { %3973 = vst.msk [vmem:[#allocation2 + $0x20] sm:$0xf] %vm3964_vm15, %v3885_v53 }
 0x25e   : > { %v3919_v54 = vpop.permute.xlu1 %3918 }
 0x25f   : > { %3990 = vst.msk [vmem:[#allocation2 + $0x64] sm:$0xf] %vm3964_vm15, %v3919_v54  ;;  %v3917_v55 = vpop.permute.xlu0 %3916 }
 0x260   : > { %3989 = vst.msk [vmem:[#allocation2 + $0x60] sm:$0xf] %vm3964_vm15, %v3917_v55 }
 0x262   : > { %v3891_v56 = vpop.permute.xlu1 %3890 }
 0x263   : > { %3976 = vst.msk [vmem:[#allocation2 + $0x2c] sm:$0xf] %vm3964_vm15, %v3891_v56  ;;  %v3889_v57 = vpop.permute.xlu0 %3888  ;;  %v5011_v59 = vld [vmem:[#allocation2 + $0x20] sm:$0xff]  }
 0x264   : > { %3975 = vst.msk [vmem:[#allocation2 + $0x28] sm:$0xf] %vm3964_vm15, %v3889_v57  ;;  %4917 = vmatprep.mubr.msk.bf16.mxu0 %vm4136_vm0, %v5011_v59 }
 0x266   : > { %v3923_v60 = vpop.permute.xlu1 %3922 }
 0x267   : > { %3992 = vst.msk [vmem:[#allocation2 + $0x6c] sm:$0xf] %vm3964_vm15, %v3923_v60  ;;  %v3921_v61 = vpop.permute.xlu0 %3920  ;;  %v5012_v62 = vld [vmem:[#allocation2 + $0x60] sm:$0xff]  }
 0x268   : > { %3991 = vst.msk [vmem:[#allocation2 + $0x68] sm:$0xf] %vm3964_vm15, %v3921_v61  ;;  %4933 = vmatprep.mubr.msk.bf16.mxu1 %vm4136_vm0, %v5012_v62 }
 0x26a   : > { %v2466_v48 = vpop.permute.xlu1 %2465 }
 0x26b   : > { %2549 = vst.msk [vmem:[#allocation2 + $0x34] sm:$0xf] %vm2535_vm11, %v2466_v48  ;;  %v2464_v1 = vpop.permute.xlu0 %2463  ;;  %v5013_v0 = vld [vmem:[#allocation2 + $0x28] sm:$0xff]  }
 0x26c   : > { %2548 = vst.msk [vmem:[#allocation2 + $0x30] sm:$0xf] %vm2535_vm11, %v2464_v1  ;;  %4918 = vmatmul.mubr.msk.bf16.gmra.mxu0 %vm4136_vm0, %v5013_v0 }
 0x26e   : > { %v2498_v2 = vpop.permute.xlu1 %2497 }
 0x26f   : > { %2565 = vst.msk [vmem:[#allocation2 + $0x74] sm:$0xf] %vm2535_vm11, %v2498_v2  ;;  %v2496_v3 = vpop.permute.xlu0 %2495  ;;  %v5014_v4 = vld [vmem:[#allocation2 + $0x68] sm:$0xff]  }
 0x270   : > { %2564 = vst.msk [vmem:[#allocation2 + $0x70] sm:$0xf] %vm2535_vm11, %v2496_v3  ;;  %4934 = vmatmul.mubr.msk.bf16.gmra.mxu1 %vm4136_vm0, %v5014_v4 }
 0x272   : > { %v2470_v7 = vpop.permute.xlu1 %2469 }
 0x273   : > { %2551 = vst.msk [vmem:[#allocation2 + $0x3c] sm:$0xf] %vm2535_vm11, %v2470_v7  ;;  %v2468_v8 = vpop.permute.xlu0 %2467 }
 0x274   : > { %2550 = vst.msk [vmem:[#allocation2 + $0x38] sm:$0xf] %vm2535_vm11, %v2468_v8 }
 0x276   : > { %v2502_v9 = vpop.permute.xlu1 %2501 }
 0x277   : > { %2567 = vst.msk [vmem:[#allocation2 + $0x7c] sm:$0xf] %vm2535_vm11, %v2502_v9  ;;  %v2500_v10 = vpop.permute.xlu0 %2499 }
 0x278   : > { %2566 = vst.msk [vmem:[#allocation2 + $0x78] sm:$0xf] %vm2535_vm11, %v2500_v10 }
 0x27a   : > { %v2803_v11 = vpop.permute.xlu1 %2802 }
 0x27b   : > { %2886 = vst.msk [vmem:[#allocation2 + $0x34] sm:$0xf] %vm2872_vm12, %v2803_v11  ;;  %v2801_v58 = vpop.permute.xlu0 %2800 }
 0x27c   : > { %2885 = vst.msk [vmem:[#allocation2 + $0x30] sm:$0xf] %vm2872_vm12, %v2801_v58 }
 0x27e   : > { %v2835_v35 = vpop.permute.xlu1 %2834 }
 0x27f   : > { %2902 = vst.msk [vmem:[#allocation2 + $0x74] sm:$0xf] %vm2872_vm12, %v2835_v35  ;;  %v2833_v63 = vpop.permute.xlu0 %2832 }
 0x280   : > { %2901 = vst.msk [vmem:[#allocation2 + $0x70] sm:$0xf] %vm2872_vm12, %v2833_v63 }
 0x282   : > { %v2807_v12 = vpop.permute.xlu1 %2806 }
 0x283   : > { %2888 = vst.msk [vmem:[#allocation2 + $0x3c] sm:$0xf] %vm2872_vm12, %v2807_v12  ;;  %v2805_v14 = vpop.permute.xlu0 %2804 }
 0x284   : > { %2887 = vst.msk [vmem:[#allocation2 + $0x38] sm:$0xf] %vm2872_vm12, %v2805_v14 }
 0x286   : > { %v2839_v16 = vpop.permute.xlu1 %2838 }
 0x287   : > { %2904 = vst.msk [vmem:[#allocation2 + $0x7c] sm:$0xf] %vm2872_vm12, %v2839_v16  ;;  %v2837_v17 = vpop.permute.xlu0 %2836 }
 0x288   : > { %2903 = vst.msk [vmem:[#allocation2 + $0x78] sm:$0xf] %vm2872_vm12, %v2837_v17 }
 0x28a   : > { %v2997_v5 = vpop.permute.xlu1 %2996 }
 0x28b   : > { %3080 = vst.msk [vmem:[#allocation2 + $0x34] sm:$0xf] %vm3066_vm13, %v2997_v5  ;;  %v2995_v18 = vpop.permute.xlu0 %2994 }
 0x28c   : > { %3079 = vst.msk [vmem:[#allocation2 + $0x30] sm:$0xf] %vm3066_vm13, %v2995_v18 }
 0x28e   : > { %v3029_v19 = vpop.permute.xlu1 %3028 }
 0x28f   : > { %3096 = vst.msk [vmem:[#allocation2 + $0x74] sm:$0xf] %vm3066_vm13, %v3029_v19  ;;  %v3027_v13 = vpop.permute.xlu0 %3026 }
 0x290   : > { %3095 = vst.msk [vmem:[#allocation2 + $0x70] sm:$0xf] %vm3066_vm13, %v3027_v13 }
 0x292   : > { %v3001_v20 = vpop.permute.xlu1 %3000 }
 0x293   : > { %3082 = vst.msk [vmem:[#allocation2 + $0x3c] sm:$0xf] %vm3066_vm13, %v3001_v20  ;;  %v2999_v21 = vpop.permute.xlu0 %2998 }
 0x294   : > { %3081 = vst.msk [vmem:[#allocation2 + $0x38] sm:$0xf] %vm3066_vm13, %v2999_v21 }
 0x296   : > { %v3033_v22 = vpop.permute.xlu1 %3032 }
 0x297   : > { %3098 = vst.msk [vmem:[#allocation2 + $0x7c] sm:$0xf] %vm3066_vm13, %v3033_v22  ;;  %v3031_v23 = vpop.permute.xlu0 %3030 }
 0x298   : > { %3097 = vst.msk [vmem:[#allocation2 + $0x78] sm:$0xf] %vm3066_vm13, %v3031_v23  ;;  %v4911_v26 = vpop.f32.mrf.mxu0 }
 0x299   : > { %v4232_v28 = vadd.f32 %v4911_v26, %v6741_v25 }
 0x29a   : > { %v3558_v29 = vpop.permute.xlu1 %3557  ;;  %v4223_v31 = vpop.f32.mrf.mxu0 }
 0x29b   : > { %3641 = vst.msk [vmem:[#allocation2 + $0x34] sm:$0xf] %vm3627_vm14, %v3558_v29  ;;  %v3556_v30 = vpop.permute.xlu0 %3555  ;;  %v4352_v15 = vmax.f32 %v4232_v28, 0.0  ;;  %v4224_v32 = vadd.f32 %v6741_v25, %v4223_v31 }
 0x29c   : > { %3640 = vst.msk [vmem:[#allocation2 + $0x30] sm:$0xf] %vm3627_vm14, %v3556_v30  ;;  %v4912_v33 = vpop.f32.mrf.mxu0  ;;  %v4927_v34 = vpop.f32.mrf.mxu1 }
 0x29d   : > { %4384 = vst [vmem:[%s6748_s29 + $0x10] sm:$0xff] %v4352_v15  ;;  %v4350_v36 = vmax.f32 %v4224_v32, 0.0  ;;  %v4235_v37 = vadd.f32 %v4912_v33, %v6741_v25  ;;  %v4296_v38 = vadd.f32 %v4927_v34, %v6741_v25 }
 0x29e   : > { %v3590_v39 = vpop.permute.xlu1 %3589  ;;  %v4226_v27 = vpop.f32.mrf.mxu0 }
 0x29f   : > { %3657 = vst.msk [vmem:[#allocation2 + $0x74] sm:$0xf] %vm3627_vm14, %v3590_v39  ;;  %v3588_v40 = vpop.permute.xlu0 %3587  ;;  %4382 = vst [vmem:[%s6748_s29] sm:$0xff] %v4350_v36  ;;  %v4353_v24 = vmax.f32 %v4235_v37, 0.0  ;;  %v4368_v41 = vmax.f32 %v4296_v38, 0.0  ;;  %v4227_v42 = vadd.f32 %v6741_v25, %v4226_v27  ;;  %v4287_v43 = vpop.f32.mrf.mxu1 }
 0x2a0   : > { %3656 = vst.msk [vmem:[#allocation2 + $0x70] sm:$0xf] %vm3627_vm14, %v3588_v40  ;;  %v4288_v44 = vadd.f32 %v6741_v25, %v4287_v43 }
 0x2a1   : > { %4385 = vst [vmem:[%s6748_s29 + $0x18] sm:$0xff] %v4353_v24  ;;  %4400 = vst [vmem:[%s6748_s29 + $0x90] sm:$0xff] %v4368_v41  ;;  %v4351_v6 = vmax.f32 %v4227_v42, 0.0  ;;  %v4928_v45 = vpop.f32.mrf.mxu1 }
 0x2a2   : > { %v3562_v46 = vpop.permute.xlu1 %3561  ;;  %v4366_v47 = vmax.f32 %v4288_v44, 0.0  ;;  %v4299_v49 = vadd.f32 %v4928_v45, %v6741_v25 }
 0x2a3   : > { %3643 = vst.msk [vmem:[#allocation2 + $0x3c] sm:$0xf] %vm3627_vm14, %v3562_v46  ;;  %v3560_v50 = vpop.permute.xlu0 %3559  ;;  %4383 = vst [vmem:[%s6748_s29 + $0x8] sm:$0xff] %v4351_v6  ;;  %v4290_v51 = vpop.f32.mrf.mxu1 }
 0x2a4   : > { %3642 = vst.msk [vmem:[#allocation2 + $0x38] sm:$0xf] %vm3627_vm14, %v3560_v50  ;;  %4398 = vst [vmem:[%s6748_s29 + $0x80] sm:$0xff] %v4366_v47  ;;  %v4369_v52 = vmax.f32 %v4299_v49, 0.0  ;;  %v4291_v53 = vadd.f32 %v6741_v25, %v4290_v51 }
 0x2a6   : > { %v3594_v54 = vpop.permute.xlu1 %3593  ;;  %4401 = vst [vmem:[%s6748_s29 + $0x98] sm:$0xff] %v4369_v52  ;;  %v4367_v55 = vmax.f32 %v4291_v53, 0.0 }
 0x2a7   : > { %3659 = vst.msk [vmem:[#allocation2 + $0x7c] sm:$0xf] %vm3627_vm14, %v3594_v54  ;;  %v3592_v56 = vpop.permute.xlu0 %3591 }
 0x2a8   : > { %3658 = vst.msk [vmem:[#allocation2 + $0x78] sm:$0xf] %vm3627_vm14, %v3592_v56  ;;  %4399 = vst [vmem:[%s6748_s29 + $0x88] sm:$0xff] %v4367_v55 }
 0x2aa   : > { %v3895_v57 = vpop.permute.xlu1 %3894 }
 0x2ab   : > { %3978 = vst.msk [vmem:[#allocation2 + $0x34] sm:$0xf] %vm3964_vm15, %v3895_v57  ;;  %v3893_v59 = vpop.permute.xlu0 %3892 }
 0x2ac   : > { %3977 = vst.msk [vmem:[#allocation2 + $0x30] sm:$0xf] %vm3964_vm15, %v3893_v59 }
 0x2ae   : > { %v3927_v60 = vpop.permute.xlu1 %3926 }
 0x2af   : > { %3994 = vst.msk [vmem:[#allocation2 + $0x74] sm:$0xf] %vm3964_vm15, %v3927_v60  ;;  %v3925_v61 = vpop.permute.xlu0 %3924 }
 0x2b0   : > { %3993 = vst.msk [vmem:[#allocation2 + $0x70] sm:$0xf] %vm3964_vm15, %v3925_v61 }
 0x2b2   : > { %v3899_v62 = vpop.permute.xlu1 %3898 }
 0x2b3   : > { %3980 = vst.msk [vmem:[#allocation2 + $0x3c] sm:$0xf] %vm3964_vm15, %v3899_v62  ;;  %v3897_v48 = vpop.permute.xlu0 %3896  ;;  %v5015_v1 = vld [vmem:[#allocation2 + $0x30] sm:$0xff]  }
 0x2b4   : > { %3979 = vst.msk [vmem:[#allocation2 + $0x38] sm:$0xf] %vm3964_vm15, %v3897_v48  ;;  %4921 = vmatprep.mubr.msk.bf16.mxu0 %vm4136_vm0, %v5015_v1 }
 0x2b6   : > { %v3931_v0 = vpop.permute.xlu1 %3930 }
 0x2b7   : > { %3996 = vst.msk [vmem:[#allocation2 + $0x7c] sm:$0xf] %vm3964_vm15, %v3931_v0  ;;  %v3929_v2 = vpop.permute.xlu0 %3928  ;;  %v5016_v3 = vld [vmem:[#allocation2 + $0x70] sm:$0xff]  }
 0x2b8   : > { %3995 = vst.msk [vmem:[#allocation2 + $0x78] sm:$0xf] %vm3964_vm15, %v3929_v2  ;;  %4937 = vmatprep.mubr.msk.bf16.mxu1 %vm4136_vm0, %v5016_v3 }
 0x2bb   : > { %v5017_v4 = vld [vmem:[#allocation2 + $0x38] sm:$0xff]  }
 0x2bc   : > { %4922 = vmatmul.mubr.msk.bf16.gmra.mxu0 %vm4136_vm0, %v5017_v4 }
 0x2bf   : > { %v5018_v7 = vld [vmem:[#allocation2 + $0x78] sm:$0xff]  }
 0x2c0   : > { %4938 = vmatmul.mubr.msk.bf16.gmra.mxu1 %vm4136_vm0, %v5018_v7 }
 0x2e0   : > { %v4915_v8 = vpop.f32.mrf.mxu0 }
 0x2e1   : > { %v4248_v9 = vadd.f32 %v4915_v8, %v6741_v25 }
 0x2e2   : > { %v4239_v10 = vpop.f32.mrf.mxu0 }
 0x2e3   : > { %v4356_v11 = vmax.f32 %v4248_v9, 0.0  ;;  %v4240_v58 = vadd.f32 %v6741_v25, %v4239_v10 }
 0x2e4   : > { %v4916_v35 = vpop.f32.mrf.mxu0  ;;  %v4931_v63 = vpop.f32.mrf.mxu1 }
 0x2e5   : > { %4388 = vst [vmem:[%s6748_s29 + $0x30] sm:$0xff] %v4356_v11  ;;  %v4354_v12 = vmax.f32 %v4240_v58, 0.0  ;;  %v4251_v14 = vadd.f32 %v4916_v35, %v6741_v25  ;;  %v4312_v16 = vadd.f32 %v4931_v63, %v6741_v25 }
 0x2e6   : > { %v4242_v17 = vpop.f32.mrf.mxu0  ;;  %v4303_v5 = vpop.f32.mrf.mxu1 }
 0x2e7   : > { %4386 = vst [vmem:[%s6748_s29 + $0x20] sm:$0xff] %v4354_v12  ;;  %v4357_v18 = vmax.f32 %v4251_v14, 0.0  ;;  %v4372_v19 = vmax.f32 %v4312_v16, 0.0  ;;  %v4243_v13 = vadd.f32 %v6741_v25, %v4242_v17  ;;  %v4304_v20 = vadd.f32 %v6741_v25, %v4303_v5 }
 0x2e8   : > { %v4932_v21 = vpop.f32.mrf.mxu1 }
 0x2e9   : > { %4389 = vst [vmem:[%s6748_s29 + $0x38] sm:$0xff] %v4357_v18  ;;  %4404 = vst [vmem:[%s6748_s29 + $0xb0] sm:$0xff] %v4372_v19  ;;  %v4355_v22 = vmax.f32 %v4243_v13, 0.0  ;;  %v4370_v23 = vmax.f32 %v4304_v20, 0.0  ;;  %v4315_v26 = vadd.f32 %v4932_v21, %v6741_v25 }
 0x2ea   : > { %v4306_v28 = vpop.f32.mrf.mxu1 }
 0x2eb   : > { %4387 = vst [vmem:[%s6748_s29 + $0x28] sm:$0xff] %v4355_v22  ;;  %4402 = vst [vmem:[%s6748_s29 + $0xa0] sm:$0xff] %v4370_v23  ;;  %v4373_v29 = vmax.f32 %v4315_v26, 0.0  ;;  %v4307_v30 = vadd.f32 %v6741_v25, %v4306_v28 }
 0x2ed   : > { %4405 = vst [vmem:[%s6748_s29 + $0xb8] sm:$0xff] %v4373_v29  ;;  %v4371_v31 = vmax.f32 %v4307_v30, 0.0 }
 0x2ef   : > { %4403 = vst [vmem:[%s6748_s29 + $0xa8] sm:$0xff] %v4371_v31 }
 0x32c   : > { %v4919_v15 = vpop.f32.mrf.mxu0 }
 0x32d   : > { %v4264_v32 = vadd.f32 %v4919_v15, %v6741_v25 }
 0x32e   : > { %v4255_v33 = vpop.f32.mrf.mxu0 }
 0x32f   : > { %v4360_v34 = vmax.f32 %v4264_v32, 0.0  ;;  %v4256_v36 = vadd.f32 %v6741_v25, %v4255_v33 }
 0x330   : > { %v4920_v37 = vpop.f32.mrf.mxu0  ;;  %v4935_v38 = vpop.f32.mrf.mxu1 }
 0x331   : > { %4392 = vst [vmem:[%s6748_s29 + $0x50] sm:$0xff] %v4360_v34  ;;  %v4358_v39 = vmax.f32 %v4256_v36, 0.0  ;;  %v4267_v40 = vadd.f32 %v4920_v37, %v6741_v25  ;;  %v4328_v27 = vadd.f32 %v4935_v38, %v6741_v25 }
 0x332   : > { %v4258_v24 = vpop.f32.mrf.mxu0  ;;  %v4319_v41 = vpop.f32.mrf.mxu1 }
 0x333   : > { %4390 = vst [vmem:[%s6748_s29 + $0x40] sm:$0xff] %v4358_v39  ;;  %v4361_v42 = vmax.f32 %v4267_v40, 0.0  ;;  %v4376_v43 = vmax.f32 %v4328_v27, 0.0  ;;  %v4259_v44 = vadd.f32 %v6741_v25, %v4258_v24  ;;  %v4320_v6 = vadd.f32 %v6741_v25, %v4319_v41 }
 0x334   : > { %v4936_v45 = vpop.f32.mrf.mxu1 }
 0x335   : > { %4393 = vst [vmem:[%s6748_s29 + $0x58] sm:$0xff] %v4361_v42  ;;  %4408 = vst [vmem:[%s6748_s29 + $0xd0] sm:$0xff] %v4376_v43  ;;  %v4359_v46 = vmax.f32 %v4259_v44, 0.0  ;;  %v4374_v47 = vmax.f32 %v4320_v6, 0.0  ;;  %v4331_v49 = vadd.f32 %v4936_v45, %v6741_v25 }
 0x336   : > { %v4322_v50 = vpop.f32.mrf.mxu1 }
 0x337   : > { %4391 = vst [vmem:[%s6748_s29 + $0x48] sm:$0xff] %v4359_v46  ;;  %4406 = vst [vmem:[%s6748_s29 + $0xc0] sm:$0xff] %v4374_v47  ;;  %v4377_v51 = vmax.f32 %v4331_v49, 0.0  ;;  %v4323_v52 = vadd.f32 %v6741_v25, %v4322_v50 }
 0x339   : > { %4409 = vst [vmem:[%s6748_s29 + $0xd8] sm:$0xff] %v4377_v51  ;;  %v4375_v53 = vmax.f32 %v4323_v52, 0.0 }
 0x33b   : > { %4407 = vst [vmem:[%s6748_s29 + $0xc8] sm:$0xff] %v4375_v53 }
 0x37c   : > { %v4923_v54 = vpop.f32.mrf.mxu0 }
 0x37d   : > { %v4280_v55 = vadd.f32 %v4923_v54, %v6741_v25 }
 0x37e   : > { %v4271_v56 = vpop.f32.mrf.mxu0 }
 0x37f   : > { %v4364_v57 = vmax.f32 %v4280_v55, 0.0  ;;  %v4272_v59 = vadd.f32 %v6741_v25, %v4271_v56 }
 0x380   : > { %v4924_v60 = vpop.f32.mrf.mxu0  ;;  %v4939_v61 = vpop.f32.mrf.mxu1 }
 0x381   : > { %4396 = vst [vmem:[%s6748_s29 + $0x70] sm:$0xff] %v4364_v57  ;;  %v4362_v62 = vmax.f32 %v4272_v59, 0.0  ;;  %v4283_v48 = vadd.f32 %v4924_v60, %v6741_v25  ;;  %v4344_v1 = vadd.f32 %v4939_v61, %v6741_v25 }
 0x382   : > { %v4274_v0 = vpop.f32.mrf.mxu0  ;;  %v4335_v2 = vpop.f32.mrf.mxu1 }
 0x383   : > { %4394 = vst [vmem:[%s6748_s29 + $0x60] sm:$0xff] %v4362_v62  ;;  %v4365_v3 = vmax.f32 %v4283_v48, 0.0  ;;  %v4380_v4 = vmax.f32 %v4344_v1, 0.0  ;;  %v4275_v7 = vadd.f32 %v6741_v25, %v4274_v0  ;;  %v4336_v8 = vadd.f32 %v6741_v25, %v4335_v2 }
 0x384   : > { %v4940_v9 = vpop.f32.mrf.mxu1 }
 0x385   : > { %4397 = vst [vmem:[%s6748_s29 + $0x78] sm:$0xff] %v4365_v3  ;;  %4412 = vst [vmem:[%s6748_s29 + $0xf0] sm:$0xff] %v4380_v4  ;;  %v4363_v10 = vmax.f32 %v4275_v7, 0.0  ;;  %v4378_v11 = vmax.f32 %v4336_v8, 0.0  ;;  %v4347_v58 = vadd.f32 %v4940_v9, %v6741_v25 }
 0x386   : > { %v4338_v35 = vpop.f32.mrf.mxu1 }
 0x387   : > { %4395 = vst [vmem:[%s6748_s29 + $0x68] sm:$0xff] %v4363_v10  ;;  %4410 = vst [vmem:[%s6748_s29 + $0xe0] sm:$0xff] %v4378_v11  ;;  %v4381_v63 = vmax.f32 %v4347_v58, 0.0  ;;  %v4339_v12 = vadd.f32 %v6741_v25, %v4338_v35 }
 0x389   : > { %4413 = vst [vmem:[%s6748_s29 + $0xf8] sm:$0xff] %v4381_v63  ;;  %v4379_v14 = vmax.f32 %v4339_v12, 0.0 }
 0x38b   : > { %4411 = vst [vmem:[%s6748_s29 + $0xe8] sm:$0xff] %v4379_v14 }
 0x38c PF: > { %s13_s16 = sadd.s32 1, %s5057_s16   ;;  %s6856_s12 = smov %s5045_s13 }
 0x38d   : > { %p10_p10 = scmp.ge.s32.totalorder %s13_s16, 4   ;;  %s6857_s13 = smov %s5122_s20 }
 0x38e   : > { %s6858_s14 = smov %s5053_s15  ;;  %s6859_s15 = smov %s6861_s17 }
 0x38f   :  { %12 = sbr.rel (!%p10_p10) target bundleno = 3 (0x3), region = 116 }

</bundles_post_ra>
